<compile_context>
chip_gen: v5e
topology: v5e:2x2
jax: 0.10.0
libtpu: 0.0.40
codegen_flags: <defaults>
</compile_context>

<pallas_src>
import functools

import numpy as np
import jax
import jax.numpy as jnp
from jax.experimental import pallas as pl
from jax.experimental.pallas import tpu as pltpu

ARCH = [64, 128, 'M', 256, 256, 'M', 512, 512, 'M', 512, 512, 'M']
BN_EPS = 1e-5
NUM_CLASSES = 10
VMEM_LIMIT = 48 * 1024 * 1024   # safe on v7x (64 MiB) and v5e/v6e (128 MiB)


def _round_up(a, m):
    return ((a + m - 1) // m) * m


# ----------------------------------------------------------------------------
# Host-side constant helpers (placement / masking tables)
# ----------------------------------------------------------------------------
def _col_mask(H, W, Wp):
    """(H*Wp, 1) bf16 mask: 1 on valid columns j < W, 0 on junk columns."""
    m = np.zeros((H * Wp, 1), np.float32)
    for i in range(H):
        m[i * Wp: i * Wp + W, 0] = 1.0
    return jnp.asarray(m, jnp.bfloat16)


def _pool_place(H, W, Wp, Wp2):
    """0/1 selection matrix S ((Ho+3)*Wp2, H*Wp): S @ f places the 2x2-max
    value (top-left position p) at padded output position (io+1, jo+1),
    zeroing borders and junk columns in the same matmul."""
    Ho, Wo = H // 2, W // 2
    Pv = H * Wp
    P_out = (Ho + 3) * Wp2
    S = np.zeros((P_out, Pv), np.float32)
    for io in range(Ho):
        for jo in range(Wo):
            S[(io + 1) * Wp2 + (jo + 1), (2 * io) * Wp + (2 * jo)] = 1.0
    return jnp.asarray(S, jnp.bfloat16)


def _head_mask(H, W, Wp):
    """((H+3)*Wp, 1) f32 mask of valid positions in the padded layout."""
    m = np.zeros(((H + 3) * Wp, 1), np.float32)
    for i in range(H):
        m[(i + 1) * Wp + 1: (i + 1) * Wp + 1 + W, 0] = 1.0
    return jnp.asarray(m)


# ----------------------------------------------------------------------------
# Fused 3x3 conv (in-kernel im2col) + folded BN + ReLU (+ optional 2x2 maxpool)
# writing a zero-bordered padded-layout output consumable by the next conv.
# ----------------------------------------------------------------------------
def _conv_bn_relu_kernel(x_ref, w_ref, s_ref, b_ref, p_ref, o_ref, *,
                         H, Wp, b_tile, pooled):
    """x_ref: (b_tile, P_in, Cin) bf16   -- padded-layout input, flattened rows
    w_ref: (9, Cin, TC) bf16             -- per-tap weight matrices
    s_ref/b_ref: (1, TC) f32             -- folded BN scale / shift
    p_ref: pooled -> (P_out, Pv) bf16 selection matrix
           else   -> (Pv, 1)   bf16 valid-column mask
    o_ref: (b_tile, P_out, TC) bf16      -- padded-layout output
    """
    Pv = H * Wp
    TC = o_ref.shape[-1]
    P_out = o_ref.shape[1]
    M = b_tile * Pv

    def lhs(off):
        # batch-folded LHS: concat per-image shifted windows along M (no gaps,
        # Pv is a multiple of 8 so the concat is tile-aligned).
        parts = [x_ref[b, pl.ds(off, Pv), :] for b in range(b_tile)]
        return parts[0] if b_tile == 1 else jnp.concatenate(parts, axis=0)

    # 9-tap accumulation; tap (dy, dx) is a (dy*Wp + dx)-shifted flat window.
    # Accumulator initialized from tap 0 (no zero-fill).
    acc = jnp.dot(lhs(0), w_ref[0], preferred_element_type=jnp.float32)
    for t in range(1, 9):
        dy, dx = divmod(t, 3)
        acc = acc + jnp.dot(lhs(dy * Wp + dx), w_ref[t],
                            preferred_element_type=jnp.float32)

    y = jnp.maximum(acc * s_ref[...] + b_ref[...], 0.0)   # (M, TC) f32, BN+ReLU
    y = y.astype(o_ref.dtype)                              # bf16

    if pooled:
        # 4-way shifted max = 2x2 maxpool value at every top-left position.
        def shift(a, k):
            return jnp.concatenate(
                [a[k:, :], jnp.zeros((k, TC), a.dtype)], axis=0)

        f = jnp.maximum(jnp.maximum(y, shift(y, 1)),
                        jnp.maximum(shift(y, Wp), shift(y, Wp + 1)))
        S = p_ref[...]                                      # (P_out, Pv) bf16
        for b in range(b_tile):
            o_ref[b, :, :] = jnp.dot(
                S, f[b * Pv:(b + 1) * Pv, :],
                preferred_element_type=jnp.float32).astype(o_ref.dtype)
    else:
        mask = p_ref[...]                                   # (Pv, 1) bf16
        o_ref[:, 0:Wp + 1, :] = jnp.zeros((b_tile, Wp + 1, TC), o_ref.dtype)
        tail = P_out - (Wp + 1) - Pv
        o_ref[:, Wp + 1 + Pv:P_out, :] = jnp.zeros((b_tile, tail, TC),
                                                   o_ref.dtype)
        for b in range(b_tile):
            # shifted store places y[i*Wp+j] at padded position (i+1, j+1);
            # masked junk columns provide the interior zero borders.
            o_ref[b, Wp + 1:Wp + 1 + Pv, :] = y[b * Pv:(b + 1) * Pv, :] * mask


def conv_bn_relu(x, w_taps, scale, shift, place, *, H, W, Wp, pooled, P_out):
    """x: (N, (H+3)*Wp, Cin) bf16 padded layout; returns (N, P_out, Cout) bf16."""
    N, P_in, Cin = x.shape
    Cout = w_taps.shape[-1]
    TC = Cout if Cout <= 256 else 256     # >=2 Cout blocks on 512-ch layers
    ncb = Cout // TC
    Pv = H * Wp

    # Fold batch into the matmul M dimension; keep M <= ~256 rows so the f32
    # accumulator stays small while MXU row utilization is high on deep layers.
    b_tile = 1
    while (b_tile * 2 <= N and N % (b_tile * 2) == 0
           and (b_tile * 2) * Pv <= 256
           and (b_tile * 2) * P_in * Cin * 2 <= (4 << 20)):
        b_tile *= 2
    nb = N // b_tile

    kernel = functools.partial(_conv_bn_relu_kernel,
                               H=H, Wp=Wp, b_tile=b_tile, pooled=pooled)
    return pl.pallas_call(
        kernel,
        out_shape=jax.ShapeDtypeStruct((N, P_out, Cout), jnp.bfloat16),
        # Cout-block axis OUTER, batch inner -> weight tile revisited across
        # consecutive batch steps (no re-DMA of the 2.25 MiB deep-layer tiles).
        grid=(ncb, nb),
        in_specs=[
            pl.BlockSpec((b_tile, P_in, Cin), lambda c, n: (n, 0, 0)),
            pl.BlockSpec((9, Cin, TC), lambda c, n: (0, 0, c)),
            pl.BlockSpec((1, TC), lambda c, n: (0, c)),
            pl.BlockSpec((1, TC), lambda c, n: (0, c)),
            pl.BlockSpec(place.shape, lambda c, n: (0, 0)),
        ],
        out_specs=pl.BlockSpec((b_tile, P_out, TC), lambda c, n: (n, 0, c)),
        compiler_params=pltpu.CompilerParams(
            dimension_semantics=("parallel", "parallel"),
            vmem_limit_bytes=VMEM_LIMIT,
        ),
    )(x, w_taps, scale, shift, place)


# ----------------------------------------------------------------------------
# Head: masked global mean over the padded layout + Linear(512 -> 10), f32
# ----------------------------------------------------------------------------
def _head_kernel(x_ref, m_ref, w_ref, b_ref, o_ref, *, inv_hw):
    xs = x_ref[...].astype(jnp.float32) * m_ref[...]       # zero out padding
    feat = jnp.sum(xs, axis=1) * inv_hw                    # (N, C) spatial mean
    o_ref[...] = (jnp.dot(feat, w_ref[...], preferred_element_type=jnp.float32)
                  + b_ref[...])


def head(x, valid_mask, fc_wt, fc_b, *, hw):
    N, P_last, C = x.shape
    return pl.pallas_call(
        functools.partial(_head_kernel, inv_hw=1.0 / float(hw)),
        out_shape=jax.ShapeDtypeStruct((N, NUM_CLASSES), jnp.float32),
        grid=(1,),
        in_specs=[
            pl.BlockSpec((N, P_last, C), lambda i: (0, 0, 0)),
            pl.BlockSpec((P_last, 1), lambda i: (0, 0)),
            pl.BlockSpec((C, NUM_CLASSES), lambda i: (0, 0)),
            pl.BlockSpec((1, NUM_CLASSES), lambda i: (0, 0)),
        ],
        out_specs=pl.BlockSpec((N, NUM_CLASSES), lambda i: (0, 0)),
        compiler_params=pltpu.CompilerParams(vmem_limit_bytes=VMEM_LIMIT),
    )(x, valid_mask, fc_wt, fc_b)


# ----------------------------------------------------------------------------
# Deterministic parameter construction (shapes per VGG.__init__)
# ----------------------------------------------------------------------------
def make_params(key):
    backbone = []
    in_ch = 3
    for spec in ARCH:
        if spec == 'M':
            continue
        out_ch = spec
        key, kw, kg, kb, km, kv = jax.random.split(key, 6)
        w = jax.random.normal(kw, (out_ch, in_ch, 3, 3), jnp.float32) * jnp.sqrt(
            2.0 / (9.0 * in_ch))
        gamma = 1.0 + 0.1 * jax.random.normal(kg, (out_ch,), jnp.float32)
        beta = 0.1 * jax.random.normal(kb, (out_ch,), jnp.float32)
        rmean = 0.1 * jax.random.normal(km, (out_ch,), jnp.float32)
        rvar = 0.5 + jax.random.uniform(kv, (out_ch,), jnp.float32)
        # eval-mode BatchNorm folded into per-channel scale/shift (f32)
        scale = gamma / jnp.sqrt(rvar + BN_EPS)
        shift = beta - rmean * scale
        # (Cout, Cin, 3, 3) -> (ky, kx, Cin, Cout) -> (9, Cin, Cout), bf16
        w_taps = (jnp.transpose(w, (2, 3, 1, 0))
                  .reshape(9, in_ch, out_ch).astype(jnp.bfloat16))
        backbone.append((w_taps, scale.reshape(1, out_ch),
                         shift.reshape(1, out_ch)))
        in_ch = out_ch

    key, kw, kb = jax.random.split(key, 3)
    fc_w = jax.random.normal(kw, (NUM_CLASSES, 512), jnp.float32) / jnp.sqrt(512.0)
    fc_b = 0.1 * jax.random.normal(kb, (NUM_CLASSES,), jnp.float32)
    fc = (jnp.transpose(fc_w), fc_b.reshape(1, NUM_CLASSES))
    return backbone, fc


# ----------------------------------------------------------------------------
# Full forward pass
# ----------------------------------------------------------------------------
def vgg_forward(x_nchw, backbone, fc):
    N, C0, H, W = x_nchw.shape
    Wp = _round_up(W + 2, 8)
    # one tiny pad of the raw input into the padded layout; every later layer
    # produces the padded layout directly in-kernel.
    x = jnp.transpose(x_nchw, (0, 2, 3, 1)).astype(jnp.bfloat16)
    x = jnp.pad(x, ((0, 0), (1, 2), (1, Wp - W - 1), (0, 0)))
    x = x.reshape(N, (H + 3) * Wp, C0)

    li = 0
    i = 0
    while i < len(ARCH):
        spec = ARCH[i]
        assert spec != 'M', "standalone pool not present in this ARCH"
        w_taps, scale, shift = backbone[li]
        li += 1
        pooled = (i + 1 < len(ARCH)) and (ARCH[i + 1] == 'M')
        if pooled:
            assert H % 2 == 0 and W % 2 == 0
            Ho, Wo = H // 2, W // 2
            Wp_out = _round_up(Wo + 2, 8)
            place = _pool_place(H, W, Wp, Wp_out)
        else:
            Ho, Wo, Wp_out = H, W, Wp
            place = _col_mask(H, W, Wp)
        P_out = (Ho + 3) * Wp_out
        x = conv_bn_relu(x, w_taps, scale, shift, place,
                         H=H, W=W, Wp=Wp, pooled=pooled, P_out=P_out)
        H, W, Wp = Ho, Wo, Wp_out
        i += 2 if pooled else 1

    fc_wt, fc_b = fc
    return head(x, _head_mask(H, W, Wp), fc_wt, fc_b, hw=H * W)


if __name__ == "__main__":
    key = jax.random.PRNGKey(0)
    kx, kp = jax.random.split(key)
    # small but architecture-consistent input: batch=2, channels=3, spatial=16
    x = jax.random.normal(kx, (2, 3, 16, 16), jnp.float32)

    backbone, fc = make_params(kp)
    logits = vgg_forward(x, backbone, fc)
    logits = jax.block_until_ready(logits)

    assert logits.shape == (2, NUM_CLASSES)
    assert logits.dtype == jnp.float32
    print("KERNEL_OK")
</pallas_src>

<mosaic_0001>
module attributes {stable_mosaic.version = 11 : i64} {
  func.func @_conv_bn_relu_kernel(%arg0: i32, %arg1: i32, %arg2: memref<1x456x3xbf16, #tpu.memory_space<vmem>>, %arg3: memref<9x3x64xbf16, #tpu.memory_space<vmem>>, %arg4: memref<1x64xf32, #tpu.memory_space<vmem>>, %arg5: memref<1x64xf32, #tpu.memory_space<vmem>>, %arg6: memref<384x1xbf16, #tpu.memory_space<vmem>>, %arg7: memref<1x456x64xbf16, #tpu.memory_space<vmem>>) attributes {dimension_semantics = [#tpu.dimension_semantics<parallel>, #tpu.dimension_semantics<parallel>], iteration_bounds = array<i64: 1, 2>, scalar_prefetch = 0 : i64, scratch_operands = 0 : i64, tpu.core_type = #tpu.core_type<tc>, window_params = [{transform_indices = @transform_0, window_bounds = array<i64: 1, 456, 3>}, {transform_indices = @transform_1, window_bounds = array<i64: 9, 3, 64>}, {transform_indices = @transform_2, window_bounds = array<i64: 1, 64>}, {transform_indices = @transform_3, window_bounds = array<i64: 1, 64>}, {pipeline_mode = #tpu.pipeline_mode<synchronous>, transform_indices = @transform_4, window_bounds = array<i64: 384, 1>}, {transform_indices = @transform_5, window_bounds = array<i64: 1, 456, 64>}]} {
    %c0 = arith.constant 0 : index
    %c0_0 = arith.constant 0 : index
    %c0_1 = arith.constant 0 : index
    %0 = vector.load %arg2[%c0, %c0_0, %c0_1] : memref<1x456x3xbf16, #tpu.memory_space<vmem>>, vector<1x384x3xbf16>
    %1 = vector.shape_cast %0 : vector<1x384x3xbf16> to vector<384x3xbf16>
    %c0_2 = arith.constant 0 : index
    %c0_3 = arith.constant 0 : index
    %c0_4 = arith.constant 0 : index
    %2 = vector.load %arg3[%c0_2, %c0_3, %c0_4] : memref<9x3x64xbf16, #tpu.memory_space<vmem>>, vector<1x3x64xbf16>
    %3 = vector.shape_cast %2 : vector<1x3x64xbf16> to vector<3x64xbf16>
    %cst = arith.constant dense<0.000000e+00> : vector<384x64xf32>
    %4 = tpu.matmul %1, %3, %cst {dimension_numbers = #tpu.dot_dimension_numbers<[1], [0], [0], [1], [0, 0, 1, 1], [], []>} : vector<384x3xbf16>, vector<3x64xbf16>, vector<384x64xf32> -> vector<384x64xf32>
    %c0_5 = arith.constant 0 : index
    %c1 = arith.constant 1 : index
    %c0_6 = arith.constant 0 : index
    %5 = vector.load %arg2[%c0_5, %c1, %c0_6] : memref<1x456x3xbf16, #tpu.memory_space<vmem>>, vector<1x384x3xbf16>
    %6 = vector.shape_cast %5 : vector<1x384x3xbf16> to vector<384x3xbf16>
    %c1_7 = arith.constant 1 : index
    %c0_8 = arith.constant 0 : index
    %c0_9 = arith.constant 0 : index
    %7 = vector.load %arg3[%c1_7, %c0_8, %c0_9] : memref<9x3x64xbf16, #tpu.memory_space<vmem>>, vector<1x3x64xbf16>
    %8 = vector.shape_cast %7 : vector<1x3x64xbf16> to vector<3x64xbf16>
    %cst_10 = arith.constant dense<0.000000e+00> : vector<384x64xf32>
    %9 = tpu.matmul %6, %8, %cst_10 {dimension_numbers = #tpu.dot_dimension_numbers<[1], [0], [0], [1], [0, 0, 1, 1], [], []>} : vector<384x3xbf16>, vector<3x64xbf16>, vector<384x64xf32> -> vector<384x64xf32>
    %10 = arith.addf %4, %9 : vector<384x64xf32>
    %c0_11 = arith.constant 0 : index
    %c2 = arith.constant 2 : index
    %c0_12 = arith.constant 0 : index
    %11 = vector.load %arg2[%c0_11, %c2, %c0_12] : memref<1x456x3xbf16, #tpu.memory_space<vmem>>, vector<1x384x3xbf16>
    %12 = vector.shape_cast %11 : vector<1x384x3xbf16> to vector<384x3xbf16>
    %c2_13 = arith.constant 2 : index
    %c0_14 = arith.constant 0 : index
    %c0_15 = arith.constant 0 : index
    %13 = vector.load %arg3[%c2_13, %c0_14, %c0_15] : memref<9x3x64xbf16, #tpu.memory_space<vmem>>, vector<1x3x64xbf16>
    %14 = vector.shape_cast %13 : vector<1x3x64xbf16> to vector<3x64xbf16>
    %cst_16 = arith.constant dense<0.000000e+00> : vector<384x64xf32>
    %15 = tpu.matmul %12, %14, %cst_16 {dimension_numbers = #tpu.dot_dimension_numbers<[1], [0], [0], [1], [0, 0, 1, 1], [], []>} : vector<384x3xbf16>, vector<3x64xbf16>, vector<384x64xf32> -> vector<384x64xf32>
    %16 = arith.addf %10, %15 : vector<384x64xf32>
    %c0_17 = arith.constant 0 : index
    %c24 = arith.constant 24 : index
    %c0_18 = arith.constant 0 : index
    %17 = vector.load %arg2[%c0_17, %c24, %c0_18] : memref<1x456x3xbf16, #tpu.memory_space<vmem>>, vector<1x384x3xbf16>
    %18 = vector.shape_cast %17 : vector<1x384x3xbf16> to vector<384x3xbf16>
    %c3 = arith.constant 3 : index
    %c0_19 = arith.constant 0 : index
    %c0_20 = arith.constant 0 : index
    %19 = vector.load %arg3[%c3, %c0_19, %c0_20] : memref<9x3x64xbf16, #tpu.memory_space<vmem>>, vector<1x3x64xbf16>
    %20 = vector.shape_cast %19 : vector<1x3x64xbf16> to vector<3x64xbf16>
    %cst_21 = arith.constant dense<0.000000e+00> : vector<384x64xf32>
    %21 = tpu.matmul %18, %20, %cst_21 {dimension_numbers = #tpu.dot_dimension_numbers<[1], [0], [0], [1], [0, 0, 1, 1], [], []>} : vector<384x3xbf16>, vector<3x64xbf16>, vector<384x64xf32> -> vector<384x64xf32>
    %22 = arith.addf %16, %21 : vector<384x64xf32>
    %c0_22 = arith.constant 0 : index
    %c25 = arith.constant 25 : index
    %c0_23 = arith.constant 0 : index
    %23 = vector.load %arg2[%c0_22, %c25, %c0_23] : memref<1x456x3xbf16, #tpu.memory_space<vmem>>, vector<1x384x3xbf16>
    %24 = vector.shape_cast %23 : vector<1x384x3xbf16> to vector<384x3xbf16>
    %c4 = arith.constant 4 : index
    %c0_24 = arith.constant 0 : index
    %c0_25 = arith.constant 0 : index
    %25 = vector.load %arg3[%c4, %c0_24, %c0_25] : memref<9x3x64xbf16, #tpu.memory_space<vmem>>, vector<1x3x64xbf16>
    %26 = vector.shape_cast %25 : vector<1x3x64xbf16> to vector<3x64xbf16>
    %cst_26 = arith.constant dense<0.000000e+00> : vector<384x64xf32>
    %27 = tpu.matmul %24, %26, %cst_26 {dimension_numbers = #tpu.dot_dimension_numbers<[1], [0], [0], [1], [0, 0, 1, 1], [], []>} : vector<384x3xbf16>, vector<3x64xbf16>, vector<384x64xf32> -> vector<384x64xf32>
    %28 = arith.addf %22, %27 : vector<384x64xf32>
    %c0_27 = arith.constant 0 : index
    %c26 = arith.constant 26 : index
    %c0_28 = arith.constant 0 : index
    %29 = vector.load %arg2[%c0_27, %c26, %c0_28] : memref<1x456x3xbf16, #tpu.memory_space<vmem>>, vector<1x384x3xbf16>
    %30 = vector.shape_cast %29 : vector<1x384x3xbf16> to vector<384x3xbf16>
    %c5 = arith.constant 5 : index
    %c0_29 = arith.constant 0 : index
    %c0_30 = arith.constant 0 : index
    %31 = vector.load %arg3[%c5, %c0_29, %c0_30] : memref<9x3x64xbf16, #tpu.memory_space<vmem>>, vector<1x3x64xbf16>
    %32 = vector.shape_cast %31 : vector<1x3x64xbf16> to vector<3x64xbf16>
    %cst_31 = arith.constant dense<0.000000e+00> : vector<384x64xf32>
    %33 = tpu.matmul %30, %32, %cst_31 {dimension_numbers = #tpu.dot_dimension_numbers<[1], [0], [0], [1], [0, 0, 1, 1], [], []>} : vector<384x3xbf16>, vector<3x64xbf16>, vector<384x64xf32> -> vector<384x64xf32>
    %34 = arith.addf %28, %33 : vector<384x64xf32>
    %c0_32 = arith.constant 0 : index
    %c48 = arith.constant 48 : index
    %c0_33 = arith.constant 0 : index
    %35 = vector.load %arg2[%c0_32, %c48, %c0_33] : memref<1x456x3xbf16, #tpu.memory_space<vmem>>, vector<1x384x3xbf16>
    %36 = vector.shape_cast %35 : vector<1x384x3xbf16> to vector<384x3xbf16>
    %c6 = arith.constant 6 : index
    %c0_34 = arith.constant 0 : index
    %c0_35 = arith.constant 0 : index
    %37 = vector.load %arg3[%c6, %c0_34, %c0_35] : memref<9x3x64xbf16, #tpu.memory_space<vmem>>, vector<1x3x64xbf16>
    %38 = vector.shape_cast %37 : vector<1x3x64xbf16> to vector<3x64xbf16>
    %cst_36 = arith.constant dense<0.000000e+00> : vector<384x64xf32>
    %39 = tpu.matmul %36, %38, %cst_36 {dimension_numbers = #tpu.dot_dimension_numbers<[1], [0], [0], [1], [0, 0, 1, 1], [], []>} : vector<384x3xbf16>, vector<3x64xbf16>, vector<384x64xf32> -> vector<384x64xf32>
    %40 = arith.addf %34, %39 : vector<384x64xf32>
    %c0_37 = arith.constant 0 : index
    %c49 = arith.constant 49 : index
    %c0_38 = arith.constant 0 : index
    %41 = vector.load %arg2[%c0_37, %c49, %c0_38] : memref<1x456x3xbf16, #tpu.memory_space<vmem>>, vector<1x384x3xbf16>
    %42 = vector.shape_cast %41 : vector<1x384x3xbf16> to vector<384x3xbf16>
    %c7 = arith.constant 7 : index
    %c0_39 = arith.constant 0 : index
    %c0_40 = arith.constant 0 : index
    %43 = vector.load %arg3[%c7, %c0_39, %c0_40] : memref<9x3x64xbf16, #tpu.memory_space<vmem>>, vector<1x3x64xbf16>
    %44 = vector.shape_cast %43 : vector<1x3x64xbf16> to vector<3x64xbf16>
    %cst_41 = arith.constant dense<0.000000e+00> : vector<384x64xf32>
    %45 = tpu.matmul %42, %44, %cst_41 {dimension_numbers = #tpu.dot_dimension_numbers<[1], [0], [0], [1], [0, 0, 1, 1], [], []>} : vector<384x3xbf16>, vector<3x64xbf16>, vector<384x64xf32> -> vector<384x64xf32>
    %46 = arith.addf %40, %45 : vector<384x64xf32>
    %c0_42 = arith.constant 0 : index
    %c50 = arith.constant 50 : index
    %c0_43 = arith.constant 0 : index
    %47 = vector.load %arg2[%c0_42, %c50, %c0_43] : memref<1x456x3xbf16, #tpu.memory_space<vmem>>, vector<1x384x3xbf16>
    %48 = vector.shape_cast %47 : vector<1x384x3xbf16> to vector<384x3xbf16>
    %c8 = arith.constant 8 : index
    %c0_44 = arith.constant 0 : index
    %c0_45 = arith.constant 0 : index
    %49 = vector.load %arg3[%c8, %c0_44, %c0_45] : memref<9x3x64xbf16, #tpu.memory_space<vmem>>, vector<1x3x64xbf16>
    %50 = vector.shape_cast %49 : vector<1x3x64xbf16> to vector<3x64xbf16>
    %cst_46 = arith.constant dense<0.000000e+00> : vector<384x64xf32>
    %51 = tpu.matmul %48, %50, %cst_46 {dimension_numbers = #tpu.dot_dimension_numbers<[1], [0], [0], [1], [0, 0, 1, 1], [], []>} : vector<384x3xbf16>, vector<3x64xbf16>, vector<384x64xf32> -> vector<384x64xf32>
    %52 = arith.addf %46, %51 : vector<384x64xf32>
    %c0_47 = arith.constant 0 : index
    %c0_48 = arith.constant 0 : index
    %53 = vector.load %arg4[%c0_47, %c0_48] : memref<1x64xf32, #tpu.memory_space<vmem>>, vector<1x64xf32>
    %54 = vector.broadcast %53 : vector<1x64xf32> to vector<384x64xf32>
    %55 = arith.mulf %52, %54 : vector<384x64xf32>
    %c0_49 = arith.constant 0 : index
    %c0_50 = arith.constant 0 : index
    %56 = vector.load %arg5[%c0_49, %c0_50] : memref<1x64xf32, #tpu.memory_space<vmem>>, vector<1x64xf32>
    %57 = vector.broadcast %56 : vector<1x64xf32> to vector<384x64xf32>
    %58 = arith.addf %55, %57 : vector<384x64xf32>
    %cst_51 = arith.constant 0.000000e+00 : f32
    %59 = vector.broadcast %cst_51 : f32 to vector<384x64xf32>
    %60 = arith.maximumf %58, %59 : vector<384x64xf32>
    %61 = arith.truncf %60 : vector<384x64xf32> to vector<384x64xbf16>
    %c0_52 = arith.constant 0 : index
    %c0_53 = arith.constant 0 : index
    %62 = vector.load %arg6[%c0_52, %c0_53] : memref<384x1xbf16, #tpu.memory_space<vmem>>, vector<384x1xbf16>
    %cst_54 = arith.constant 0.000000e+00 : bf16
    %63 = vector.broadcast %cst_54 : bf16 to vector<1x25x64xbf16>
    %c0_55 = arith.constant 0 : index
    %c0_56 = arith.constant 0 : index
    %c0_57 = arith.constant 0 : index
    %64 = vector.load %arg7[%c0_55, %c0_56, %c0_57] : memref<1x456x64xbf16, #tpu.memory_space<vmem>>, vector<1x25x64xbf16>
    tpu.vector_store %arg7[%c0_55, %c0_56, %c0_57], %63 {strides = array<i32>} : memref<1x456x64xbf16, #tpu.memory_space<vmem>>, vector<1x25x64xbf16>,
    %cst_58 = arith.constant 0.000000e+00 : bf16
    %65 = vector.broadcast %cst_58 : bf16 to vector<1x47x64xbf16>
    %c0_59 = arith.constant 0 : index
    %c409 = arith.constant 409 : index
    %c0_60 = arith.constant 0 : index
    %66 = vector.load %arg7[%c0_59, %c409, %c0_60] : memref<1x456x64xbf16, #tpu.memory_space<vmem>>, vector<1x47x64xbf16>
    tpu.vector_store %arg7[%c0_59, %c409, %c0_60], %65 {strides = array<i32>} : memref<1x456x64xbf16, #tpu.memory_space<vmem>>, vector<1x47x64xbf16>,
    %67 = vector.broadcast %62 : vector<384x1xbf16> to vector<384x64xbf16>
    %68 = arith.mulf %61, %67 : vector<384x64xbf16>
    %c0_61 = arith.constant 0 : index
    %c25_62 = arith.constant 25 : index
    %c0_63 = arith.constant 0 : index
    %69 = vector.load %arg7[%c0_61, %c25_62, %c0_63] : memref<1x456x64xbf16, #tpu.memory_space<vmem>>, vector<1x384x64xbf16>
    %70 = vector.shape_cast %69 : vector<1x384x64xbf16> to vector<384x64xbf16>
    %71 = vector.shape_cast %68 : vector<384x64xbf16> to vector<1x384x64xbf16>
    tpu.vector_store %arg7[%c0_61, %c25_62, %c0_63], %71 {strides = array<i32>} : memref<1x456x64xbf16, #tpu.memory_space<vmem>>, vector<1x384x64xbf16>,
    return
  }
  func.func @transform_0(%arg0: i32, %arg1: i32) -> (i32, i32, i32) {
    %c0_i32 = arith.constant 0 : i32
    %c0_i32_0 = arith.constant 0 : i32
    %c0_i32_1 = arith.constant 0 : i32
    return %arg1, %c0_i32, %c0_i32_0 : i32, i32, i32
  }
  func.func @transform_1(%arg0: i32, %arg1: i32) -> (i32, i32, i32) {
    %c0_i32 = arith.constant 0 : i32
    %c0_i32_0 = arith.constant 0 : i32
    %c0_i32_1 = arith.constant 0 : i32
    return %c0_i32, %c0_i32_0, %arg0 : i32, i32, i32
  }
  func.func @transform_2(%arg0: i32, %arg1: i32) -> (i32, i32) {
    %c0_i32 = arith.constant 0 : i32
    %c0_i32_0 = arith.constant 0 : i32
    return %c0_i32, %arg0 : i32, i32
  }
  func.func @transform_3(%arg0: i32, %arg1: i32) -> (i32, i32) {
    %c0_i32 = arith.constant 0 : i32
    %c0_i32_0 = arith.constant 0 : i32
    return %c0_i32, %arg0 : i32, i32
  }
  func.func @transform_4(%arg0: i32, %arg1: i32) -> (i32, i32) {
    %c0_i32 = arith.constant 0 : i32
    %c0_i32_0 = arith.constant 0 : i32
    %c0_i32_1 = arith.constant 0 : i32
    return %c0_i32, %c0_i32_0 : i32, i32
  }
  func.func @transform_5(%arg0: i32, %arg1: i32) -> (i32, i32, i32) {
    %c0_i32 = arith.constant 0 : i32
    %c0_i32_0 = arith.constant 0 : i32
    return %arg1, %c0_i32, %arg0 : i32, i32, i32
  }
}

</mosaic_0001>

<bundles_post_ra>
// kernel: tpu_custom_call.1
= control target key start
LH: loop header
LB: loop body
LE: loop exit
PB: predicated region body
PF: predicated region fallthrough
CT: control target
= control target key end

     0   :  { %s6572_s18 = smov 0   ;;  %s6574_s19 = smov 0   ;;  %s8478_s0 = inlined_call_operand.vmem [shape: bf16[2,456,3], index: 0, kind: input, shape index: {}]   ;;  %s8479_s1 = inlined_call_operand.vmem [shape: bf16[9,3,64], index: 1, kind: input, shape index: {}]   ;;  %s8480_s2 = inlined_call_operand.vmem [shape: f32[1,64], index: 2, kind: input, shape index: {}]   ;;  %s8481_s3 = inlined_call_operand.vmem [shape: f32[1,64], index: 3, kind: input, shape index: {}]   ;;  %s8482_s4 = inlined_call_operand.vmem [shape: bf16[384,1], index: 4, kind: input, shape index: {}]   ;;  %s8483_s5 = inlined_call_operand.vmem [shape: bf16[2,456,64], index: 5, kind: output, shape index: {}]  }
   0x1   :  { %s6576_s20 = smov 0  }
   0x2 LB: > { %s24_s21 = sadd.s32 1, %s6533_s19  ;;  %p5614_p0 = scmp.ge.s32.totalorder %s6537_s20, 1  ;;  %s6537_s20 = sphi %s6576_s20, %s15_s20   ;;  %s6533_s19 = sphi %s6574_s19, %s8566_s19   ;;  %s6529_s18 = sphi %s6572_s18, %s8565_s18  }
   0x3   : > { %p25_p1 = scmp.ge.s32.totalorder %s24_s21, 2  ;;  %p226_p2 = scmp.lt.s32.totalorder %s6537_s20, 3 }
   0x5   : > { %s8568_s21 = smov (%p25_p1, %s24_s21), 0  ;;  %p227_p3 = pnand %p5614_p0, %p226_p2 }
   0x7   : > { %230 = sbr.rel (%p227_p3) target bundleno = 1044 (0x414), region = 40 }
   0xc   : > { %v5617_v0 = vld [vmem:[%s8479_s1 + $0x2] sm:$0x3]  ;;  %vm736_vm0 = vcmask 1040384   ;;  %vm737_vm1 = vcmask 1041408   ;;  %p267_p4 = scmp.lt.s32.totalorder %s6529_s18, 1  ;;  %v6539_v1 = vmov 65535  }
   0xd   : > { %v738_v2 = vsel %vm736_vm0, 4294967295, %v6539_v1  ;;  %v5758_v3 = vld [vmem:[%s8479_s1 + $0x4] sm:$0x3]  ;;  %v5783_v5 = vld [vmem:[%s8479_s1 + $0x6] sm:$0x3]  ;;  %vm663_vm3 = vcmask 23552  }
   0xe   : > { %v6596_v4 = vsel %vm737_vm1, %v738_v2, 0  ;;  %s8570_s18 = smov (!%p267_p4, %s6529_s18), 1  ;;  %v339_v6 = vld [vmem:[%s8479_s1] sm:$0x3]  ;;  %v5904_v10 = vld [vmem:[%s8479_s1 + $0x8] sm:$0x3] }
   0xf   : > { %v741_v7 = vand.u32 %v5617_v0, %v6596_v4  ;;  %v1181_v8 = vand.u32 %v5758_v3, %v6596_v4  ;;  %v1603_v9 = vand.u32 %v5783_v5, %v6596_v4  ;;  %s6446_s7 = smul.u32 228, %s8570_s18  ;;  %v921_v11 = vand.u32 %v6596_v4, %v339_v6 }
  0x10   : > { %v2225_v12 = vand.u32 %v5904_v10, %v6596_v4  ;;  %vm466_vm2 = vsmask.f32 7424  ;;  %vm1058_vm4 = vcmask 1046528   ;;  %vm4310_vm5 = vcmask 519168  }
  0x11   : > { %6443 = vmatpush.bf16.msra.mxu1 %v741_v7  ;;  %6444 = vmatpush.bf16.msra.mxu2 %v741_v7  ;;  %s6620_s10 = scalar_lea.vmem %s8478_s0, %s6446_s7  ;;  %s7256_s27 = scalar_lea.vmem %s8483_s5, %s6446_s7  ;;  %vm4314_vm6 = vcmask 516096   ;;  %vm4315_vm7 = vsmask.f32 256  ;;  %vm4321_vm8 = vsmask.f32 7938 }
  0x12   : > { %6445 = vmatpush.bf16.msra.mxu3 %v741_v7  ;;  %750 = vmatpush.bf16.msra.mxu0 %v741_v7  ;;  %v6623_v13 = vld [vmem:[%s6620_s10 + $0x30] sm:$0xff]  ;;  %v6626_v14 = vld [vmem:[%s6620_s10 + $0x38] sm:$0xff]  ;;  %v6629_v15 = vld [vmem:[%s6620_s10 + $0x60] sm:$0xff]  ;;  %vm4955_vm11 = vsmask.f32 4368 }
  0x13   : > { %v6632_v16 = vld [vmem:[%s6620_s10 + $0x68] sm:$0xff]  ;;  %v6328_v17 = vld [vmem:[%s6620_s10 + $0x90] sm:$0xff]  ;;  %v6329_v18 = vld [vmem:[%s6620_s10 + $0x98] sm:$0xff]  ;;  %v515_v19 = vshll.u32 %v6623_v13, 16  ;;  %v519_v20 = vshrl.u32 %v6623_v13, 16  ;;  %v523_v21 = vshll.u32 %v6626_v14, 16 }
  0x14   : > { %v563_v22 = vshll.u32 %v6629_v15, 16  ;;  %v6641_v23 = vld [vmem:[%s6620_s10] sm:$0xff]   ;;  %v6644_v24 = vld [vmem:[%s6620_s10 + $0x8] sm:$0xff]  ;;  %v567_v25 = vshrl.u32 %v6629_v15, 16  ;;  %v571_v26 = vshll.u32 %v6632_v16, 16  ;;  %v611_v27 = vshll.u32 %v6328_v17, 16  ;;  %vm7472_vm9 = vmand %vm4314_vm6, %vm4315_vm7 }
  0x15   : > { %1190 = vmatpush.bf16.msrb.mxu2 %v1181_v8  ;;  %930 = vmatpush.bf16.msrb.mxu1 %v921_v11  ;;  %v615_v28 = vshrl.u32 %v6328_v17, 16  ;;  %v6648_v29 = vrot.slane %v515_v19, 1  ;;  %v525_v30 = vrot.slane %v523_v21, 1  ;;  %v619_v32 = vshll.u32 %v6329_v18, 16  ;;  %v6667_v48 = vld [vmem:[%s6620_s10 + $0x40] sm:$0xff]  ;;  %v6670_v49 = vld [vmem:[%s6620_s10 + $0x70] sm:$0xff]  ;;  %vm7479_vm10 = vmand %vm4310_vm5, %vm4321_vm8 }
  0x16   : > { %1612 = vmatpush.bf16.msrb.mxu3 %v1603_v9  ;;  %2234 = vmatpush.bf16.msrb.mxu0 %v2225_v12  ;;  %v6650_v31 = vrot.slane %v563_v22, 1  ;;  %v573_v33 = vrot.slane %v571_v26, 1  ;;  %v6652_v34 = vrot.slane %v611_v27, 1  ;;  %v468_v35 = vshrl.u32 %v6641_v23, 16  ;;  %v6330_v51 = vld [vmem:[%s6620_s10 + $0xa0] sm:$0xff]  ;;  %v6676_v52 = vld [vmem:[%s6620_s10 + $0x10] sm:$0xff]  ;;  %vm7610_vm12 = vmor %vm4315_vm7, %vm4955_vm11 }
  0x17   : > { %v470_v36 = vshll.u32 %v6641_v23, 16  ;;  %v521_v37 = vor.u32 %v519_v20, %v6648_v29  ;;  %v621_v39 = vrot.slane %v619_v32, 1  ;;  %v475_v40 = vshll.u32 %v6644_v24, 16  ;;  %v6692_v10 = vld [vmem:[%s6620_s10 + $0x48] sm:$0xff]  ;;  %v6695_v11 = vld [vmem:[%s6620_s10 + $0x78] sm:$0xff] }
  0x18   : > { %v569_v38 = vor.u32 %v567_v25, %v6650_v31  ;;  %v617_v41 = vor.u32 %v615_v28, %v6652_v34  ;;  %v527_v53 = vshrl.u32 %v6626_v14, 16  ;;  %v531_v54 = vshll.u32 %v6667_v48, 16  ;;  %v6331_v12 = vld [vmem:[%s6620_s10 + $0xa8] sm:$0xff]  ;;  %v6700_v17 = vld [vmem:[%s6620_s10 + $0x18] sm:$0xff] }
  0x19   : > { %v472_v42 = vrot.slane %v470_v36, 1  ;;  %v526_v43 = vsel %vm466_vm2, %v521_v37, %v525_v30  ;;  %v477_v45 = vrot.slane %v475_v40, 1  ;;  %v575_v55 = vshrl.u32 %v6632_v16, 16 }
  0x1a   : > { %v574_v44 = vsel %vm466_vm2, %v569_v38, %v573_v33  ;;  %5716 = vmatmul.msk.bf16.vlgmr.msra.gmra.mxu1 %vm663_vm3, %v526_v43  ;;  %v622_v46 = vsel %vm466_vm2, %v617_v41, %v621_v39  ;;  %v579_v56 = vshll.u32 %v6670_v49, 16  ;;  %v623_v57 = vshrl.u32 %v6329_v18, 16  ;;  %v6716_v43 = vld [vmem:[%s6620_s10 + $0x50] sm:$0xff] }
  0x1b   : > { %5722 = vmatmul.msk.bf16.vlgmr.msra.gmra.mxu2 %vm663_vm3, %v574_v44  ;;  %v473_v47 = vor.u32 %v472_v42, %v468_v35  ;;  %5728 = vmatmul.msk.bf16.vlgmr.msra.gmra.mxu3 %vm663_vm3, %v622_v46  ;;  %v627_v58 = vshll.u32 %v6330_v51, 16  ;;  %v479_v59 = vshrl.u32 %v6644_v24, 16  ;;  %v483_v60 = vshll.u32 %v6676_v52, 16  ;;  %v6719_v44 = vld [vmem:[%s6620_s10 + $0x80] sm:$0xff] }
  0x1c   : > { %v529_v61 = vor.u32 %v527_v53, %v525_v30  ;;  %v533_v62 = vrot.slane %v531_v54, 1  ;;  %v577_v63 = vor.u32 %v575_v55, %v573_v33  ;;  %v581_v0 = vrot.slane %v579_v56, 1  ;;  %v6724_v46 = vld [vmem:[%s6620_s10 + $0x20] sm:$0xff] }
  0x1d   : > { %v478_v50 = vsel %vm466_vm2, %v473_v47, %v477_v45  ;;  %v625_v1 = vor.u32 %v623_v57, %v621_v39  ;;  %v629_v2 = vrot.slane %v627_v58, 1  ;;  %v481_v3 = vor.u32 %v479_v59, %v477_v45  ;;  %v6332_v45 = vld [vmem:[%s6620_s10 + $0xb0] sm:$0xff] }
  0x1e   : > { %5710 = vmatmul.msk.bf16.vlgmr.msra.gmra.mxu0 %vm663_vm3, %v478_v50  ;;  %v485_v5 = vrot.slane %v483_v60, 1  ;;  %v534_v6 = vsel %vm466_vm2, %v529_v61, %v533_v62  ;;  %v582_v7 = vsel %vm466_vm2, %v577_v63, %v581_v0  ;;  %v535_v18 = vshrl.u32 %v6667_v48, 16 }
  0x1f   : > { %v630_v8 = vsel %vm466_vm2, %v625_v1, %v629_v2  ;;  %v539_v19 = vshll.u32 %v6692_v10, 16  ;;  %v583_v20 = vshrl.u32 %v6670_v49, 16  ;;  %v587_v21 = vshll.u32 %v6695_v11, 16 }
  0x20   : > { %v486_v9 = vsel %vm466_vm2, %v481_v3, %v485_v5  ;;  %v631_v22 = vshrl.u32 %v6330_v51, 16  ;;  %v635_v25 = vshll.u32 %v6331_v12, 16  ;;  %v487_v26 = vshrl.u32 %v6676_v52, 16 }
  0x21   : > { %v491_v27 = vshll.u32 %v6700_v17, 16  ;;  %v537_v28 = vor.u32 %v535_v18, %v533_v62  ;;  %v541_v30 = vrot.slane %v539_v19, 1  ;;  %v585_v32 = vor.u32 %v583_v20, %v581_v0 }
  0x22   : > { %v589_v33 = vrot.slane %v587_v21, 1  ;;  %v633_v35 = vor.u32 %v631_v22, %v629_v2  ;;  %v637_v36 = vrot.slane %v635_v25, 1  ;;  %v489_v37 = vor.u32 %v487_v26, %v485_v5 }
  0x23   : > { %v493_v38 = vrot.slane %v491_v27, 1  ;;  %v542_v39 = vsel %vm466_vm2, %v537_v28, %v541_v30  ;;  %v543_v47 = vshrl.u32 %v6692_v10, 16  ;;  %v547_v50 = vshll.u32 %v6716_v43, 16 }
  0x24   : > { %v590_v40 = vsel %vm466_vm2, %v585_v32, %v589_v33  ;;  %v638_v41 = vsel %vm466_vm2, %v633_v35, %v637_v36  ;;  %v591_v51 = vshrl.u32 %v6695_v11, 16  ;;  %v595_v53 = vshll.u32 %v6719_v44, 16 }
  0x25   : > { %v494_v42 = vsel %vm466_vm2, %v489_v37, %v493_v38  ;;  %v639_v54 = vshrl.u32 %v6331_v12, 16  ;;  %v643_v55 = vshll.u32 %v6332_v45, 16  ;;  %v495_v56 = vshrl.u32 %v6700_v17, 16  ;;  %v6748_v12 = vld [vmem:[%s6620_s10 + $0x28] sm:$0xff]  ;;  %v340_v37 = vld [vmem:[%s6620_s10 + $0xc0] sm:$0x1] }
  0x26   : > { %v499_v57 = vshll.u32 %v6724_v46, 16  ;;  %v545_v58 = vor.u32 %v543_v47, %v541_v30  ;;  %v549_v59 = vrot.slane %v547_v50, 1  ;;  %v593_v60 = vor.u32 %v591_v51, %v589_v33  ;;  %v6046_v50 = vld [vmem:[%s8479_s1 + $0xc] sm:$0x3] }
  0x27   : > { %v597_v61 = vrot.slane %v595_v53, 1  ;;  %v641_v62 = vor.u32 %v639_v54, %v637_v36  ;;  %v645_v63 = vrot.slane %v643_v55, 1  ;;  %v497_v0 = vor.u32 %v495_v56, %v493_v38  ;;  %v6167_v54 = vld [vmem:[%s8479_s1 + $0xe] sm:$0x3]  ;;  %v6021_v55 = vld [vmem:[%s8479_s1 + $0xa] sm:$0x3] }
  0x28   : > { %v501_v1 = vrot.slane %v499_v57, 1  ;;  %v550_v2 = vsel %vm466_vm2, %v545_v58, %v549_v59  ;;  %v551_v18 = vshrl.u32 %v6716_v43, 16  ;;  %v599_v20 = vshrl.u32 %v6719_v44, 16  ;;  %v6284_v56 = vld [vmem:[%s8479_s1 + $0x10] sm:$0x3] }
  0x29   : > { %v598_v3 = vsel %vm466_vm2, %v593_v60, %v597_v61  ;;  %v646_v5 = vsel %vm466_vm2, %v641_v62, %v645_v63  ;;  %v647_v22 = vshrl.u32 %v6332_v45, 16  ;;  %v503_v26 = vshrl.u32 %v6724_v46, 16 }
  0x2a   : > { %5717 = vmatmul.msk.bf16.gmra.mxu1 %vm663_vm3, %v534_v6  ;;  %v502_v6 = vsel %vm466_vm2, %v497_v0, %v501_v1  ;;  %v507_v27 = vshll.u32 %v6748_v12, 16  ;;  %v553_v28 = vor.u32 %v551_v18, %v549_v59  ;;  %v601_v32 = vor.u32 %v599_v20, %v597_v61 }
  0x2b   : > { %5723 = vmatmul.msk.bf16.gmra.mxu2 %vm663_vm3, %v582_v7  ;;  %5729 = vmatmul.msk.bf16.gmra.mxu3 %vm663_vm3, %v630_v8  ;;  %v6740_v7 = vld [vmem:[%s6620_s10 + $0x58] sm:$0xff]  ;;  %v6743_v8 = vld [vmem:[%s6620_s10 + $0x88] sm:$0xff]  ;;  %v649_v35 = vor.u32 %v647_v22, %v645_v63  ;;  %v505_v38 = vor.u32 %v503_v26, %v501_v1  ;;  %v440_v45 = vunpack.c.l.b16 %v340_v37  ;;  %v2954_v53 = vand.u32 %v6046_v50, %v6596_v4  ;;  %v6436_v22 = vld [vmem:[%s6620_s10] sm:$0xf0] }
  0x2c   : > { %v555_v19 = vshll.u32 %v6740_v7, 16  ;;  %v603_v21 = vshll.u32 %v6743_v8, 16  ;;  %v3576_v57 = vand.u32 %v6167_v54, %v6596_v4  ;;  %v2532_v58 = vand.u32 %v6021_v55, %v6596_v4  ;;  %v6334_v37 = vld [vmem:[%s6620_s10 + $0xc] sm:$0xff]  ;;  %v6360_v54 = vld [vmem:[%s6620_s10 + $0x24] sm:$0xff] }
  0x2d   : > { %v6767_v51 = vpack.c.b16 %v440_v45, %v440_v45  ;;  %2963 = vmatpush.bf16.msra.mxu2 %v2954_v53  ;;  %v3883_v59 = vand.u32 %v6284_v56, %v6596_v4  ;;  %v559_v60 = vshrl.u32 %v6740_v7, 16  ;;  %v607_v61 = vshrl.u32 %v6743_v8, 16 }
  0x2e   : > { %5711 = vmatmul.msk.bf16.gmra.mxu0 %vm663_vm3, %v486_v9  ;;  %v6333_v9 = vld [vmem:[%s6620_s10 + $0xb8] sm:$0xff]  ;;  %v557_v30 = vrot.slane %v555_v19, 1  ;;  %v605_v33 = vrot.slane %v603_v21, 1  ;;  %3585 = vmatpush.bf16.msra.mxu3 %v3576_v57  ;;  %v511_v0 = vshrl.u32 %v6748_v12, 16  ;;  %v1980_v56 = vshll.u32 %v6360_v54, 16 }
  0x2f   : > { %v651_v25 = vshll.u32 %v6333_v9, 16  ;;  %v655_v62 = vshrl.u32 %v6333_v9, 16  ;;  %v659_v63 = vshll.u32 %v6767_v51, 16  ;;  %2541 = vmatpush.bf16.msra.mxu1 %v2532_v58  ;;  %3892 = vmatpush.bf16.msra.mxu0 %v3883_v59  ;;  %v1064_v57 = vrot.slane %v6700_v17, 1 }
  0x30   : > { %v561_v1 = vor.u32 %v559_v60, %v557_v30  ;;  %v1982_v59 = vrot.slane %v1980_v56, 1 }
  0x31   : > { %v653_v36 = vrot.slane %v651_v25, 1  ;;  %v6437_v25 = vld [vmem:[%s6620_s10] sm:$0xe] }
  0x32   : > { %v566_v9 = vsel %vm466_vm2, %v561_v1, %v6650_v31  ;;  %v6358_v31 = vld [vmem:[%s6620_s10 + $0x14] sm:$0xff] }
  0x33   : > { %v657_v4 = vor.u32 %v655_v62, %v653_v36 }
  0x3a   : > { %5718 = vmatmul.msk.bf16.gmra.mxu1 %vm663_vm3, %v542_v39  ;;  %v509_v39 = vrot.slane %v507_v27, 1  ;;  %v6438_v27 = vor.u32 %v6437_v25, %v6436_v22 }
  0x3b   : > { %5724 = vmatmul.msk.bf16.gmra.mxu2 %vm663_vm3, %v590_v40  ;;  %5730 = vmatmul.msk.bf16.gmra.mxu3 %vm663_vm3, %v638_v41  ;;  %v558_v40 = vsel %vm466_vm2, %v553_v28, %v557_v30  ;;  %v606_v41 = vsel %vm466_vm2, %v601_v32, %v605_v33  ;;  %v1964_v30 = vshll.u32 %v6358_v31, 16 }
  0x3c   : > { %v510_v47 = vsel %vm466_vm2, %v505_v38, %v509_v39  ;;  %v513_v18 = vor.u32 %v511_v0, %v509_v39  ;;  %v1059_v32 = vrot.slane %v6438_v27, 1  ;;  %v6359_v39 = vld [vmem:[%s6620_s10 + $0x1c] sm:$0xff] }
  0x3d   : > { %v1976_v55 = vshrl.u32 %v6359_v39, 16 }
  0x3e   : > { %5712 = vmatmul.msk.bf16.gmra.mxu0 %vm663_vm3, %v494_v42  ;;  %v654_v42 = vsel %vm466_vm2, %v649_v35, %v653_v36  ;;  %v518_v21 = vsel %vm466_vm2, %v513_v18, %v6648_v29  ;;  %v1966_v29 = vrot.slane %v1964_v30, 1  ;;  %v1066_v18 = vrot.slane %v6724_v46, 1  ;;  %v6362_v30 = vld [vmem:[%s6620_s10 + $0x34] sm:$0xff] }
  0x3f   : > { %v2000_v56 = vshrl.u32 %v6362_v30, 16 }
  0x40   : > { %v1067_v25 = vsel %vm1058_vm4, %v1064_v57, %v1066_v18 }
  0x4a   : > { %5719 = vmatmul.msk.bf16.gmra.mxu1 %vm663_vm3, %v550_v2  ;;  %v609_v2 = vor.u32 %v607_v61, %v605_v33  ;;  %v1060_v33 = vrot.slane %v6644_v24, 1  ;;  %v6336_v61 = vld [vmem:[%s6620_s10 + $0x1c] sm:$0xff] }
  0x4b   : > { %5725 = vmatmul.msk.bf16.gmra.mxu2 %vm663_vm3, %v598_v3  ;;  %5731 = vmatmul.msk.bf16.gmra.mxu3 %vm663_vm3, %v646_v5  ;;  %v1782_v3 = vld [vmem:[%s6620_s10 + $0xc] sm:$0xff]  }
  0x4c   : > { %v6789_v5 = vld [vmem:[%s6620_s10 + $0xc] sm:$0xf0]  ;;  %v614_v19 = vsel %vm466_vm2, %v609_v2, %v6652_v34  ;;  %v1959_v26 = vshll.u32 %v1782_v3, 16  ;;  %v1957_v34 = vshrl.u32 %v1782_v3, 16  ;;  %v1061_v36 = vsel %vm1058_vm4, %v1059_v32, %v1060_v33 }
  0x4d   : > { %v6361_v2 = vld [vmem:[%s6620_s10 + $0x2c] sm:$0xff] }
  0x4e   : > { %5713 = vmatmul.msk.bf16.gmra.mxu0 %vm663_vm3, %v502_v6  ;;  %v661_v6 = vrot.slane %v659_v63, 1  ;;  %v1961_v28 = vrot.slane %v1959_v26, 1 }
  0x50   : > { %v662_v20 = vsel %vm466_vm2, %v657_v4, %v661_v6  ;;  %v1962_v35 = vor.u32 %v1961_v28, %v1957_v34  ;;  %v1984_v6 = vshrl.u32 %v6360_v54, 16 }
  0x52   : > { %v1967_v38 = vsel %vm466_vm2, %v1962_v35, %v1966_v29  ;;  %v1992_v35 = vshrl.u32 %v6361_v2, 16 }
  0x5a   : > { %5720 = vmatmul.msk.bf16.gmra.mxu1 %vm663_vm3, %v558_v40  ;;  %v1968_v40 = vshrl.u32 %v6358_v31, 16  ;;  %v6337_v31 = vld [vmem:[%s6620_s10 + $0x24] sm:$0xff] }
  0x5b   : > { %5726 = vmatmul.msk.bf16.gmra.mxu2 %vm663_vm3, %v606_v41  ;;  %5732 = vmatmul.msk.bf16.gmra.mxu3 %vm663_vm3, %v654_v42  ;;  %v1972_v41 = vshll.u32 %v6359_v39, 16  ;;  %v1062_v42 = vrot.slane %v6676_v52, 1 }
  0x5c   : > { %v1970_v45 = vor.u32 %v1968_v40, %v1966_v29  ;;  %v1068_v29 = vrot.slane %v6748_v12, 1 }
  0x5d   : > { %v1063_v50 = vsel %vm1058_vm4, %v1060_v33, %v1062_v42 }
  0x5e   : > { %5714 = vmatmul.msk.bf16.gmra.mxu0 %vm663_vm3, %v510_v47  ;;  %v1974_v47 = vrot.slane %v1972_v41, 1  ;;  %v1069_v41 = vsel %vm1058_vm4, %v1066_v18, %v1068_v29 }
  0x60   : > { %v1975_v53 = vsel %vm466_vm2, %v1970_v45, %v1974_v47  ;;  %v1978_v58 = vor.u32 %v1976_v55, %v1974_v47 }
  0x62   : > { %v1983_v63 = vsel %vm466_vm2, %v1978_v58, %v1982_v59 }
  0x6a   : > { %5721 = vmatmul.msk.bf16.gmra.mxu1 %vm663_vm3, %v566_v9 }
  0x6b   : > { %5727 = vmatmul.msk.bf16.gmra.mxu2 %vm663_vm3, %v614_v19  ;;  %5733 = vmatmul.msk.bf16.gmra.mxu3 %vm663_vm3, %v662_v20  ;;  %v1986_v20 = vor.u32 %v1984_v6, %v1982_v59  ;;  %v6339_v6 = vld [vmem:[%s6620_s10 + $0x34] sm:$0xff] }
  0x6e   : > { %5715 = vmatmul.msk.bf16.gmra.mxu0 %vm663_vm3, %v518_v21 }
  0x7a   : > { %5734 = vmatmul.msk.bf16.vlgmr.msrb.gmra.mxu1 %vm663_vm3, %v6641_v23  ;;  %v6335_v23 = vld [vmem:[%s6620_s10 + $0x14] sm:$0xff] }
  0x7b   : > { %5759 = vmatmul.msk.bf16.vlgmr.msrb.gmra.mxu2 %vm663_vm3, %v1061_v36  ;;  %5880 = vmatmul.msk.bf16.vlgmr.msrb.gmra.mxu3 %vm663_vm3, %v6334_v37 }
  0x7e   : > { %5997 = vmatmul.msk.bf16.vlgmr.msrb.gmra.mxu0 %vm663_vm3, %v1967_v38 }
  0x8a   : > { %5735 = vmatmul.msk.bf16.gmra.mxu1 %vm663_vm3, %v6644_v24  ;;  %v1065_v24 = vsel %vm1058_vm4, %v1062_v42, %v1064_v57  ;;  %v6338_v42 = vld [vmem:[%s6620_s10 + $0x2c] sm:$0xff]  ;;  %v1070_v57 = vrot.slane %v6623_v13, 1 }
  0x8b   : > { %5760 = vmatmul.msk.bf16.gmra.mxu2 %vm663_vm3, %v1063_v50  ;;  %5881 = vmatmul.msk.bf16.gmra.mxu3 %vm663_vm3, %v6335_v23 }
  0x8e   : > { %5998 = vmatmul.msk.bf16.gmra.mxu0 %vm663_vm3, %v1975_v53  ;;  %v6363_v53 = vld [vmem:[%s6620_s10 + $0x3c] sm:$0xff] }
  0x97   : > { %v6826_v60 = vpop.f32.mrf.mxu1 }
  0x9a   : > { %5736 = vmatmul.msk.bf16.gmra.mxu1 %vm663_vm3, %v6676_v52  ;;  %v1988_v52 = vshll.u32 %v6361_v2, 16  ;;  %v1071_v2 = vsel %vm1058_vm4, %v1068_v29, %v1070_v57 }
  0x9b   : > { %v6830_v62 = vpop.f32.mrf.mxu0  ;;  %5761 = vmatmul.msk.bf16.gmra.mxu2 %vm663_vm3, %v1065_v24  ;;  %5882 = vmatmul.msk.bf16.gmra.mxu3 %vm663_vm3, %v6336_v61 }
  0x9c   : > { %v1990_v21 = vrot.slane %v1988_v52, 1 }
  0x9e   : > { %5999 = vmatmul.msk.bf16.gmra.mxu0 %vm663_vm3, %v1983_v63  ;;  %v6838_v0 = vpop.f32.mrf.mxu2  ;;  %v6840_v1 = vpop.f32.mrf.mxu3  ;;  %v1991_v27 = vsel %vm466_vm2, %v1986_v20, %v1990_v21  ;;  %v1994_v38 = vor.u32 %v1992_v35, %v1990_v21  ;;  %v1072_v35 = vrot.slane %v6626_v14, 1 }
  0x9f   : > { %8488 = vst [vmem:[#allocation2_spill] sm:$0xff] %v6840_v1  ;;  %v6843_v3 = vpop.f32.mrf.mxu1 }
  0xa3   : > { %v6845_v4 = vpop.f32.mrf.mxu0 }
  0xa6   : > { %v6848_v9 = vpop.f32.mrf.mxu2  ;;  %v6850_v19 = vpop.f32.mrf.mxu3 }
  0xa7   : > { %8489 = vst [vmem:[#allocation3_spill] sm:$0xff] %v6850_v19  ;;  %v6852_v22 = vpop.f32.mrf.mxu1 }
  0xaa   : > { %5737 = vmatmul.msk.bf16.gmra.mxu1 %vm663_vm3, %v6700_v17  ;;  %v1996_v17 = vshll.u32 %v6362_v30, 16  ;;  %v2008_v30 = vshrl.u32 %v6363_v53, 16 }
  0xab   : > { %v6856_v26 = vpop.f32.mrf.mxu0  ;;  %5762 = vmatmul.msk.bf16.gmra.mxu2 %vm663_vm3, %v1067_v25  ;;  %5883 = vmatmul.msk.bf16.gmra.mxu3 %vm663_vm3, %v6337_v31  ;;  %v6364_v25 = vld [vmem:[%s6620_s10 + $0x44] sm:$0xff] }
  0xac   : > { %v1998_v39 = vrot.slane %v1996_v17, 1 }
  0xae   : > { %6000 = vmatmul.msk.bf16.gmra.mxu0 %vm663_vm3, %v1991_v27  ;;  %v6864_v34 = vpop.f32.mrf.mxu2  ;;  %v6866_v28 = vpop.f32.mrf.mxu3  ;;  %v1999_v47 = vsel %vm466_vm2, %v1994_v38, %v1998_v39  ;;  %v2002_v24 = vor.u32 %v2000_v56, %v1998_v39 }
  0xaf   : > { %8490 = vst [vmem:[#allocation4_spill] sm:$0xff] %v6866_v28  ;;  %v6869_v32 = vpop.f32.mrf.mxu1 }
  0xb3   : > { %v6871_v33 = vpop.f32.mrf.mxu0 }
  0xb6   : > { %v6874_v36 = vpop.f32.mrf.mxu2  ;;  %v6876_v37 = vpop.f32.mrf.mxu3 }
  0xb7   : > { %8491 = vst [vmem:[#allocation5_spill] sm:$0xff] %v6876_v37  ;;  %v6878_v40 = vpop.f32.mrf.mxu1 }
  0xba   : > { %5738 = vmatmul.msk.bf16.gmra.mxu1 %vm663_vm3, %v6724_v46  ;;  %v2004_v46 = vshll.u32 %v6363_v53, 16 }
  0xbb   : > { %v6882_v45 = vpop.f32.mrf.mxu0  ;;  %5763 = vmatmul.msk.bf16.gmra.mxu2 %vm663_vm3, %v1069_v41  ;;  %5884 = vmatmul.msk.bf16.gmra.mxu3 %vm663_vm3, %v6338_v42  ;;  %v1073_v42 = vsel %vm1058_vm4, %v1070_v57, %v1072_v35  ;;  %v6365_v57 = vld [vmem:[%s6620_s10 + $0x4c] sm:$0xff] }
  0xbc   : > { %v2006_v61 = vrot.slane %v2004_v46, 1 }
  0xbe   : > { %6001 = vmatmul.msk.bf16.gmra.mxu0 %vm663_vm3, %v1999_v47  ;;  %v6890_v50 = vpop.f32.mrf.mxu2  ;;  %v6892_v23 = vpop.f32.mrf.mxu3  ;;  %v2007_v18 = vsel %vm466_vm2, %v2002_v24, %v2006_v61  ;;  %v2010_v38 = vor.u32 %v2008_v30, %v2006_v61  ;;  %v6340_v47 = vld [vmem:[%s6620_s10 + $0x3c] sm:$0xff] }
  0xbf   : > { %8492 = vst [vmem:[#allocation6_spill] sm:$0xff] %v6892_v23  ;;  %v6895_v54 = vpop.f32.mrf.mxu1 }
  0xc3   : > { %v6897_v55 = vpop.f32.mrf.mxu0 }
  0xc6   : > { %v6900_v58 = vpop.f32.mrf.mxu2  ;;  %v6902_v59 = vpop.f32.mrf.mxu3 }
  0xc7   : > { %8493 = vst [vmem:[#allocation7_spill] sm:$0xff] %v6902_v59  ;;  %v6904_v63 = vpop.f32.mrf.mxu1 }
  0xca   : > { %5739 = vmatmul.msk.bf16.gmra.mxu1 %vm663_vm3, %v6748_v12  ;;  %v2012_v12 = vshll.u32 %v6364_v25, 16 }
  0xcb   : > { %v6908_v52 = vpop.f32.mrf.mxu0  ;;  %5764 = vmatmul.msk.bf16.gmra.mxu2 %vm663_vm3, %v1071_v2  ;;  %5885 = vmatmul.msk.bf16.gmra.mxu3 %vm663_vm3, %v6339_v6  ;;  %v2016_v6 = vshrl.u32 %v6364_v25, 16 }
  0xcc   : > { %v2014_v39 = vrot.slane %v2012_v12, 1 }
  0xce   : > { %6002 = vmatmul.msk.bf16.gmra.mxu0 %vm663_vm3, %v2007_v18  ;;  %v6916_v20 = vpop.f32.mrf.mxu2  ;;  %v6918_v21 = vpop.f32.mrf.mxu3  ;;  %v2015_v53 = vsel %vm466_vm2, %v2010_v38, %v2014_v39  ;;  %v1074_v18 = vrot.slane %v6667_v48, 1  ;;  %v2018_v38 = vor.u32 %v2016_v6, %v2014_v39 }
  0xcf   : > { %8494 = vst [vmem:[#allocation8_spill] sm:$0xff] %v6918_v21  ;;  %v6921_v31 = vpop.f32.mrf.mxu1  ;;  %v2024_v21 = vshrl.u32 %v6365_v57, 16 }
  0xd3   : > { %v6923_v27 = vpop.f32.mrf.mxu0 }
  0xd6   : > { %v6926_v17 = vpop.f32.mrf.mxu2  ;;  %v6928_v29 = vpop.f32.mrf.mxu3 }
  0xd7   : > { %8495 = vst [vmem:[#allocation9_spill] sm:$0xff] %v6926_v17  ;;  %v6930_v41 = vpop.f32.mrf.mxu1  ;;  %v6343_v17 = vld [vmem:[%s6620_s10 + $0x54] sm:$0xff] }
  0xd8   : > { %8496 = vst [vmem:[#allocation10_spill] sm:$0xff] %v6928_v29 }
  0xda   : > { %5740 = vmatmul.msk.bf16.gmra.mxu1 %vm663_vm3, %v6623_v13  ;;  %v2020_v13 = vshll.u32 %v6365_v57, 16 }
  0xdb   : > { %v6934_v56 = vpop.f32.mrf.mxu0  ;;  %5765 = vmatmul.msk.bf16.gmra.mxu2 %vm663_vm3, %v1073_v42  ;;  %5886 = vmatmul.msk.bf16.gmra.mxu3 %vm663_vm3, %v6340_v47 }
  0xdc   : > { %v2022_v42 = vrot.slane %v2020_v13, 1 }
  0xde   : > { %6003 = vmatmul.msk.bf16.gmra.mxu0 %vm663_vm3, %v2015_v53  ;;  %v6942_v46 = vpop.f32.mrf.mxu2  ;;  %v6944_v24 = vpop.f32.mrf.mxu3  ;;  %v1075_v53 = vsel %vm1058_vm4, %v1072_v35, %v1074_v18  ;;  %v2023_v25 = vsel %vm466_vm2, %v2018_v38, %v2022_v42  ;;  %v6366_v35 = vld [vmem:[%s6620_s10 + $0x54] sm:$0xff] }
  0xdf   : > { %8497 = vst [vmem:[#allocation11_spill] sm:$0xff] %v6942_v46  ;;  %v6947_v61 = vpop.f32.mrf.mxu1 }
  0xe0   : > { %8498 = vst [vmem:[#allocation12_spill] sm:$0xff] %v6944_v24  ;;  %v6341_v24 = vld [vmem:[%s6620_s10 + $0x44] sm:$0xff] }
  0xe3   : > { %v6949_v2 = vpop.f32.mrf.mxu0 }
  0xe6   : > { %v6952_v30 = vpop.f32.mrf.mxu2  ;;  %v6954_v12 = vpop.f32.mrf.mxu3 }
  0xe7   : > { %8499 = vst [vmem:[#allocation13_spill] sm:$0xff] %v6952_v30  ;;  %v6956_v47 = vpop.f32.mrf.mxu1 }
  0xe8   : > { %8500 = vst [vmem:[#allocation14_spill] sm:$0xff] %v6954_v12 }
  0xea   : > { %5741 = vmatmul.msk.bf16.gmra.mxu1 %vm663_vm3, %v6626_v14  ;;  %v2028_v14 = vshll.u32 %v6366_v35, 16 }
  0xeb   : > { %v6960_v29 = vpop.f32.mrf.mxu0  ;;  %5766 = vmatmul.msk.bf16.gmra.mxu2 %vm663_vm3, %v1075_v53  ;;  %5887 = vmatmul.msk.bf16.gmra.mxu3 %vm663_vm3, %v6341_v24  ;;  %v1076_v53 = vrot.slane %v6692_v10, 1  ;;  %v2026_v24 = vor.u32 %v2024_v21, %v2022_v42 }
  0xed   : > { %v1077_v37 = vsel %vm1058_vm4, %v1074_v18, %v1076_v53 }
  0xee   : > { %6004 = vmatmul.msk.bf16.gmra.mxu0 %vm663_vm3, %v2023_v25  ;;  %v6968_v39 = vpop.f32.mrf.mxu2  ;;  %v6970_v6 = vpop.f32.mrf.mxu3  ;;  %v2030_v25 = vrot.slane %v2028_v14, 1 }
  0xef   : > { %8501 = vst [vmem:[#allocation15_spill] sm:$0xff] %v6968_v39  ;;  %v6973_v13 = vpop.f32.mrf.mxu1  ;;  %v2032_v39 = vshrl.u32 %v6366_v35, 16 }
  0xf0   : > { %8502 = vst [vmem:[#allocation16_spill] sm:$0xff] %v6970_v6  ;;  %v6342_v6 = vld [vmem:[%s6620_s10 + $0x4c] sm:$0xff]  ;;  %v2031_v57 = vsel %vm466_vm2, %v2026_v24, %v2030_v25 }
  0xf3   : > { %v6975_v12 = vpop.f32.mrf.mxu0 }
  0xf6   : > { %v6978_v59 = vpop.f32.mrf.mxu2  ;;  %v6980_v38 = vpop.f32.mrf.mxu3 }
  0xf7   : > { %8503 = vst [vmem:[#allocation17_spill] sm:$0xff] %v6978_v59  ;;  %v932_v23 = vpop.f32.mrf.mxu1 }
  0xf8   : > { %8504 = vst [vmem:[#allocation18_spill] sm:$0xff] %v6980_v38  ;;  %v933_v19 = vadd.f32 %v932_v23, %v6830_v62  ;;  %v6367_v38 = vld [vmem:[%s6620_s10 + $0x5c] sm:$0xff] }
  0xfa   : > { %5742 = vmatmul.msk.bf16.gmra.mxu1 %vm663_vm3, %v6667_v48  ;;  %v2036_v48 = vshll.u32 %v6367_v38, 16 }
  0xfb   : > { %v2236_v28 = vpop.f32.mrf.mxu0  ;;  %5767 = vmatmul.msk.bf16.gmra.mxu2 %vm663_vm3, %v1077_v37  ;;  %5888 = vmatmul.msk.bf16.gmra.mxu3 %vm663_vm3, %v6342_v6  ;;  %v1078_v37 = vrot.slane %v6716_v43, 1 }
  0xfc   : > { %v2038_v46 = vrot.slane %v2036_v48, 1 }
  0xfe   : > { %6005 = vmatmul.msk.bf16.gmra.mxu0 %vm663_vm3, %v2031_v57  ;;  %v1192_v21 = vpop.f32.mrf.mxu2  ;;  %v1614_v14 = vpop.f32.mrf.mxu3  ;;  %v2034_v57 = vor.u32 %v2032_v39, %v2030_v25  ;;  %v6368_v25 = vld [vmem:[%s6620_s10 + $0x64] sm:$0xff] }
  0xff   : > { %v1312_v42 = vadd.f32 %v1192_v21, %v933_v19  ;;  %v934_v18 = vpop.f32.mrf.mxu1  ;;  %v1079_v21 = vsel %vm1058_vm4, %v1076_v53, %v1078_v37 }
 0x100   : > { %v935_v6 = vadd.f32 %v934_v18, %v6845_v4 }
 0x101   : > { %v1734_v1 = vadd.f32 %v1614_v14, %v1312_v42 }
 0x103   : > { %v2238_v59 = vpop.f32.mrf.mxu0  ;;  %v6992_v30 = vadd.f32 %v2236_v28, %v1734_v1  ;;  %v2039_v1 = vsel %vm466_vm2, %v2034_v57, %v2038_v46 }
 0x106   : > { %v1194_v24 = vpop.f32.mrf.mxu2  ;;  %v1616_v23 = vpop.f32.mrf.mxu3 }
 0x107   : > { %v1313_v62 = vadd.f32 %v1194_v24, %v935_v6  ;;  %v937_v19 = vpop.f32.mrf.mxu1  ;;  %v2040_v6 = vshrl.u32 %v6367_v38, 16  ;;  %v2044_v24 = vshll.u32 %v6368_v25, 16 }
 0x108   : > { %v938_v28 = vadd.f32 %v937_v19, %v6856_v26 }
 0x109   : > { %v1735_v42 = vadd.f32 %v1616_v23, %v1313_v62  ;;  %v2042_v19 = vor.u32 %v2040_v6, %v2038_v46 }
 0x10a   : > { %5743 = vmatmul.msk.bf16.gmra.mxu1 %vm663_vm3, %v6692_v10 }
 0x10b   : > { %v2241_v14 = vpop.f32.mrf.mxu0  ;;  %5768 = vmatmul.msk.bf16.gmra.mxu2 %vm663_vm3, %v1079_v21  ;;  %v7002_v4 = vadd.f32 %v2238_v59, %v1735_v42  ;;  %5889 = vmatmul.msk.bf16.gmra.mxu3 %vm663_vm3, %v6343_v17  ;;  %v1080_v59 = vrot.slane %v6740_v7, 1  ;;  %v2046_v21 = vrot.slane %v2044_v24, 1  ;;  %v2048_v24 = vshrl.u32 %v6368_v25, 16 }
 0x10d   : > { %v2047_v38 = vsel %vm466_vm2, %v2042_v19, %v2046_v21 }
 0x10e   : > { %6006 = vmatmul.msk.bf16.gmra.mxu0 %vm663_vm3, %v2039_v1  ;;  %v1197_v39 = vpop.f32.mrf.mxu2  ;;  %v1619_v53 = vpop.f32.mrf.mxu3  ;;  %v1081_v1 = vsel %vm1058_vm4, %v1078_v37, %v1080_v59 }
 0x10f   : > { %v1314_v35 = vadd.f32 %v1197_v39, %v938_v28  ;;  %v939_v18 = vpop.f32.mrf.mxu1  ;;  %v6344_v28 = vld [vmem:[%s6620_s10 + $0x5c] sm:$0xff] }
 0x110   : > { %v940_v17 = vadd.f32 %v939_v18, %v6871_v33  ;;  %v6369_v18 = vld [vmem:[%s6620_s10 + $0x6c] sm:$0xff] }
 0x111   : > { %v1736_v48 = vadd.f32 %v1619_v53, %v1314_v35 }
 0x113   : > { %v2243_v10 = vpop.f32.mrf.mxu0  ;;  %v7008_v62 = vadd.f32 %v2241_v14, %v1736_v48 }
 0x116   : > { %v1199_v23 = vpop.f32.mrf.mxu2  ;;  %v1621_v57 = vpop.f32.mrf.mxu3 }
 0x117   : > { %v1315_v26 = vadd.f32 %v1199_v23, %v940_v17  ;;  %v942_v42 = vpop.f32.mrf.mxu1  ;;  %v2052_v17 = vshll.u32 %v6369_v18, 16 }
 0x118   : > { %v943_v46 = vadd.f32 %v942_v42, %v6882_v45  ;;  %v2050_v42 = vor.u32 %v2048_v24, %v2046_v21  ;;  %v2056_v24 = vshrl.u32 %v6369_v18, 16 }
 0x119   : > { %v1737_v39 = vadd.f32 %v1621_v57, %v1315_v26 }
 0x11a   : > { %5744 = vmatmul.msk.bf16.gmra.mxu1 %vm663_vm3, %v6716_v43 }
 0x11b   : > { %v2246_v35 = vpop.f32.mrf.mxu0  ;;  %5769 = vmatmul.msk.bf16.gmra.mxu2 %vm663_vm3, %v1081_v1  ;;  %v7018_v33 = vadd.f32 %v2243_v10, %v1737_v39  ;;  %5890 = vmatmul.msk.bf16.gmra.mxu3 %vm663_vm3, %v6344_v28  ;;  %v1082_v10 = vrot.slane %v6629_v15, 1  ;;  %v2054_v1 = vrot.slane %v2052_v17, 1 }
 0x11d   : > { %v1083_v39 = vsel %vm1058_vm4, %v1080_v59, %v1082_v10  ;;  %v2055_v25 = vsel %vm466_vm2, %v2050_v42, %v2054_v1  ;;  %v2058_v42 = vor.u32 %v2056_v24, %v2054_v1 }
 0x11e   : > { %6007 = vmatmul.msk.bf16.gmra.mxu0 %vm663_vm3, %v2047_v38  ;;  %v1202_v14 = vpop.f32.mrf.mxu2  ;;  %v1624_v53 = vpop.f32.mrf.mxu3  ;;  %v6345_v38 = vld [vmem:[%s6620_s10 + $0x64] sm:$0xff] }
 0x11f   : > { %v1316_v37 = vadd.f32 %v1202_v14, %v943_v46  ;;  %v944_v48 = vpop.f32.mrf.mxu1 }
 0x120   : > { %v945_v26 = vadd.f32 %v944_v48, %v6897_v55 }
 0x121   : > { %v1738_v6 = vadd.f32 %v1624_v53, %v1316_v37  ;;  %v6370_v53 = vld [vmem:[%s6620_s10 + $0x74] sm:$0xff] }
 0x122   : > { %v2060_v17 = vshll.u32 %v6370_v53, 16 }
 0x123   : > { %v2248_v43 = vpop.f32.mrf.mxu0  ;;  %v7024_v23 = vadd.f32 %v2246_v35, %v1738_v6 }
 0x126   : > { %v1204_v57 = vpop.f32.mrf.mxu2  ;;  %v1626_v19 = vpop.f32.mrf.mxu3 }
 0x127   : > { %v1317_v45 = vadd.f32 %v1204_v57, %v945_v26  ;;  %v947_v28 = vpop.f32.mrf.mxu1 }
 0x128   : > { %v948_v21 = vadd.f32 %v947_v28, %v6908_v52  ;;  %v2062_v28 = vrot.slane %v2060_v17, 1 }
 0x129   : > { %v1739_v46 = vadd.f32 %v1626_v19, %v1317_v45 }
 0x12a   : > { %5745 = vmatmul.msk.bf16.gmra.mxu1 %vm663_vm3, %v6740_v7  ;;  %v2063_v18 = vsel %vm466_vm2, %v2058_v42, %v2062_v28 }
 0x12b   : > { %v2251_v14 = vpop.f32.mrf.mxu0  ;;  %5770 = vmatmul.msk.bf16.gmra.mxu2 %vm663_vm3, %v1083_v39  ;;  %v7034_v55 = vadd.f32 %v2248_v43, %v1739_v46  ;;  %5891 = vmatmul.msk.bf16.gmra.mxu3 %vm663_vm3, %v6345_v38  ;;  %v1084_v43 = vrot.slane %v6632_v16, 1  ;;  %v6346_v46 = vld [vmem:[%s6620_s10 + $0x6c] sm:$0xff] }
 0x12d   : > { %v1085_v38 = vsel %vm1058_vm4, %v1082_v10, %v1084_v43 }
 0x12e   : > { %6008 = vmatmul.msk.bf16.gmra.mxu0 %vm663_vm3, %v2055_v25  ;;  %v1207_v35 = vpop.f32.mrf.mxu2  ;;  %v1629_v37 = vpop.f32.mrf.mxu3 }
 0x12f   : > { %v1318_v59 = vadd.f32 %v1207_v35, %v948_v21  ;;  %v949_v48 = vpop.f32.mrf.mxu1 }
 0x130   : > { %v950_v57 = vadd.f32 %v949_v48, %v6923_v27 }
 0x131   : > { %v1740_v6 = vadd.f32 %v1629_v37, %v1318_v59  ;;  %v6371_v59 = vld [vmem:[%s6620_s10 + $0x7c] sm:$0xff] }
 0x132   : > { %v2068_v24 = vshll.u32 %v6371_v59, 16 }
 0x133   : > { %v2253_v7 = vpop.f32.mrf.mxu0  ;;  %v7040_v26 = vadd.f32 %v2251_v14, %v1740_v6  ;;  %v2064_v6 = vshrl.u32 %v6370_v53, 16 }
 0x134   : > { %v2070_v42 = vrot.slane %v2068_v24, 1 }
 0x136   : > { %v1209_v45 = vpop.f32.mrf.mxu2  ;;  %v1631_v19 = vpop.f32.mrf.mxu3 }
 0x137   : > { %v1319_v52 = vadd.f32 %v1209_v45, %v950_v57  ;;  %v952_v39 = vpop.f32.mrf.mxu1 }
 0x138   : > { %v953_v1 = vadd.f32 %v952_v39, %v6934_v56 }
 0x139   : > { %v1741_v25 = vadd.f32 %v1631_v19, %v1319_v52  ;;  %v2066_v19 = vor.u32 %v2064_v6, %v2062_v28 }
 0x13a   : > { %5746 = vmatmul.msk.bf16.gmra.mxu1 %vm663_vm3, %v6629_v15 }
 0x13b   : > { %v2256_v21 = vpop.f32.mrf.mxu0  ;;  %5771 = vmatmul.msk.bf16.gmra.mxu2 %vm663_vm3, %v1085_v38  ;;  %v7050_v27 = vadd.f32 %v2253_v7, %v1741_v25  ;;  %5892 = vmatmul.msk.bf16.gmra.mxu3 %vm663_vm3, %v6346_v46  ;;  %v1086_v7 = vrot.slane %v6670_v49, 1  ;;  %v6347_v46 = vld [vmem:[%s6620_s10 + $0x74] sm:$0xff]  ;;  %v2071_v53 = vsel %vm466_vm2, %v2066_v19, %v2070_v42 }
 0x13d   : > { %v1087_v38 = vsel %vm1058_vm4, %v1084_v43, %v1086_v7 }
 0x13e   : > { %6009 = vmatmul.msk.bf16.gmra.mxu0 %vm663_vm3, %v2063_v18  ;;  %v1212_v14 = vpop.f32.mrf.mxu2  ;;  %v1634_v35 = vpop.f32.mrf.mxu3 }
 0x13f   : > { %v1320_v10 = vadd.f32 %v1212_v14, %v953_v1  ;;  %v954_v37 = vpop.f32.mrf.mxu1  ;;  %v6372_v14 = vld [vmem:[%s6620_s10 + $0x84] sm:$0xff] }
 0x140   : > { %v955_v57 = vadd.f32 %v954_v37, %v6949_v2  ;;  %v2072_v37 = vshrl.u32 %v6371_v59, 16 }
 0x141   : > { %v1742_v48 = vadd.f32 %v1634_v35, %v1320_v10 }
 0x143   : > { %v2258_v15 = vpop.f32.mrf.mxu0  ;;  %v7056_v17 = vadd.f32 %v2256_v21, %v1742_v48  ;;  %v2076_v48 = vshll.u32 %v6372_v14, 16 }
 0x146   : > { %v1214_v45 = vpop.f32.mrf.mxu2  ;;  %v1636_v52 = vpop.f32.mrf.mxu3 }
 0x147   : > { %v1321_v56 = vadd.f32 %v1214_v45, %v955_v57  ;;  %v957_v39 = vpop.f32.mrf.mxu1 }
 0x148   : > { %v958_v28 = vadd.f32 %v957_v39, %v6960_v29 }
 0x149   : > { %v1743_v25 = vadd.f32 %v1636_v52, %v1321_v56  ;;  %v2074_v56 = vor.u32 %v2072_v37, %v2070_v42  ;;  %v2078_v52 = vrot.slane %v2076_v48, 1 }
 0x14a   : > { %5747 = vmatmul.msk.bf16.gmra.mxu1 %vm663_vm3, %v6632_v16 }
 0x14b   : > { %v2261_v18 = vpop.f32.mrf.mxu0  ;;  %5772 = vmatmul.msk.bf16.gmra.mxu2 %vm663_vm3, %v1087_v38  ;;  %v7066_v2 = vadd.f32 %v2258_v15, %v1743_v25  ;;  %5893 = vmatmul.msk.bf16.gmra.mxu3 %vm663_vm3, %v6347_v46  ;;  %v1088_v15 = vrot.slane %v6695_v11, 1  ;;  %v6348_v38 = vld [vmem:[%s6620_s10 + $0x7c] sm:$0xff]  ;;  %v2079_v59 = vsel %vm466_vm2, %v2074_v56, %v2078_v52 }
 0x14d   : > { %v1089_v39 = vsel %vm1058_vm4, %v1086_v7, %v1088_v15 }
 0x14e   : > { %6010 = vmatmul.msk.bf16.gmra.mxu0 %vm663_vm3, %v2071_v53  ;;  %v1217_v21 = vpop.f32.mrf.mxu2  ;;  %v1639_v1 = vpop.f32.mrf.mxu3 }
 0x14f   : > { %v1322_v43 = vadd.f32 %v1217_v21, %v958_v28  ;;  %v959_v10 = vpop.f32.mrf.mxu1  ;;  %v6373_v28 = vld [vmem:[%s6620_s10 + $0x8c] sm:$0xff] }
 0x150   : > { %v960_v24 = vadd.f32 %v959_v10, %v6975_v12  ;;  %v2084_v10 = vshll.u32 %v6373_v28, 16 }
 0x151   : > { %v1744_v35 = vadd.f32 %v1639_v1, %v1322_v43  ;;  %v2080_v1 = vshrl.u32 %v6372_v14, 16 }
 0x153   : > { %v2263_v16 = vpop.f32.mrf.mxu0  ;;  %v7072_v6 = vadd.f32 %v2261_v18, %v1744_v35 }
 0x156   : > { %v1219_v57 = vpop.f32.mrf.mxu2  ;;  %v1641_v45 = vpop.f32.mrf.mxu3 }
 0x157   : > { %v1323_v29 = vadd.f32 %v1219_v57, %v960_v24  ;;  %v962_v19 = vpop.f32.mrf.mxu1  ;;  %v2082_v57 = vor.u32 %v2080_v1, %v2078_v52 }
 0x158   : > { %v963_v42 = vadd.f32 %v962_v19, %v6826_v60  ;;  %v6349_v19 = vld [vmem:[%s6620_s10 + $0x84] sm:$0xff] }
 0x159   : > { %v1745_v46 = vadd.f32 %v1641_v45, %v1323_v29  ;;  %v2086_v29 = vrot.slane %v2084_v10, 1 }
 0x15a   : > { %5748 = vmatmul.msk.bf16.gmra.mxu1 %vm663_vm3, %v6670_v49 }
 0x15b   : > { %v2266_v25 = vpop.f32.mrf.mxu0  ;;  %5773 = vmatmul.msk.bf16.gmra.mxu2 %vm663_vm3, %v1089_v39  ;;  %v7082_v12 = vadd.f32 %v2263_v16, %v1745_v46  ;;  %5894 = vmatmul.msk.bf16.gmra.mxu3 %vm663_vm3, %v6348_v38  ;;  %v1090_v16 = vrot.slane %v6719_v44, 1  ;;  %v2087_v14 = vsel %vm466_vm2, %v2082_v57, %v2086_v29  ;;  %v6350_v57 = vld [vmem:[%s6620_s10 + $0x8c] sm:$0xff] }
 0x15d   : > { %v1091_v56 = vsel %vm1058_vm4, %v1088_v15, %v1090_v16 }
 0x15e   : > { %6011 = vmatmul.msk.bf16.gmra.mxu0 %vm663_vm3, %v2079_v59  ;;  %v1222_v18 = vpop.f32.mrf.mxu2  ;;  %v1644_v53 = vpop.f32.mrf.mxu3  ;;  %v6374_v59 = vld [vmem:[%s6620_s10 + $0x94] sm:$0xff] }
 0x15f   : > { %v1324_v7 = vadd.f32 %v1222_v18, %v963_v42  ;;  %v964_v21 = vpop.f32.mrf.mxu1 }
 0x160   : > { %v965_v37 = vadd.f32 %v964_v21, %v6843_v3 }
 0x161   : > { %v1746_v43 = vadd.f32 %v1644_v53, %v1324_v7  ;;  %v2088_v7 = vshrl.u32 %v6373_v28, 16  ;;  %v2092_v53 = vshll.u32 %v6374_v59, 16 }
 0x163   : > { %v2268_v49 = vpop.f32.mrf.mxu0  ;;  %v7088_v35 = vadd.f32 %v2266_v25, %v1746_v43  ;;  %v1092_v43 = vrot.slane %v6743_v8, 1 }
 0x166   : > { %v1224_v48 = vpop.f32.mrf.mxu2  ;;  %v1646_v24 = vpop.f32.mrf.mxu3 }
 0x167   : > { %v1325_v60 = vadd.f32 %v1224_v48, %v965_v37  ;;  %v967_v45 = vpop.f32.mrf.mxu1  ;;  %v2090_v37 = vor.u32 %v2088_v7, %v2086_v29  ;;  %v2094_v48 = vrot.slane %v2092_v53, 1 }
 0x168   : > { %v968_v52 = vadd.f32 %v967_v45, %v6852_v22 }
 0x169   : > { %v1747_v39 = vadd.f32 %v1646_v24, %v1325_v60  ;;  %v1093_v24 = vsel %vm1058_vm4, %v1090_v16, %v1092_v43 }
 0x16a   : > { %5749 = vmatmul.msk.bf16.gmra.mxu1 %vm663_vm3, %v6695_v11 }
 0x16b   : > { %v2271_v38 = vpop.f32.mrf.mxu0  ;;  %5774 = vmatmul.msk.bf16.gmra.mxu2 %vm663_vm3, %v1091_v56  ;;  %v7098_v3 = vadd.f32 %v2268_v49, %v1747_v39  ;;  %5895 = vmatmul.msk.bf16.gmra.mxu3 %vm663_vm3, %v6349_v19 }
 0x16e   : > { %6012 = vmatmul.msk.bf16.gmra.mxu0 %vm663_vm3, %v2087_v14  ;;  %v1227_v46 = vpop.f32.mrf.mxu2  ;;  %v1649_v25 = vpop.f32.mrf.mxu3 }
 0x16f   : > { %v1326_v15 = vadd.f32 %v1227_v46, %v968_v52  ;;  %v969_v42 = vpop.f32.mrf.mxu1  ;;  %v2096_v46 = vshrl.u32 %v6374_v59, 16 }
 0x170   : > { %v970_v49 = vadd.f32 %v969_v42, %v6869_v32  ;;  %v2095_v32 = vsel %vm466_vm2, %v2090_v37, %v2094_v48  ;;  %v6479_v42 = vld [vmem:[%s6620_s10 + $0x90] sm:$0xff] }
 0x171   : > { %v1748_v18 = vadd.f32 %v1649_v25, %v1326_v15  ;;  %v6351_v37 = vld [vmem:[%s6620_s10 + $0x94] sm:$0xff] }
 0x173   : > { %v2273_v11 = vpop.f32.mrf.mxu0  ;;  %v7104_v21 = vadd.f32 %v2271_v38, %v1748_v18  ;;  %v6375_v38 = vld [vmem:[%s6620_s10 + $0x9c] sm:$0xff]  ;;  %v1094_v18 = vrot.slane %v6479_v42, 1 }
 0x174   : > { %v2100_v15 = vshll.u32 %v6375_v38, 16 }
 0x176   : > { %v1229_v1 = vpop.f32.mrf.mxu2  ;;  %v1651_v10 = vpop.f32.mrf.mxu3 }
 0x177   : > { %v1327_v22 = vadd.f32 %v1229_v1, %v970_v49  ;;  %v972_v60 = vpop.f32.mrf.mxu1  ;;  %v2098_v49 = vor.u32 %v2096_v46, %v2094_v48  ;;  %v2102_v1 = vrot.slane %v2100_v15, 1 }
 0x178   : > { %v973_v29 = vadd.f32 %v972_v60, %v6878_v40 }
 0x179   : > { %v1749_v45 = vadd.f32 %v1651_v10, %v1327_v22  ;;  %v1095_v10 = vsel %vm1058_vm4, %v1092_v43, %v1094_v18 }
 0x17a   : > { %5750 = vmatmul.msk.bf16.gmra.mxu1 %vm663_vm3, %v6719_v44 }
 0x17b   : > { %v2276_v56 = vpop.f32.mrf.mxu0  ;;  %5775 = vmatmul.msk.bf16.gmra.mxu2 %vm663_vm3, %v1093_v24  ;;  %v7114_v28 = vadd.f32 %v2273_v11, %v1749_v45  ;;  %5896 = vmatmul.msk.bf16.gmra.mxu3 %vm663_vm3, %v6350_v57 }
 0x17e   : > { %6013 = vmatmul.msk.bf16.gmra.mxu0 %vm663_vm3, %v2095_v32  ;;  %v1232_v16 = vpop.f32.mrf.mxu2  ;;  %v1654_v39 = vpop.f32.mrf.mxu3 }
 0x17f   : > { %v1328_v19 = vadd.f32 %v1232_v16, %v973_v29  ;;  %v974_v14 = vpop.f32.mrf.mxu1  ;;  %v2104_v16 = vshrl.u32 %v6375_v38, 16 }
 0x180   : > { %v975_v11 = vadd.f32 %v974_v14, %v6895_v54  ;;  %v2103_v54 = vsel %vm466_vm2, %v2098_v49, %v2102_v1  ;;  %v6480_v14 = vld [vmem:[%s6620_s10 + $0x98] sm:$0xff] }
 0x181   : > { %v1750_v44 = vadd.f32 %v1654_v39, %v1328_v19  ;;  %v6352_v49 = vld [vmem:[%s6620_s10 + $0x9c] sm:$0xff] }
 0x183   : > { %v2278_v52 = vpop.f32.mrf.mxu0  ;;  %v7120_v25 = vadd.f32 %v2276_v56, %v1750_v44  ;;  %v6376_v56 = vld [vmem:[%s6620_s10 + $0xa4] sm:$0xff]  ;;  %v1096_v44 = vrot.slane %v6480_v14, 1 }
 0x184   : > { %v2108_v19 = vshll.u32 %v6376_v56, 16 }
 0x186   : > { %v1234_v7 = vpop.f32.mrf.mxu2  ;;  %v1656_v53 = vpop.f32.mrf.mxu3 }
 0x187   : > { %v1329_v40 = vadd.f32 %v1234_v7, %v975_v11  ;;  %v977_v22 = vpop.f32.mrf.mxu1  ;;  %v2106_v11 = vor.u32 %v2104_v16, %v2102_v1  ;;  %v2110_v7 = vrot.slane %v2108_v19, 1 }
 0x188   : > { %v978_v48 = vadd.f32 %v977_v22, %v6904_v63 }
 0x189   : > { %v1751_v60 = vadd.f32 %v1656_v53, %v1329_v40  ;;  %v1097_v53 = vsel %vm1058_vm4, %v1094_v18, %v1096_v44  ;;  %v2111_v38 = vsel %vm466_vm2, %v2106_v11, %v2110_v7  ;;  %v6353_v11 = vld [vmem:[%s6620_s10 + $0xa4] sm:$0xff] }
 0x18a   : > { %5751 = vmatmul.msk.bf16.gmra.mxu1 %vm663_vm3, %v6743_v8 }
 0x18b   : > { %v2281_v24 = vpop.f32.mrf.mxu0  ;;  %5776 = vmatmul.msk.bf16.gmra.mxu2 %vm663_vm3, %v1095_v10  ;;  %v7130_v59 = vadd.f32 %v2278_v52, %v1751_v60  ;;  %5897 = vmatmul.msk.bf16.gmra.mxu3 %vm663_vm3, %v6351_v37 }
 0x18e   : > { %6014 = vmatmul.msk.bf16.gmra.mxu0 %vm663_vm3, %v2103_v54  ;;  %v1237_v43 = vpop.f32.mrf.mxu2  ;;  %v1659_v45 = vpop.f32.mrf.mxu3 }
 0x18f   : > { %v1330_v57 = vadd.f32 %v1237_v43, %v978_v48  ;;  %v979_v32 = vpop.f32.mrf.mxu1  ;;  %v2112_v43 = vshrl.u32 %v6376_v56, 16 }
 0x190   : > { %v980_v52 = vadd.f32 %v979_v32, %v6921_v31  ;;  %v6481_v32 = vld [vmem:[%s6620_s10 + $0xa0] sm:$0xff] }
 0x191   : > { %v1752_v8 = vadd.f32 %v1659_v45, %v1330_v57 }
 0x193   : > { %v2283_v29 = vpop.f32.mrf.mxu0  ;;  %v7136_v39 = vadd.f32 %v2281_v24, %v1752_v8  ;;  %v6377_v24 = vld [vmem:[%s6620_s10 + $0xac] sm:$0xff]  ;;  %v1098_v8 = vrot.slane %v6481_v32, 1 }
 0x194   : > { %v2116_v57 = vshll.u32 %v6377_v24, 16 }
 0x196   : > { %v1239_v46 = vpop.f32.mrf.mxu2  ;;  %v1661_v15 = vpop.f32.mrf.mxu3 }
 0x197   : > { %v1331_v63 = vadd.f32 %v1239_v46, %v980_v52  ;;  %v982_v40 = vpop.f32.mrf.mxu1  ;;  %v2114_v52 = vor.u32 %v2112_v43, %v2110_v7  ;;  %v2118_v46 = vrot.slane %v2116_v57, 1 }
 0x198   : > { %v983_v1 = vadd.f32 %v982_v40, %v6930_v41 }
 0x199   : > { %v1753_v22 = vadd.f32 %v1661_v15, %v1331_v63  ;;  %v1099_v15 = vsel %vm1058_vm4, %v1096_v44, %v1098_v8  ;;  %v2119_v56 = vsel %vm466_vm2, %v2114_v52, %v2118_v46  ;;  %v6354_v52 = vld [vmem:[%s6620_s10 + $0xac] sm:$0xff] }
 0x19a   : > { %5752 = vmatmul.msk.bf16.gmra.mxu1 %vm663_vm3, %v6479_v42 }
 0x19b   : > { %v2286_v10 = vpop.f32.mrf.mxu0  ;;  %5777 = vmatmul.msk.bf16.gmra.mxu2 %vm663_vm3, %v1097_v53  ;;  %v7145_v31 = vadd.f32 %v2283_v29, %v1753_v22  ;;  %5898 = vmatmul.msk.bf16.gmra.mxu3 %vm663_vm3, %v6352_v49 }
 0x19e   : > { %6015 = vmatmul.msk.bf16.gmra.mxu0 %vm663_vm3, %v2111_v38  ;;  %v1242_v37 = vpop.f32.mrf.mxu2  ;;  %v1664_v60 = vpop.f32.mrf.mxu3 }
 0x19f   : > { %v1332_v18 = vadd.f32 %v1242_v37, %v983_v1  ;;  %v984_v54 = vpop.f32.mrf.mxu1  ;;  %v2120_v37 = vshrl.u32 %v6377_v24, 16 }
 0x1a0   : > { %v985_v29 = vadd.f32 %v984_v54, %v6947_v61  ;;  %v6482_v54 = vld [vmem:[%s6620_s10 + $0xa8] sm:$0xff] }
 0x1a1   : > { %v1754_v42 = vadd.f32 %v1664_v60, %v1332_v18 }
 0x1a3   : > { %v2288_v48 = vpop.f32.mrf.mxu0  ;;  %v7151_v45 = vadd.f32 %v2286_v10, %v1754_v42  ;;  %v6378_v10 = vld [vmem:[%s6620_s10 + $0xb4] sm:$0xff]  ;;  %v1100_v42 = vrot.slane %v6482_v54, 1 }
 0x1a4   : > { %v2124_v18 = vshll.u32 %v6378_v10, 16 }
 0x1a6   : > { %v1244_v16 = vpop.f32.mrf.mxu2  ;;  %v1666_v19 = vpop.f32.mrf.mxu3 }
 0x1a7   : > { %v1333_v41 = vadd.f32 %v1244_v16, %v985_v29  ;;  %v987_v63 = vpop.f32.mrf.mxu1  ;;  %v2122_v29 = vor.u32 %v2120_v37, %v2118_v46  ;;  %v2126_v16 = vrot.slane %v2124_v18, 1 }
 0x1a8   : > { %v988_v7 = vadd.f32 %v987_v63, %v6956_v47 }
 0x1a9   : > { %v1755_v40 = vadd.f32 %v1666_v19, %v1333_v41  ;;  %v1101_v19 = vsel %vm1058_vm4, %v1098_v8, %v1100_v42  ;;  %v2127_v24 = vsel %vm466_vm2, %v2122_v29, %v2126_v16  ;;  %v6355_v29 = vld [vmem:[%s6620_s10 + $0xb4] sm:$0xff] }
 0x1aa   : > { %5753 = vmatmul.msk.bf16.gmra.mxu1 %vm663_vm3, %v6480_v14 }
 0x1ab   : > { %v2291_v53 = vpop.f32.mrf.mxu0  ;;  %5778 = vmatmul.msk.bf16.gmra.mxu2 %vm663_vm3, %v1099_v15  ;;  %v7160_v61 = vadd.f32 %v2288_v48, %v1755_v40  ;;  %5899 = vmatmul.msk.bf16.gmra.mxu3 %vm663_vm3, %v6353_v11 }
 0x1ae   : > { %6016 = vmatmul.msk.bf16.gmra.mxu0 %vm663_vm3, %v2119_v56  ;;  %v1247_v49 = vpop.f32.mrf.mxu2  ;;  %v1669_v22 = vpop.f32.mrf.mxu3 }
 0x1af   : > { %v1334_v44 = vadd.f32 %v1247_v49, %v988_v7  ;;  %v989_v38 = vpop.f32.mrf.mxu1  ;;  %v2128_v49 = vshrl.u32 %v6378_v10, 16 }
 0x1b0   : > { %v990_v48 = vadd.f32 %v989_v38, %v6973_v13  ;;  %v6483_v38 = vld [vmem:[%s6620_s10 + $0xb0] sm:$0xff] }
 0x1b1   : > { %v1756_v14 = vadd.f32 %v1669_v22, %v1334_v44 }
 0x1b3   : > { %v2293_v1 = vpop.f32.mrf.mxu0  ;;  %v7166_v60 = vadd.f32 %v2291_v53, %v1756_v14  ;;  %v6379_v53 = vld [vmem:[%s6620_s10 + $0xbc] sm:$0xff]  ;;  %v1102_v14 = vrot.slane %v6483_v38, 1 }
 0x1b4   : > { %v2132_v44 = vshll.u32 %v6379_v53, 16 }
 0x1b6   : > { %v1249_v43 = vpop.f32.mrf.mxu2  ;;  %v1671_v57 = vpop.f32.mrf.mxu3 }
 0x1b7   : > { %v1335_v47 = vadd.f32 %v1249_v43, %v990_v48  ;;  %v992_v41 = vpop.f32.mrf.mxu1  ;;  %v2130_v48 = vor.u32 %v2128_v49, %v2126_v16  ;;  %v2134_v43 = vrot.slane %v2132_v44, 1 }
 0x1b8   : > { %v993_v46 = vadd.f32 %v992_v41, %v6838_v0 }
 0x1b9   : > { %v1757_v63 = vadd.f32 %v1671_v57, %v1335_v47  ;;  %v1103_v57 = vsel %vm1058_vm4, %v1100_v42, %v1102_v14  ;;  %v2135_v10 = vsel %vm466_vm2, %v2130_v48, %v2134_v43  ;;  %v6356_v48 = vld [vmem:[%s6620_s10 + $0xbc] sm:$0xff] }
 0x1ba   : > { %5754 = vmatmul.msk.bf16.gmra.mxu1 %vm663_vm3, %v6481_v32 }
 0x1bb   : > { %v2296_v15 = vpop.f32.mrf.mxu0  ;;  %5779 = vmatmul.msk.bf16.gmra.mxu2 %vm663_vm3, %v1101_v19  ;;  %v7175_v13 = vadd.f32 %v2293_v1, %v1757_v63  ;;  %5900 = vmatmul.msk.bf16.gmra.mxu3 %vm663_vm3, %v6354_v52 }
 0x1be   : > { %6017 = vmatmul.msk.bf16.gmra.mxu0 %vm663_vm3, %v2127_v24  ;;  %v1252_v11 = vpop.f32.mrf.mxu2  ;;  %v1674_v40 = vpop.f32.mrf.mxu3 }
 0x1bf   : > { %v1336_v8 = vadd.f32 %v1252_v11, %v993_v46  ;;  %v994_v56 = vpop.f32.mrf.mxu1  ;;  %v2136_v11 = vshrl.u32 %v6379_v53, 16 }
 0x1c0   : > { %v995_v1 = vadd.f32 %v994_v56, %v6848_v9  ;;  %v6484_v56 = vld [vmem:[%s6620_s10 + $0xb8] sm:$0xff] }
 0x1c1   : > { %v1758_v32 = vadd.f32 %v1674_v40, %v1336_v8 }
 0x1c3   : > { %v2298_v7 = vpop.f32.mrf.mxu0  ;;  %v7181_v22 = vadd.f32 %v2296_v15, %v1758_v32  ;;  %v6380_v15 = vld [vmem:[%s6620_s10 + $0xc4] sm:$0xff]  ;;  %v1104_v32 = vrot.slane %v6484_v56, 1 }
 0x1c4   : > { %v2140_v8 = vshll.u32 %v6380_v15, 16 }
 0x1c6   : > { %v1254_v37 = vpop.f32.mrf.mxu2  ;;  %v1676_v18 = vpop.f32.mrf.mxu3 }
 0x1c7   : > { %v1337_v0 = vadd.f32 %v1254_v37, %v995_v1  ;;  %v997_v47 = vpop.f32.mrf.mxu1  ;;  %v2138_v1 = vor.u32 %v2136_v11, %v2134_v43  ;;  %v2142_v37 = vrot.slane %v2140_v8, 1 }
 0x1c8   : > { %v998_v16 = vadd.f32 %v997_v47, %v6864_v34  ;;  %v1830_v47 = vld [vmem:[%s6620_s10 + $0xcc] sm:$0x1] }
 0x1c9   : > { %v1759_v41 = vadd.f32 %v1676_v18, %v1337_v0  ;;  %v1105_v18 = vsel %vm1058_vm4, %v1102_v14, %v1104_v32  ;;  %v2143_v53 = vsel %vm466_vm2, %v2138_v1, %v2142_v37 }
 0x1ca   : > { %5755 = vmatmul.msk.bf16.gmra.mxu1 %vm663_vm3, %v6482_v54 }
 0x1cb   : > { %v2301_v19 = vpop.f32.mrf.mxu0  ;;  %5780 = vmatmul.msk.bf16.gmra.mxu2 %vm663_vm3, %v1103_v57  ;;  %v7190_v9 = vadd.f32 %v2298_v7, %v1759_v41  ;;  %5901 = vmatmul.msk.bf16.gmra.mxu3 %vm663_vm3, %v6355_v29  ;;  %v1930_v41 = vunpack.c.l.b16 %v1830_v47 }
 0x1ce   : > { %6018 = vmatmul.msk.bf16.gmra.mxu0 %vm663_vm3, %v2135_v10  ;;  %v1257_v52 = vpop.f32.mrf.mxu2  ;;  %v1679_v63 = vpop.f32.mrf.mxu3 }
 0x1cf   : > { %v1338_v42 = vadd.f32 %v1257_v52, %v998_v16  ;;  %v999_v24 = vpop.f32.mrf.mxu1  ;;  %v7211_v16 = vpack.c.b16 %v1930_v41, %v1930_v41 }
 0x1d0   : > { %v1000_v7 = vadd.f32 %v999_v24, %v6874_v36 }
 0x1d1   : > { %v1760_v54 = vadd.f32 %v1679_v63, %v1338_v42  ;;  %v2144_v63 = vshrl.u32 %v6380_v15, 16  ;;  %v2148_v24 = vshll.u32 %v7211_v16, 16  ;;  %v6513_v15 = vld [vmem:[%s6620_s10 + $0xc] sm:$0xe] }
 0x1d3   : > { %v2303_v46 = vpop.f32.mrf.mxu0  ;;  %v7196_v40 = vadd.f32 %v2301_v19, %v1760_v54 }
 0x1d6   : > { %v1259_v34 = vpop.f32.mrf.mxu2  ;;  %v1681_v44 = vpop.f32.mrf.mxu3 }
 0x1d7   : > { %v1339_v49 = vadd.f32 %v1259_v34, %v1000_v7  ;;  %v1002_v0 = vpop.f32.mrf.mxu1  ;;  %v2146_v34 = vor.u32 %v2144_v63, %v2142_v37 }
 0x1d8   : > { %v1003_v43 = vadd.f32 %v1002_v0, %v6890_v50  ;;  %v1106_v50 = vrot.slane %v6767_v51, 1  ;;  %v6357_v0 = vld [vmem:[%s6620_s10 + $0xc4] sm:$0xff] }
 0x1d9   : > { %v1761_v57 = vadd.f32 %v1681_v44, %v1339_v49  ;;  %v2150_v49 = vrot.slane %v2148_v24, 1 }
 0x1da   : > { %5756 = vmatmul.msk.bf16.gmra.mxu1 %vm663_vm3, %v6483_v38  ;;  %v1107_v1 = vsel %vm1058_vm4, %v1104_v32, %v1106_v50  ;;  %v7230_v32 = vld [vmem:[%s6620_s10 + $0x20] sm:$0xff] }
 0x1db   : > { %v2306_v29 = vpop.f32.mrf.mxu0  ;;  %5781 = vmatmul.msk.bf16.gmra.mxu2 %vm663_vm3, %v1105_v18  ;;  %v7206_v36 = vadd.f32 %v2303_v46, %v1761_v57  ;;  %5902 = vmatmul.msk.bf16.gmra.mxu3 %vm663_vm3, %v6356_v48  ;;  %v6439_v48 = vld [vmem:[%s6620_s10 + $0x18] sm:$0xff]   ;;  %v2151_v51 = vsel %vm466_vm2, %v2146_v34, %v2150_v49 }
 0x1dc   : > { %v3310_v57 = vshll.u32 %v6439_v48, 16 }
 0x1de   : > { %6019 = vmatmul.msk.bf16.gmra.mxu0 %vm663_vm3, %v2143_v53  ;;  %v1262_v14 = vpop.f32.mrf.mxu2  ;;  %v1684_v10 = vpop.f32.mrf.mxu3 }
 0x1df   : > { %v1340_v19 = vadd.f32 %v1262_v14, %v1003_v43  ;;  %v1004_v38 = vpop.f32.mrf.mxu1  ;;  %v6514_v43 = vor.u32 %v6513_v15, %v6789_v5  ;;  %v6440_v14 = vld [vmem:[%s6620_s10 + $0x18] sm:$0xf0]  ;;  %v3762_v15 = vrot.slane %v7230_v32, 1 }
 0x1e0   : > { %v1005_v46 = vadd.f32 %v1004_v38, %v6900_v58  ;;  %v3308_v38 = vshrl.u32 %v6439_v48, 16 }
 0x1e1   : > { %v1762_v52 = vadd.f32 %v1684_v10, %v1340_v19  ;;  %v6441_v19 = vld [vmem:[%s6620_s10 + $0x18] sm:$0xe]  ;;  %v2410_v50 = vrot.slane %v6514_v43, 1  ;;  %v8506_v43 = vld [vmem:[#allocation11_spill] sm:$0xff] }
 0x1e2   : > { %v6442_v63 = vor.u32 %v6441_v19, %v6440_v14  ;;  %v7272_v19 = vld [vmem:[%s6620_s10 + $0x28] sm:$0xff] }
 0x1e3   : > { %v2308_v42 = vpop.f32.mrf.mxu0  ;;  %v7214_v54 = vadd.f32 %v2306_v29, %v1762_v52  ;;  %v3312_v52 = vrot.slane %v3310_v57, 1 }
 0x1e5   : > { %v3313_v5 = vor.u32 %v3312_v52, %v3308_v38 }
 0x1e6   : > { %v1264_v11 = vpop.f32.mrf.mxu2  ;;  %v1686_v7 = vpop.f32.mrf.mxu3 }
 0x1e7   : > { %v1341_v8 = vadd.f32 %v1264_v11, %v1005_v46  ;;  %v1007_v44 = vpop.f32.mrf.mxu1  ;;  %v7240_v46 = vld [vmem:[%s6620_s10 + $0x14] sm:$0xff] }
 0x1e8   : > { %v1008_v37 = vadd.f32 %v1007_v44, %v6916_v20  ;;  %v3315_v20 = vshll.u32 %v7230_v32, 16  ;;  %v2411_v11 = vrot.slane %v7240_v46, 1  ;;  %v3323_v46 = vshll.u32 %v7272_v19, 16 }
 0x1e9   : > { %v1763_v18 = vadd.f32 %v1686_v7, %v1341_v8  ;;  %v8505_v8 = vld [vmem:[#allocation9_spill] sm:$0xff] }
 0x1ea   : > { %5757 = vmatmul.msk.bf16.gmra.mxu1 %vm663_vm3, %v6484_v56  ;;  %v3317_v34 = vrot.slane %v3315_v20, 1 }
 0x1eb   : > { %v2311_v47 = vpop.f32.mrf.mxu0  ;;  %5782 = vmatmul.msk.bf16.gmra.mxu2 %vm663_vm3, %v1107_v1  ;;  %v7225_v58 = vadd.f32 %v2308_v42, %v1763_v18  ;;  %5903 = vmatmul.msk.bf16.gmra.mxu3 %vm663_vm3, %v6357_v0  ;;  %v6381_v0 = vld [vmem:[%s6620_s10 + $0x18] sm:$0xff]  ;;  %v3761_v18 = vrot.slane %v6442_v63, 1 }
 0x1ee   : > { %6020 = vmatmul.msk.bf16.gmra.mxu0 %vm663_vm3, %v2151_v51  ;;  %v1267_v29 = vpop.f32.mrf.mxu2  ;;  %v1689_v41 = vpop.f32.mrf.mxu3  ;;  %v6540_v51 = vmov 0  }
 0x1ef   : > { %v1342_v53 = vadd.f32 %v1267_v29, %v1008_v37  ;;  %v1009_v56 = vpop.f32.mrf.mxu1  ;;  %6474 = vset.pattern.permute.xlu0 %v6540_v51  ;;  %v4262_v37 = vld [vmem:[%s8482_s4] sm:$0xf]  ;;  %6475 = vset.pattern.permute.xlu1 %v6540_v51  ;;  %v3318_v29 = vsel %vm466_vm2, %v3313_v5, %v3317_v34  ;;  %4311 = vst.msk [vmem:[%s7256_s27] sm:$0xf] %vm4310_vm5, %v6540_v51 }
 0x1f0   : > { %v1010_v7 = vadd.f32 %v1009_v56, %v8505_v8  ;;  %4333 = vperm.xlu0 %6474, %v4262_v37   ;;  %6476 = vset.pattern.permute.xlu2 %v6540_v51  ;;  %4312 = vst.msk [vmem:[%s7256_s27 + $0x4] sm:$0xf] %vm4310_vm5, %v6540_v51  ;;  %v6486_v5 = vld [vmem:[%s6620_s10 + $0x1c] sm:$0xff] }
 0x1f1   : > { %v1764_v10 = vadd.f32 %v1689_v41, %v1342_v53  ;;  %v3763_v41 = vsel %vm1058_vm4, %v3761_v18, %v3762_v15  ;;  %4313 = vst.msk [vmem:[%s7256_s27 + $0x8] sm:$0xf] %vm4310_vm5, %v6540_v51  ;;  %v3325_v18 = vrot.slane %v3323_v46, 1 }
 0x1f2   : > { %4326 = vst.msk [vmem:[%s7256_s27 + $0xd0] sm:$0xf] %vm4310_vm5, %v6540_v51 }
 0x1f3   : > { %v2313_v42 = vpop.f32.mrf.mxu0  ;;  %v7237_v24 = vadd.f32 %v2311_v47, %v1764_v10  ;;  %v2412_v47 = vsel %vm1058_vm4, %v2410_v50, %v2411_v11  ;;  %4327 = vst.msk [vmem:[%s7256_s27 + $0xd4] sm:$0xf] %vm4310_vm5, %v6540_v51  ;;  %v3319_v50 = vshrl.u32 %v7230_v32, 16  ;;  %v3764_v32 = vrot.slane %v7272_v19, 1 }
 0x1f4   : > { %4328 = vst.msk [vmem:[%s7256_s27 + $0xd8] sm:$0xf] %vm4310_vm5, %v6540_v51 }
 0x1f5   : > { %4329 = vst.msk [vmem:[%s7256_s27 + $0xdc] sm:$0xf] %vm4310_vm5, %v6540_v51 }
 0x1f6   : > { %v1269_v49 = vpop.f32.mrf.mxu2  ;;  %v1691_v1 = vpop.f32.mrf.mxu3  ;;  %4330 = vst.msk [vmem:[%s7256_s27 + $0xe0] sm:$0xf] %vm4310_vm5, %v6540_v51 }
 0x1f7   : > { %v1343_v44 = vadd.f32 %v1269_v49, %v1010_v7  ;;  %v1012_v48 = vpop.f32.mrf.mxu1  ;;  %v2413_v49 = vrot.slane %v6486_v5, 1 }
 0x1f8   : > { %v1013_v14 = vadd.f32 %v1012_v48, %v8506_v43 }
 0x1f9   : > { %v1765_v57 = vadd.f32 %v1691_v1, %v1343_v44  ;;  %v8508_v44 = vld [vmem:[#allocation13_spill] sm:$0xff]  ;;  %v2414_v51 = vsel %vm1058_vm4, %v2411_v11, %v2413_v49  ;;  %v8510_v11 = vld [vmem:[#allocation15_spill] sm:$0xff] }
 0x1fa   : > { %6022 = vmatmul.msk.bf16.vlgmr.msra.gmra.mxu1 %vm663_vm3, %v2412_v47 }
 0x1fb   : > { %v2316_v53 = vpop.f32.mrf.mxu0  ;;  %6143 = vmatmul.msk.bf16.vlgmr.msra.gmra.mxu2 %vm663_vm3, %v6381_v0  ;;  %v7265_v56 = vadd.f32 %v2313_v42, %v1765_v57  ;;  %6260 = vmatmul.msk.bf16.vlgmr.msra.gmra.mxu3 %vm663_vm3, %v3318_v29  ;;  %v4263_v42 = vld [vmem:[%s8482_s4 + $0x4] sm:$0xf]  ;;  %v3321_v0 = vor.u32 %v3319_v50, %v3317_v34 }
 0x1fc   : > { %4342 = vperm.xlu0 %6474, %v4263_v42   ;;  %v6382_v57 = vld [vmem:[%s6620_s10 + $0x20] sm:$0xff] }
 0x1fd   : > { %v3326_v43 = vsel %vm466_vm2, %v3321_v0, %v3325_v18  ;;  %v6487_v0 = vld [vmem:[%s6620_s10 + $0x24] sm:$0xff] }
 0x1fe   : > { %6285 = vmatmul.msk.bf16.vlgmr.msra.gmra.mxu0 %vm663_vm3, %v3763_v41  ;;  %v1272_v10 = vpop.f32.mrf.mxu2  ;;  %v1694_v52 = vpop.f32.mrf.mxu3 }
 0x1ff   : > { %v1344_v38 = vadd.f32 %v1272_v10, %v1013_v14  ;;  %v1014_v20 = vpop.f32.mrf.mxu1  ;;  %v3765_v14 = vsel %vm1058_vm4, %v3762_v15, %v3764_v32  ;;  %v4265_v15 = vld [vmem:[%s8482_s4 + $0xc] sm:$0xf] }
 0x200   : > { %v1015_v1 = vadd.f32 %v1014_v20, %v8508_v44 }
 0x201   : > { %v1766_v63 = vadd.f32 %v1694_v52, %v1344_v38  ;;  %v7309_v52 = vld [vmem:[%s6620_s10 + $0x30] sm:$0xff] }
 0x202   : > { %v3331_v5 = vshll.u32 %v7309_v52, 16 }
 0x203   : > { %v2318_v8 = vpop.f32.mrf.mxu0  ;;  %v7290_v7 = vadd.f32 %v2316_v53, %v1766_v63  ;;  %v4264_v53 = vld [vmem:[%s8482_s4 + $0x8] sm:$0xf] }
 0x204   : > { %4351 = vperm.xlu1 %6475, %v4264_v53  }
 0x205   : > { %8507 = vst [vmem:[#allocation9_spill] sm:$0xff] %v7290_v7 }
 0x206   : > { %v1274_v48 = vpop.f32.mrf.mxu2  ;;  %v1696_v37 = vpop.f32.mrf.mxu3 }
 0x207   : > { %v1345_v47 = vadd.f32 %v1274_v48, %v1015_v1  ;;  %v1017_v29 = vpop.f32.mrf.mxu1  ;;  %v2415_v48 = vrot.slane %v6487_v0, 1 }
 0x208   : > { %v1018_v38 = vadd.f32 %v1017_v29, %v8510_v11  ;;  %v3333_v29 = vrot.slane %v3331_v5, 1 }
 0x209   : > { %v1767_v41 = vadd.f32 %v1696_v37, %v1345_v47  ;;  %v8512_v47 = vld [vmem:[#allocation17_spill] sm:$0xff]  ;;  %v2416_v11 = vsel %vm1058_vm4, %v2413_v49, %v2415_v48 }
 0x20a   : > { %6023 = vmatmul.msk.bf16.gmra.mxu1 %vm663_vm3, %v2414_v51 }
 0x20b   : > { %v2321_v34 = vpop.f32.mrf.mxu0  ;;  %6144 = vmatmul.msk.bf16.gmra.mxu2 %vm663_vm3, %v6382_v57  ;;  %v7304_v10 = vadd.f32 %v2318_v8, %v1767_v41  ;;  %6261 = vmatmul.msk.bf16.gmra.mxu3 %vm663_vm3, %v3326_v43  ;;  %v3327_v8 = vshrl.u32 %v7272_v19, 16  ;;  %v6383_v43 = vld [vmem:[%s6620_s10 + $0x28] sm:$0xff] }
 0x20c   : > { %4360 = vperm.xlu1 %6475, %v4265_v15   ;;  %v7333_v15 = vld [vmem:[%s6620_s10 + $0x38] sm:$0xff] }
 0x20d   : > { %8509 = vst [vmem:[#allocation11_spill] sm:$0xff] %v7304_v10  ;;  %v3329_v57 = vor.u32 %v3327_v8, %v3325_v18 }
 0x20e   : > { %6286 = vmatmul.msk.bf16.gmra.mxu0 %vm663_vm3, %v3765_v14  ;;  %v1277_v20 = vpop.f32.mrf.mxu2  ;;  %v1699_v63 = vpop.f32.mrf.mxu3  ;;  %v3766_v14 = vrot.slane %v7309_v52, 1 }
 0x20f   : > { %v1346_v42 = vadd.f32 %v1277_v20, %v1018_v38  ;;  %v1019_v50 = vpop.f32.mrf.mxu1 }
 0x210   : > { %v1020_v37 = vadd.f32 %v1019_v50, %v8512_v47  ;;  %v3767_v18 = vsel %vm1058_vm4, %v3764_v32, %v3766_v14  ;;  %v3335_v47 = vshrl.u32 %v7309_v52, 16  ;;  %v3339_v32 = vshll.u32 %v7333_v15, 16 }
 0x211   : > { %v1768_v46 = vadd.f32 %v1699_v63, %v1346_v42  ;;  %v8514_v63 = vld [vmem:[#allocation2_spill] sm:$0xff] }
 0x213   : > { %v2323_v44 = vpop.f32.mrf.mxu0  ;;  %v7317_v1 = vadd.f32 %v2321_v34, %v1768_v46  ;;  %v3334_v34 = vsel %vm466_vm2, %v3329_v57, %v3333_v29  ;;  %v6488_v57 = vld [vmem:[%s6620_s10 + $0x2c] sm:$0xff] }
 0x215   : > { %8511 = vst [vmem:[#allocation13_spill] sm:$0xff] %v7317_v1 }
 0x216   : > { %v1279_v51 = vpop.f32.mrf.mxu2  ;;  %v1701_v41 = vpop.f32.mrf.mxu3 }
 0x217   : > { %v1347_v53 = vadd.f32 %v1279_v51, %v1020_v37  ;;  %v1022_v19 = vpop.f32.mrf.mxu1  ;;  %v2417_v51 = vrot.slane %v6488_v57, 1 }
 0x218   : > { %v1023_v50 = vadd.f32 %v1022_v19, %v8514_v63  ;;  %v3341_v19 = vrot.slane %v3339_v32, 1  ;;  %v3768_v63 = vrot.slane %v7333_v15, 1 }
 0x219   : > { %v1769_v38 = vadd.f32 %v1701_v41, %v1347_v53  ;;  %v8516_v53 = vld [vmem:[#allocation3_spill] sm:$0xff]  ;;  %v2418_v52 = vsel %vm1058_vm4, %v2415_v48, %v2417_v51  ;;  %v8518_v48 = vld [vmem:[#allocation4_spill] sm:$0xff] }
 0x21a   : > { %6024 = vmatmul.msk.bf16.gmra.mxu1 %vm663_vm3, %v2416_v11 }
 0x21b   : > { %v2326_v20 = vpop.f32.mrf.mxu0  ;;  %6145 = vmatmul.msk.bf16.gmra.mxu2 %vm663_vm3, %v6383_v43  ;;  %v7328_v42 = vadd.f32 %v2323_v44, %v1769_v38  ;;  %6262 = vmatmul.msk.bf16.gmra.mxu3 %vm663_vm3, %v3334_v34  ;;  %v3337_v43 = vor.u32 %v3335_v47, %v3333_v29  ;;  %v7357_v47 = vld [vmem:[%s6620_s10 + $0x40] sm:$0xff] }
 0x21d   : > { %8513 = vst [vmem:[#allocation15_spill] sm:$0xff] %v7328_v42 }
 0x21e   : > { %6287 = vmatmul.msk.bf16.gmra.mxu0 %vm663_vm3, %v3767_v18  ;;  %v1282_v49 = vpop.f32.mrf.mxu2  ;;  %v1704_v8 = vpop.f32.mrf.mxu3  ;;  %v6384_v18 = vld [vmem:[%s6620_s10 + $0x30] sm:$0xff] }
 0x21f   : > { %v1348_v46 = vadd.f32 %v1282_v49, %v1023_v50  ;;  %v1024_v5 = vpop.f32.mrf.mxu1 }
 0x220   : > { %v1025_v41 = vadd.f32 %v1024_v5, %v8516_v53 }
 0x221   : > { %v1770_v0 = vadd.f32 %v1704_v8, %v1348_v46  ;;  %v3342_v46 = vsel %vm466_vm2, %v3337_v43, %v3341_v19  ;;  %v3769_v8 = vsel %vm1058_vm4, %v3766_v14, %v3768_v63  ;;  %v4266_v43 = vld [vmem:[%s8482_s4 + $0x10] sm:$0xf]  ;;  %v4269_v14 = vld [vmem:[%s8482_s4 + $0x1c] sm:$0xf] }
 0x222   : > { %4369 = vperm.xlu2 %6476, %v4266_v43   ;;  %4396 = vperm.xlu1 %6475, %v4269_v14  }
 0x223   : > { %v2328_v44 = vpop.f32.mrf.mxu0  ;;  %v7338_v37 = vadd.f32 %v2326_v20, %v1770_v0  ;;  %v4268_v20 = vld [vmem:[%s8482_s4 + $0x18] sm:$0xf] }
 0x224   : > { %4387 = vperm.xlu0 %6474, %v4268_v20   ;;  %v8520_v20 = vld [vmem:[#allocation5_spill] sm:$0xff] }
 0x225   : > { %8515 = vst [vmem:[#allocation17_spill] sm:$0xff] %v7338_v37 }
 0x226   : > { %v1284_v11 = vpop.f32.mrf.mxu2  ;;  %v1706_v34 = vpop.f32.mrf.mxu3 }
 0x227   : > { %v1349_v38 = vadd.f32 %v1284_v11, %v1025_v41  ;;  %v1027_v50 = vpop.f32.mrf.mxu1  ;;  %v3343_v11 = vshrl.u32 %v7333_v15, 16  ;;  %v3770_v15 = vrot.slane %v7357_v47, 1 }
 0x228   : > { %v1028_v0 = vadd.f32 %v1027_v50, %v8518_v48  ;;  %v6489_v50 = vld [vmem:[%s6620_s10 + $0x34] sm:$0xff] }
 0x229   : > { %v1771_v49 = vadd.f32 %v1706_v34, %v1349_v38  ;;  %v3347_v38 = vshll.u32 %v7357_v47, 16 }
 0x22a   : > { %6025 = vmatmul.msk.bf16.gmra.mxu1 %vm663_vm3, %v2418_v52  ;;  %v2419_v52 = vrot.slane %v6489_v50, 1  ;;  %v7387_v50 = vld [vmem:[%s6620_s10 + $0x48] sm:$0xff] }
 0x22b   : > { %v2331_v29 = vpop.f32.mrf.mxu0  ;;  %6146 = vmatmul.msk.bf16.gmra.mxu2 %vm663_vm3, %v6384_v18  ;;  %v7352_v5 = vadd.f32 %v2328_v44, %v1771_v49  ;;  %6263 = vmatmul.msk.bf16.gmra.mxu3 %vm663_vm3, %v3342_v46  ;;  %v3345_v46 = vor.u32 %v3343_v11, %v3341_v19 }
 0x22c   : > { %v2420_v43 = vsel %vm1058_vm4, %v2417_v51, %v2419_v52  ;;  %v8522_v51 = vld [vmem:[#allocation6_spill] sm:$0xff] }
 0x22d   : > { %8517 = vst [vmem:[#allocation2_spill] sm:$0xff] %v7352_v5 }
 0x22e   : > { %6288 = vmatmul.msk.bf16.gmra.mxu0 %vm663_vm3, %v3769_v8  ;;  %v1287_v32 = vpop.f32.mrf.mxu2  ;;  %v1709_v53 = vpop.f32.mrf.mxu3  ;;  %v3349_v8 = vrot.slane %v3347_v38, 1 }
 0x22f   : > { %v1350_v57 = vadd.f32 %v1287_v32, %v1028_v0  ;;  %v1029_v41 = vpop.f32.mrf.mxu1 }
 0x230   : > { %v1030_v49 = vadd.f32 %v1029_v41, %v8520_v20  ;;  %v3771_v41 = vsel %vm1058_vm4, %v3768_v63, %v3770_v15  ;;  %v4271_v63 = vld [vmem:[%s8482_s4 + $0x24] sm:$0xf] }
 0x231   : > { %v1772_v44 = vadd.f32 %v1709_v53, %v1350_v57  ;;  %v6385_v57 = vld [vmem:[%s6620_s10 + $0x38] sm:$0xff]  ;;  %4414 = vperm.xlu0 %6474, %v4271_v63  }
 0x233   : > { %v2333_v34 = vpop.f32.mrf.mxu0  ;;  %v7368_v18 = vadd.f32 %v2331_v29, %v1772_v44  ;;  %v4267_v29 = vld [vmem:[%s8482_s4 + $0x14] sm:$0xf]  ;;  %v3350_v44 = vsel %vm466_vm2, %v3345_v46, %v3349_v8 }
 0x234   : > { %4378 = vperm.xlu2 %6476, %v4267_v29  }
 0x235   : > { %8519 = vst [vmem:[#allocation3_spill] sm:$0xff] %v7368_v18  ;;  %v6386_v18 = vld [vmem:[%s6620_s10 + $0x40] sm:$0xff] }
 0x236   : > { %v1289_v48 = vpop.f32.mrf.mxu2  ;;  %v1711_v32 = vpop.f32.mrf.mxu3 }
 0x237   : > { %v1351_v0 = vadd.f32 %v1289_v48, %v1030_v49  ;;  %v1032_v53 = vpop.f32.mrf.mxu1 }
 0x238   : > { %v1033_v38 = vadd.f32 %v1032_v53, %v8522_v51 }
 0x239   : > { %v1773_v14 = vadd.f32 %v1711_v32, %v1351_v0  ;;  %v3351_v0 = vshrl.u32 %v7357_v47, 16  ;;  %v3355_v32 = vshll.u32 %v7387_v50, 16 }
 0x23a   : > { %6026 = vmatmul.msk.bf16.gmra.mxu1 %vm663_vm3, %v2420_v43  ;;  %v6490_v43 = vld [vmem:[%s6620_s10 + $0x3c] sm:$0xff] }
 0x23b   : > { %v2336_v19 = vpop.f32.mrf.mxu0  ;;  %6147 = vmatmul.msk.bf16.gmra.mxu2 %vm663_vm3, %v6385_v57  ;;  %v7382_v11 = vadd.f32 %v2333_v34, %v1773_v14  ;;  %6264 = vmatmul.msk.bf16.gmra.mxu3 %vm663_vm3, %v3350_v44  ;;  %v2421_v29 = vrot.slane %v6490_v43, 1  ;;  %v8524_v14 = vld [vmem:[#allocation7_spill] sm:$0xff]  ;;  %v3357_v51 = vrot.slane %v3355_v32, 1  ;;  %v7414_v43 = vld [vmem:[%s6620_s10 + $0x50] sm:$0xff] }
 0x23d   : > { %8521 = vst [vmem:[#allocation4_spill] sm:$0xff] %v7382_v11 }
 0x23e   : > { %6289 = vmatmul.msk.bf16.gmra.mxu0 %vm663_vm3, %v3771_v41  ;;  %v1292_v20 = vpop.f32.mrf.mxu2  ;;  %v1714_v46 = vpop.f32.mrf.mxu3  ;;  %v3353_v41 = vor.u32 %v3351_v0, %v3349_v8 }
 0x23f   : > { %v1352_v49 = vadd.f32 %v1292_v20, %v1033_v38  ;;  %v1034_v48 = vpop.f32.mrf.mxu1 }
 0x240   : > { %v1035_v44 = vadd.f32 %v1034_v48, %v8524_v14 }
 0x241   : > { %v1774_v34 = vadd.f32 %v1714_v46, %v1352_v49  ;;  %v3772_v49 = vrot.slane %v7387_v50, 1  ;;  %v2422_v46 = vsel %vm1058_vm4, %v2419_v52, %v2421_v29  ;;  %v8526_v52 = vld [vmem:[#allocation8_spill] sm:$0xff] }
 0x243   : > { %v2338_v57 = vpop.f32.mrf.mxu0  ;;  %v7395_v53 = vadd.f32 %v2336_v19, %v1774_v34  ;;  %v4272_v19 = vld [vmem:[%s8482_s4 + $0x28] sm:$0xf]  ;;  %v3358_v34 = vsel %vm466_vm2, %v3353_v41, %v3357_v51  ;;  %v3773_v48 = vsel %vm1058_vm4, %v3770_v15, %v3772_v49 }
 0x244   : > { %4423 = vperm.xlu1 %6475, %v4272_v19  }
 0x245   : > { %8523 = vst [vmem:[#allocation5_spill] sm:$0xff] %v7395_v53  ;;  %v6387_v53 = vld [vmem:[%s6620_s10 + $0x48] sm:$0xff] }
 0x246   : > { %v1294_v38 = vpop.f32.mrf.mxu2  ;;  %v1716_v11 = vpop.f32.mrf.mxu3 }
 0x247   : > { %v1353_v20 = vadd.f32 %v1294_v38, %v1035_v44  ;;  %v1037_v47 = vpop.f32.mrf.mxu1  ;;  %v3363_v38 = vshll.u32 %v7414_v43, 16 }
 0x248   : > { %v1038_v32 = vadd.f32 %v1037_v47, %v8526_v52 }
 0x249   : > { %v1775_v63 = vadd.f32 %v1716_v11, %v1353_v20  ;;  %v3365_v52 = vrot.slane %v3363_v38, 1 }
 0x24a   : > { %6027 = vmatmul.msk.bf16.gmra.mxu1 %vm663_vm3, %v2422_v46  ;;  %v6491_v46 = vld [vmem:[%s6620_s10 + $0x44] sm:$0xff] }
 0x24b   : > { %v2341_v8 = vpop.f32.mrf.mxu0  ;;  %6148 = vmatmul.msk.bf16.gmra.mxu2 %vm663_vm3, %v6386_v18  ;;  %v7409_v0 = vadd.f32 %v2338_v57, %v1775_v63  ;;  %6265 = vmatmul.msk.bf16.gmra.mxu3 %vm663_vm3, %v3358_v34  ;;  %v4270_v18 = vld [vmem:[%s8482_s4 + $0x20] sm:$0xf]  ;;  %v3359_v57 = vshrl.u32 %v7387_v50, 16  ;;  %v2423_v19 = vrot.slane %v6491_v46, 1  ;;  %v7441_v46 = vld [vmem:[%s6620_s10 + $0x58] sm:$0xff] }
 0x24c   : > { %4405 = vperm.xlu2 %6476, %v4270_v18   ;;  %v8528_v63 = vld [vmem:[#allocation10_spill] sm:$0xff] }
 0x24d   : > { %8525 = vst [vmem:[#allocation6_spill] sm:$0xff] %v7409_v0 }
 0x24e   : > { %6290 = vmatmul.msk.bf16.gmra.mxu0 %vm663_vm3, %v3773_v48  ;;  %v1297_v11 = vpop.f32.mrf.mxu2  ;;  %v1719_v44 = vpop.f32.mrf.mxu3  ;;  %v3361_v48 = vor.u32 %v3359_v57, %v3357_v51 }
 0x24f   : > { %v1354_v14 = vadd.f32 %v1297_v11, %v1038_v32  ;;  %v1039_v41 = vpop.f32.mrf.mxu1 }
 0x250   : > { %v1040_v34 = vadd.f32 %v1039_v41, %v8528_v63 }
 0x251   : > { %v1776_v15 = vadd.f32 %v1719_v44, %v1354_v14  ;;  %v3774_v14 = vrot.slane %v7414_v43, 1  ;;  %v2424_v44 = vsel %vm1058_vm4, %v2421_v29, %v2423_v19  ;;  %v8530_v29 = vld [vmem:[#allocation12_spill] sm:$0xff] }
 0x253   : > { %v2343_v20 = vpop.f32.mrf.mxu0  ;;  %v7422_v47 = vadd.f32 %v2341_v8, %v1776_v15  ;;  %v4274_v8 = vld [vmem:[%s8482_s4 + $0x30] sm:$0xf]  ;;  %v3366_v15 = vsel %vm466_vm2, %v3361_v48, %v3365_v52  ;;  %v3775_v41 = vsel %vm1058_vm4, %v3772_v49, %v3774_v14 }
 0x254   : > { %4441 = vperm.xlu0 %6474, %v4274_v8  }
 0x255   : > { %8527 = vst [vmem:[#allocation7_spill] sm:$0xff] %v7422_v47  ;;  %v6388_v47 = vld [vmem:[%s6620_s10 + $0x50] sm:$0xff] }
 0x256   : > { %v1299_v32 = vpop.f32.mrf.mxu2  ;;  %v1721_v0 = vpop.f32.mrf.mxu3 }
 0x257   : > { %v1355_v11 = vadd.f32 %v1299_v32, %v1040_v34  ;;  %v1042_v50 = vpop.f32.mrf.mxu1  ;;  %v3371_v32 = vshll.u32 %v7441_v46, 16 }
 0x258   : > { %v1043_v38 = vadd.f32 %v1042_v50, %v8530_v29 }
 0x259   : > { %v1777_v18 = vadd.f32 %v1721_v0, %v1355_v11  ;;  %v3373_v29 = vrot.slane %v3371_v32, 1 }
 0x25a   : > { %6028 = vmatmul.msk.bf16.gmra.mxu1 %vm663_vm3, %v2424_v44  ;;  %v6492_v44 = vld [vmem:[%s6620_s10 + $0x4c] sm:$0xff] }
 0x25b   : > { %v2346_v51 = vpop.f32.mrf.mxu0  ;;  %6149 = vmatmul.msk.bf16.gmra.mxu2 %vm663_vm3, %v6387_v53  ;;  %v7436_v57 = vadd.f32 %v2343_v20, %v1777_v18  ;;  %6266 = vmatmul.msk.bf16.gmra.mxu3 %vm663_vm3, %v3366_v15  ;;  %v4275_v53 = vld [vmem:[%s8482_s4 + $0x34] sm:$0xf]  ;;  %v3367_v20 = vshrl.u32 %v7414_v43, 16  ;;  %v2425_v8 = vrot.slane %v6492_v44, 1  ;;  %v8532_v18 = vld [vmem:[#allocation14_spill] sm:$0xff] }
 0x25c   : > { %4450 = vperm.xlu1 %6475, %v4275_v53  }
 0x25d   : > { %8529 = vst [vmem:[#allocation8_spill] sm:$0xff] %v7436_v57 }
 0x25e   : > { %6291 = vmatmul.msk.bf16.gmra.mxu0 %vm663_vm3, %v3775_v41  ;;  %v1302_v0 = vpop.f32.mrf.mxu2  ;;  %v1724_v34 = vpop.f32.mrf.mxu3  ;;  %v3369_v41 = vor.u32 %v3367_v20, %v3365_v52 }
 0x25f   : > { %v1356_v63 = vadd.f32 %v1302_v0, %v1043_v38  ;;  %v1044_v48 = vpop.f32.mrf.mxu1 }
 0x260   : > { %v1045_v15 = vadd.f32 %v1044_v48, %v8532_v18 }
 0x261   : > { %v1778_v49 = vadd.f32 %v1724_v34, %v1356_v63  ;;  %v3776_v63 = vrot.slane %v7441_v46, 1  ;;  %v2426_v34 = vsel %vm1058_vm4, %v2423_v19, %v2425_v8  ;;  %v8534_v19 = vld [vmem:[#allocation16_spill] sm:$0xff] }
 0x263   : > { %v2348_v11 = vpop.f32.mrf.mxu0  ;;  %v7449_v50 = vadd.f32 %v2346_v51, %v1778_v49  ;;  %v4273_v51 = vld [vmem:[%s8482_s4 + $0x2c] sm:$0xf]  ;;  %v3374_v49 = vsel %vm466_vm2, %v3369_v41, %v3373_v29  ;;  %v3777_v48 = vsel %vm1058_vm4, %v3774_v14, %v3776_v63 }
 0x264   : > { %4432 = vperm.xlu2 %6476, %v4273_v51   ;;  %v4317_v14 = vld [vmem:[%s7256_s27 + $0xc] sm:$0x1] }
 0x265   : > { %8531 = vst [vmem:[#allocation10_spill] sm:$0xff] %v7449_v50 }
 0x266   : > { %v1304_v38 = vpop.f32.mrf.mxu2  ;;  %v1726_v57 = vpop.f32.mrf.mxu3 }
 0x267   : > { %v1357_v0 = vadd.f32 %v1304_v38, %v1045_v15  ;;  %v1047_v43 = vpop.f32.mrf.mxu1  ;;  %v4318_v38 = vsel %vm7472_vm9, 0, %v4317_v14  ;;  %v8541_v14 = vld [vmem:[#allocation18_spill] sm:$0xff] }
 0x268   : > { %v1048_v32 = vadd.f32 %v1047_v43, %v8534_v19  ;;  %4319 = vst [vmem:[%s7256_s27 + $0xc] sm:$0x1] %v4318_v38 }
 0x269   : > { %v1779_v53 = vadd.f32 %v1726_v57, %v1357_v0  ;;  %v7468_v57 = vld [vmem:[%s6620_s10 + $0x60] sm:$0xff] }
 0x26a   : > { %6029 = vmatmul.msk.bf16.gmra.mxu1 %vm663_vm3, %v2426_v34  ;;  %v4277_v34 = vld [vmem:[%s8482_s4 + $0x3c] sm:$0xf] }
 0x26b   : > { %v2351_v52 = vpop.f32.mrf.mxu0  ;;  %6150 = vmatmul.msk.bf16.gmra.mxu2 %vm663_vm3, %v6388_v47  ;;  %v7463_v20 = vadd.f32 %v2348_v11, %v1779_v53  ;;  %6267 = vmatmul.msk.bf16.gmra.mxu3 %vm663_vm3, %v3374_v49  ;;  %v8535_v47 = vmov 0  ;;  %v4323_v11 = vld [vmem:[%s7256_s27 + $0xcc] sm:$0xf]  ;;  %v3375_v53 = vshrl.u32 %v7441_v46, 16  ;;  %v3379_v49 = vshll.u32 %v7468_v57, 16 }
 0x26c   : > { %v8536_v47 = vsel %vm7472_vm9, 4294967295, %v8535_v47  ;;  %v4324_v43 = vsel %vm7479_vm10, 0, %v4323_v11  ;;  %4468 = vperm.xlu0 %6474, %v4277_v34   ;;  %v3778_v46 = vrot.slane %v7468_v57, 1 }
 0x26d   : > { %8533 = vst [vmem:[#allocation12_spill] sm:$0xff] %v7463_v20  ;;  %v3377_v11 = vor.u32 %v3375_v53, %v3373_v29  ;;  %v7513_v53 = vld [vmem:[%s6620_s10 + $0x68] sm:$0xff] }
 0x26e   : > { %6292 = vmatmul.msk.bf16.gmra.mxu0 %vm663_vm3, %v3777_v48  ;;  %v1307_v44 = vpop.f32.mrf.mxu2  ;;  %8537 = vst [vmem:[#allocation14_spill] sm:$0xff] %v8536_v47  ;;  %v1729_v15 = vpop.f32.mrf.mxu3  ;;  %v3381_v47 = vrot.slane %v3379_v49, 1  ;;  %v8544_v41 = vrot.slane %v7513_v53, 1 }
 0x26f   : > { %v1358_v18 = vadd.f32 %v1307_v44, %v1048_v32  ;;  %v1049_v0 = vpop.f32.mrf.mxu1  ;;  %4325 = vst [vmem:[%s7256_s27 + $0xcc] sm:$0xf] %v4324_v43  ;;  %v6493_v32 = vld [vmem:[%s6620_s10 + $0x54] sm:$0xff] }
 0x270   : > { %v2427_v44 = vrot.slane %v6493_v32, 1  ;;  %v1050_v38 = vadd.f32 %v1049_v0, %v8541_v14  ;;  %v6541_v32 = vmov 839922192  }
 0x271   : > { %v1780_v51 = vadd.f32 %v1729_v15, %v1358_v18  ;;  %v6389_v18 = vld [vmem:[%s6620_s10 + $0x58] sm:$0xff]  ;;  %v4337_v14 = vunpack.c.l.s4 %v6541_v32 }
 0x272   : > { %v2428_v43 = vsel %vm1058_vm4, %v2425_v8, %v2427_v44 }
 0x273   : > { %v2353_v48 = vpop.f32.mrf.mxu0  ;;  %v7494_v19 = vadd.f32 %v2351_v52, %v1780_v51  ;;  %v4278_v52 = vld [vmem:[%s8482_s4 + $0x40] sm:$0xf]  ;;  %v3382_v51 = vsel %vm466_vm2, %v3377_v11, %v3381_v47  ;;  %v3383_v11 = vshrl.u32 %v7468_v57, 16 }
 0x274   : > { %4477 = vperm.xlu1 %6475, %v4278_v52  }
 0x275   : > { %8540 = vst [vmem:[#allocation16_spill] sm:$0xff] %v7494_v19  ;;  %v8485_v19 = vrot.slane %v7513_v53, 1 }
 0x276   : > { %v1309_v20 = vpop.f32.mrf.mxu2  ;;  %v1731_v5 = vpop.f32.mrf.mxu3 }
 0x277   : > { %v1359_v50 = vadd.f32 %v1309_v20, %v1050_v38  ;;  %v2543_v15 = vpop.f32.mrf.mxu1  ;;  %v3779_v20 = vsel %vm1058_vm4, %v3776_v63, %v3778_v46  ;;  %v4276_v63 = vld [vmem:[%s8482_s4 + $0x38] sm:$0xf] }
 0x278   : > { %v2663_v8 = vadd.f32 %v2543_v15, %v6992_v30  ;;  %v7522_v30 = vld [vmem:[%s8480_s2] ss:$0 sm:$0xff]  ;;  %4459 = vperm.xlu2 %6476, %v4276_v63   ;;  %v4334_v15 = vpop.permute.xlu0 %4333 }
 0x279   : > { %v1781_v34 = vadd.f32 %v1731_v5, %v1359_v50 }
 0x27a   : > { %6030 = vmatmul.msk.bf16.gmra.mxu1 %vm663_vm3, %v2428_v43 }
 0x27b   : > { %v3894_v29 = vpop.f32.mrf.mxu0  ;;  %6151 = vmatmul.msk.bf16.gmra.mxu2 %vm663_vm3, %v6389_v18  ;;  %v7508_v0 = vadd.f32 %v2353_v48, %v1781_v34  ;;  %6268 = vmatmul.msk.bf16.gmra.mxu3 %vm663_vm3, %v3382_v51  ;;  %v3387_v18 = vshll.u32 %v7513_v53, 16  ;;  %v7526_v34 = vunpack.c.0.s8 %v4337_v14  ;;  %v7531_v51 = vld [vmem:[%s8481_s3] ss:$0 sm:$0xff] }
 0x27d   : > { %8542 = vst [vmem:[#allocation18_spill] sm:$0xff] %v7508_v0  ;;  %v6390_v0 = vld [vmem:[%s6620_s10 + $0x60] sm:$0xff] }
 0x27e   : > { %6293 = vmatmul.msk.bf16.gmra.mxu0 %vm663_vm3, %v3779_v20  ;;  %v2965_v5 = vpop.f32.mrf.mxu2  ;;  %v3587_v49 = vpop.f32.mrf.mxu3  ;;  %v7534_v20 = vld [vmem:[%s6620_s10 + $0x5c] sm:$0xff] }
 0x27f   : > { %v3085_v50 = vadd.f32 %v2965_v5, %v2663_v8  ;;  %v2545_v38 = vpop.f32.mrf.mxu1  ;;  %v8486_v8 = vrot.slane %v7534_v20, 1 }
 0x280   : > { %v2664_v5 = vadd.f32 %v2545_v38, %v7002_v4  ;;  %v4280_v4 = vld [vmem:[%s8482_s4 + $0x48] sm:$0xf] }
 0x281   : > { %v3707_v48 = vadd.f32 %v3587_v49, %v3085_v50  ;;  %v3385_v50 = vor.u32 %v3383_v11, %v3381_v47  ;;  %v3389_v49 = vrot.slane %v3387_v18, 1  ;;  %4495 = vperm.xlu0 %6474, %v4280_v4  }
 0x283   : > { %v4014_v43 = vadd.f32 %v3894_v29, %v3707_v48  ;;  %v3896_v52 = vpop.f32.mrf.mxu0  ;;  %v4339_v48 = vperm.slane %v4334_v15, %v7526_v34  ;;  %v3390_v11 = vsel %vm466_vm2, %v3385_v50, %v3389_v49 }
 0x285   : > { %v4066_v57 = vmul.f32 %v7522_v30, %v4014_v43  ;;  %v2430_v43 = vsel %vm1058_vm4, %v2427_v44, %v8486_v8  ;;  %v3781_v44 = vsel %vm1058_vm4, %v3778_v46, %v8485_v19  ;;  %v7571_v19 = vld [vmem:[%s6620_s10 + $0x64] sm:$0xff] }
 0x286   : > { %v2967_v32 = vpop.f32.mrf.mxu2  ;;  %v3589_v63 = vpop.f32.mrf.mxu3  ;;  %v2431_v8 = vrot.slane %v7571_v19, 1 }
 0x287   : > { %v3086_v29 = vadd.f32 %v2967_v32, %v2664_v5  ;;  %v4118_v14 = vadd.f32 %v7531_v51, %v4066_v57  ;;  %v2548_v37 = vpop.f32.mrf.mxu1  ;;  %v4811_v57 = vunpack.c.l.bf16 %v4339_v48  ;;  %v4343_v32 = vpop.permute.xlu0 %4342 }
 0x288   : > { %v4348_v46 = vperm.slane %v4343_v32, %v7526_v34 }
 0x289   : > { %v3708_v47 = vadd.f32 %v3589_v63, %v3086_v29  ;;  %v4166_v38 = vmax.f32 %v4118_v14, 0.0  ;;  %v7557_v29 = vld [vmem:[%s6620_s10 + $0x70] sm:$0xff] }
 0x28a   : > { %6031 = vmatmul.msk.bf16.gmra.mxu1 %vm663_vm3, %v2430_v43  ;;  %v4812_v32 = vunpack.c.l.bf16 %v4348_v46  ;;  %v8547_v19 = vrot.slane %v7557_v29, 1 }
 0x28b   : > { %v4015_v18 = vadd.f32 %v3896_v52, %v3708_v47  ;;  %v4214_v15 = vpack.c.bf16 %v4166_v38, %v4166_v38  ;;  %v3899_v5 = vpop.f32.mrf.mxu0  ;;  %6152 = vmatmul.msk.bf16.gmra.mxu2 %vm663_vm3, %v6390_v0  ;;  %6269 = vmatmul.msk.bf16.gmra.mxu3 %vm663_vm3, %v3390_v11  ;;  %v2665_v52 = vadd.f32 %v2548_v37, %v7008_v62  ;;  %v3391_v38 = vshrl.u32 %v7513_v53, 16  ;;  %v4281_v62 = vld [vmem:[%s8482_s4 + $0x4c] sm:$0xf] }
 0x28c   : > { %v3395_v11 = vshll.u32 %v7557_v29, 16  ;;  %4504 = vperm.xlu1 %6475, %v4281_v62   ;;  %v5437_v62 = vld [vmem:[%s7256_s27 + $0xc] sm:$0xf] }
 0x28d   : > { %v4067_v50 = vmul.f32 %v7522_v30, %v4015_v18  ;;  %v4763_v63 = vunpack.c.l.bf16 %v4214_v15  ;;  %v3393_v42 = vor.u32 %v3391_v38, %v3389_v49 }
 0x28e   : > { %6294 = vmatmul.msk.bf16.gmra.mxu0 %vm663_vm3, %v3781_v44  ;;  %v2970_v14 = vpop.f32.mrf.mxu2  ;;  %v3592_v0 = vpop.f32.mrf.mxu3  ;;  %v7574_v1 = vrot.slane %v3395_v11, 1  ;;  %v8543_v11 = vrot.slane %v7534_v20, 1 }
 0x28f   : > { %v4859_v48 = vmul.f32 %v4811_v57, %v4763_v63  ;;  %v3087_v43 = vadd.f32 %v2970_v14, %v2665_v52  ;;  %v4119_v4 = vadd.f32 %v7531_v51, %v4067_v50  ;;  %v2550_v47 = vpop.f32.mrf.mxu1  ;;  %v4352_v57 = vpop.permute.xlu1 %4351 }
 0x290   : > { %v2666_v14 = vadd.f32 %v2550_v47, %v7018_v33  ;;  %v6391_v33 = vld [vmem:[%s6620_s10 + $0x68] sm:$0xff]  ;;  %v8487_v47 = vrot.slane %v7557_v29, 1  ;;  %v4357_v38 = vperm.slane %v4352_v57, %v7526_v34 }
 0x291   : > { %v4907_v37 = vpack.c.bf16 %v4859_v48, %v4859_v48  ;;  %v3709_v18 = vadd.f32 %v3592_v0, %v3087_v43  ;;  %v4167_v15 = vmax.f32 %v4119_v4, 0.0 }
 0x293   : > { %v4958_v44 = vshrl.u32 %v4907_v37, 16  ;;  %v4016_v50 = vadd.f32 %v3899_v5, %v3709_v18  ;;  %v4215_v52 = vpack.c.bf16 %v4167_v15, %v4167_v15  ;;  %v3901_v63 = vpop.f32.mrf.mxu0  ;;  %v4961_v43 = vshll.u32 %v4907_v37, 16 }
 0x294   : > { %v2432_v37 = vsel %vm1058_vm4, %v8543_v11, %v2431_v8 }
 0x295   : > { %v4960_v48 = vrot.slane %v4958_v44, 7  ;;  %v4068_v0 = vmul.f32 %v7522_v30, %v4016_v50  ;;  %v4764_v4 = vunpack.c.l.bf16 %v4215_v52  ;;  %v4279_v44 = vld [vmem:[%s8482_s4 + $0x44] sm:$0xf] }
 0x296   : > { %v2972_v5 = vpop.f32.mrf.mxu2  ;;  %v3594_v10 = vpop.f32.mrf.mxu3  ;;  %4486 = vperm.xlu2 %6476, %v4279_v44  }
 0x297   : > { %v4963_v18 = vor.u32 %v4961_v43, %v4960_v48  ;;  %v4860_v46 = vmul.f32 %v4812_v32, %v4764_v4  ;;  %v3088_v15 = vadd.f32 %v2972_v5, %v2666_v14  ;;  %v2553_v7 = vpop.f32.mrf.mxu1  ;;  %v4120_v49 = vadd.f32 %v7531_v51, %v4068_v0  ;;  %v4361_v4 = vpop.permute.xlu1 %4360 }
 0x298   : > { %v3398_v14 = vsel %vm466_vm2, %v3393_v42, %v7574_v1  ;;  %v4964_v11 = vrot.slane %v4960_v48, 4  ;;  %v4370_v48 = vpop.permute.xlu2 %4369 }
 0x299   : > { %v5438_v50 = vsel %vm7479_vm10, %v4963_v18, %v5437_v62  ;;  %v4908_v52 = vpack.c.bf16 %v4860_v46, %v4860_v46  ;;  %v3710_v32 = vadd.f32 %v3594_v10, %v3088_v15  ;;  %v4168_v57 = vmax.f32 %v4120_v49, 0.0  ;;  %v7606_v15 = vld [vmem:[%s6620_s10 + $0x78] sm:$0xff] }
 0x29a   : > { %5439 = vst [vmem:[%s7256_s27 + $0xc] sm:$0xf] %v5438_v50  ;;  %6032 = vmatmul.msk.bf16.gmra.mxu1 %vm663_vm3, %v2432_v37  ;;  %v3783_v10 = vsel %vm1058_vm4, %v8544_v41, %v8487_v47  ;;  %v4813_v62 = vunpack.c.l.bf16 %v4357_v38  ;;  %v2667_v46 = vadd.f32 %v2553_v7, %v7024_v23  ;;  %v4366_v38 = vperm.slane %v4361_v4, %v7526_v34 }
 0x29b   : > { %v4966_v20 = vshrl.u32 %v4908_v52, 16  ;;  %v4017_v43 = vadd.f32 %v3901_v63, %v3710_v32  ;;  %v3904_v0 = vpop.f32.mrf.mxu0  ;;  %6153 = vmatmul.msk.bf16.gmra.mxu2 %vm663_vm3, %v6391_v33  ;;  %v4216_v42 = vpack.c.bf16 %v4168_v57, %v4168_v57  ;;  %6270 = vmatmul.msk.bf16.gmra.mxu3 %vm663_vm3, %v3398_v14  ;;  %v4969_v18 = vshll.u32 %v4908_v52, 16  ;;  %v4283_v14 = vld [vmem:[%s8482_s4 + $0x54] sm:$0xf] }
 0x29c   : > { %v3399_v32 = vshrl.u32 %v7557_v29, 16  ;;  %v3403_v41 = vshll.u32 %v7606_v15, 16  ;;  %4522 = vperm.xlu0 %6474, %v4283_v14  }
 0x29d   : > { %v4968_v5 = vrot.slane %v4966_v20, 7  ;;  %v4069_v63 = vmul.f32 %v7522_v30, %v4017_v43  ;;  %v4765_v53 = vunpack.c.l.bf16 %v4216_v42 }
 0x29e   : > { %6295 = vmatmul.msk.bf16.gmra.mxu0 %vm663_vm3, %v3783_v10  ;;  %v2975_v49 = vpop.f32.mrf.mxu2  ;;  %v3597_v50 = vpop.f32.mrf.mxu3 }
 0x29f   : > { %v4971_v37 = vor.u32 %v4969_v18, %v4968_v5  ;;  %v3089_v44 = vadd.f32 %v2975_v49, %v2667_v46  ;;  %v4121_v23 = vadd.f32 %v7531_v51, %v4069_v63  ;;  %v4861_v7 = vmul.f32 %v4813_v62, %v4765_v53  ;;  %v2555_v52 = vpop.f32.mrf.mxu1  ;;  %v7627_v46 = vld [vmem:[%s6620_s10 + $0x6c] sm:$0xff] }
 0x2a0   : > { %v4814_v62 = vunpack.c.l.bf16 %v4366_v38  ;;  %v2433_v53 = vrot.slane %v7627_v46, 1  ;;  %v3401_v49 = vor.u32 %v3399_v32, %v7574_v1  ;;  %v3784_v38 = vrot.slane %v7606_v15, 1  ;;  %v6392_v32 = vld [vmem:[%s6620_s10 + $0x70] sm:$0xff] }
 0x2a1   : > { %v4972_v57 = vsel %vm7610_vm12, %v4964_v11, %v4971_v37  ;;  %v3711_v20 = vadd.f32 %v3597_v50, %v3089_v44  ;;  %v4169_v43 = vmax.f32 %v4121_v23, 0.0  ;;  %v4909_v10 = vpack.c.bf16 %v4861_v7, %v4861_v7 }
 0x2a2   : > { %5440 = vst.msk [vmem:[%s7256_s27 + $0x10] sm:$0xf] %vm4310_vm5, %v4972_v57  ;;  %v2668_v37 = vadd.f32 %v2555_v52, %v7034_v55  ;;  %v7633_v50 = vrot.slane %v3403_v41, 1  ;;  %v4375_v1 = vperm.slane %v4370_v48, %v7526_v34  ;;  %v2434_v52 = vsel %vm1058_vm4, %v2431_v8, %v2433_v53  ;;  %v4284_v41 = vld [vmem:[%s8482_s4 + $0x58] sm:$0xf] }
 0x2a3   : > { %v4018_v4 = vadd.f32 %v3904_v0, %v3711_v20  ;;  %v4217_v42 = vpack.c.bf16 %v4169_v43, %v4169_v43  ;;  %v3906_v18 = vpop.f32.mrf.mxu0  ;;  %v4975_v63 = vshrl.u32 %v4909_v10, 16  ;;  %v4978_v0 = vshll.u32 %v4909_v10, 16  ;;  %4531 = vperm.xlu1 %6475, %v4284_v41  }
 0x2a4   : > { %v3406_v48 = vsel %vm466_vm2, %v3401_v49, %v7633_v50  ;;  %v3785_v8 = vsel %vm1058_vm4, %v8547_v19, %v3784_v38  ;;  %v4379_v49 = vpop.permute.xlu2 %4378 }
 0x2a5   : > { %v4070_v11 = vmul.f32 %v7522_v30, %v4018_v4  ;;  %v4766_v44 = vunpack.c.l.bf16 %v4217_v42  ;;  %v4977_v23 = vrot.slane %v4975_v63, 7  ;;  %v4973_v4 = vrot.slane %v4968_v5, 4 }
 0x2a6   : > { %v2977_v7 = vpop.f32.mrf.mxu2  ;;  %v3599_v20 = vpop.f32.mrf.mxu3 }
 0x2a7   : > { %v4862_v14 = vmul.f32 %v4814_v62, %v4766_v44  ;;  %v3090_v57 = vadd.f32 %v2977_v7, %v2668_v37  ;;  %v4122_v43 = vadd.f32 %v7531_v51, %v4070_v11  ;;  %v4980_v47 = vor.u32 %v4978_v0, %v4977_v23  ;;  %v2558_v55 = vpop.f32.mrf.mxu1  ;;  %v7663_v7 = vld [vmem:[%s6620_s10 + $0x80] sm:$0xff] }
 0x2a8   : > { %v4815_v44 = vunpack.c.l.bf16 %v4375_v1  ;;  %v4982_v1 = vrot.slane %v4977_v23, 4 }
 0x2a9   : > { %v4910_v10 = vpack.c.bf16 %v4862_v14, %v4862_v14  ;;  %v3712_v42 = vadd.f32 %v3599_v20, %v3090_v57  ;;  %v4170_v62 = vmax.f32 %v4122_v43, 0.0  ;;  %v4981_v5 = vsel %vm7610_vm12, %v4973_v4, %v4980_v47 }
 0x2aa   : > { %5441 = vst.msk [vmem:[%s7256_s27 + $0x14] sm:$0xf] %vm4310_vm5, %v4981_v5  ;;  %6033 = vmatmul.msk.bf16.gmra.mxu1 %vm663_vm3, %v2434_v52  ;;  %v2669_v47 = vadd.f32 %v2558_v55, %v7040_v26  ;;  %v4384_v43 = vperm.slane %v4379_v49, %v7526_v34 }
 0x2ab   : > { %v4984_v63 = vshrl.u32 %v4910_v10, 16  ;;  %v4019_v11 = vadd.f32 %v3906_v18, %v3712_v42  ;;  %v4218_v37 = vpack.c.bf16 %v4170_v62, %v4170_v62  ;;  %v3909_v0 = vpop.f32.mrf.mxu0  ;;  %6154 = vmatmul.msk.bf16.gmra.mxu2 %vm663_vm3, %v6392_v32  ;;  %6271 = vmatmul.msk.bf16.gmra.mxu3 %vm663_vm3, %v3406_v48  ;;  %v4987_v14 = vshll.u32 %v4910_v10, 16  ;;  %v4282_v62 = vld [vmem:[%s8482_s4 + $0x50] sm:$0xf] }
 0x2ac   : > { %v3407_v10 = vshrl.u32 %v7606_v15, 16  ;;  %v3411_v42 = vshll.u32 %v7663_v7, 16  ;;  %4513 = vperm.xlu2 %6476, %v4282_v62  }
 0x2ad   : > { %v4986_v29 = vrot.slane %v4984_v63, 7  ;;  %v4071_v57 = vmul.f32 %v7522_v30, %v4019_v11  ;;  %v4767_v20 = vunpack.c.l.bf16 %v4218_v37  ;;  %v4816_v11 = vunpack.c.l.bf16 %v4384_v43 }
 0x2ae   : > { %6296 = vmatmul.msk.bf16.gmra.mxu0 %vm663_vm3, %v3785_v8  ;;  %v2980_v18 = vpop.f32.mrf.mxu2  ;;  %v3602_v26 = vpop.f32.mrf.mxu3 }
 0x2af   : > { %v4989_v32 = vor.u32 %v4987_v14, %v4986_v29  ;;  %v4863_v4 = vmul.f32 %v4815_v44, %v4767_v20  ;;  %v3091_v52 = vadd.f32 %v2980_v18, %v2669_v47  ;;  %v2560_v55 = vpop.f32.mrf.mxu1  ;;  %v4123_v41 = vadd.f32 %v7531_v51, %v4071_v57  ;;  %v4388_v44 = vpop.permute.xlu0 %4387  ;;  %v7679_v47 = vld [vmem:[%s6620_s10 + $0x74] sm:$0xff] }
 0x2b0   : > { %v2435_v14 = vrot.slane %v7679_v47, 1  ;;  %v3409_v57 = vor.u32 %v3407_v10, %v7633_v50  ;;  %v7683_v20 = vrot.slane %v3411_v42, 1  ;;  %v6393_v10 = vld [vmem:[%s6620_s10 + $0x78] sm:$0xff] }
 0x2b1   : > { %v4990_v48 = vsel %vm7610_vm12, %v4982_v1, %v4989_v32  ;;  %v4911_v23 = vpack.c.bf16 %v4863_v4, %v4863_v4  ;;  %v3713_v5 = vadd.f32 %v3602_v26, %v3091_v52  ;;  %v4171_v19 = vmax.f32 %v4123_v41, 0.0 }
 0x2b2   : > { %5442 = vst.msk [vmem:[%s7256_s27 + $0x18] sm:$0xf] %vm4310_vm5, %v4990_v48  ;;  %v2670_v4 = vadd.f32 %v2560_v55, %v7050_v27  ;;  %v4393_v52 = vperm.slane %v4388_v44, %v7526_v34  ;;  %v3786_v26 = vrot.slane %v7663_v7, 1  ;;  %v4991_v41 = vrot.slane %v4986_v29, 4  ;;  %v4286_v55 = vld [vmem:[%s8482_s4 + $0x60] sm:$0xf] }
 0x2b3   : > { %v4993_v8 = vshrl.u32 %v4911_v23, 16  ;;  %v4020_v63 = vadd.f32 %v3909_v0, %v3713_v5  ;;  %v3911_v37 = vpop.f32.mrf.mxu0  ;;  %v4219_v49 = vpack.c.bf16 %v4171_v19, %v4171_v19  ;;  %v4996_v1 = vshll.u32 %v4911_v23, 16  ;;  %4549 = vperm.xlu0 %6474, %v4286_v55   ;;  %v4287_v55 = vld [vmem:[%s8482_s4 + $0x64] sm:$0xf] }
 0x2b4   : > { %v2436_v27 = vsel %vm1058_vm4, %v2433_v53, %v2435_v14  ;;  %v4817_v53 = vunpack.c.l.bf16 %v4393_v52  ;;  %4558 = vperm.xlu1 %6475, %v4287_v55  }
 0x2b5   : > { %v4995_v18 = vrot.slane %v4993_v8, 7  ;;  %v4072_v32 = vmul.f32 %v7522_v30, %v4020_v63  ;;  %v4768_v0 = vunpack.c.l.bf16 %v4219_v49  ;;  %v3414_v63 = vsel %vm466_vm2, %v3409_v57, %v7683_v20  ;;  %v4397_v57 = vpop.permute.xlu1 %4396 }
 0x2b6   : > { %v2982_v43 = vpop.f32.mrf.mxu2  ;;  %v3604_v5 = vpop.f32.mrf.mxu3 }
 0x2b7   : > { %v4998_v62 = vor.u32 %v4996_v1, %v4995_v18  ;;  %v3092_v48 = vadd.f32 %v2982_v43, %v2670_v4  ;;  %v4124_v50 = vadd.f32 %v7531_v51, %v4072_v32  ;;  %v4864_v42 = vmul.f32 %v4816_v11, %v4768_v0  ;;  %v2563_v23 = vpop.f32.mrf.mxu1  ;;  %v7714_v4 = vld [vmem:[%s6620_s10 + $0x88] sm:$0xff] }
 0x2b8   : > { %v3787_v1 = vsel %vm1058_vm4, %v3784_v38, %v3786_v26  ;;  %v2671_v0 = vadd.f32 %v2563_v23, %v7056_v17  ;;  %v3415_v17 = vshrl.u32 %v7663_v7, 16  ;;  %v3419_v23 = vshll.u32 %v7714_v4, 16 }
 0x2b9   : > { %v4999_v29 = vsel %vm7610_vm12, %v4991_v41, %v4998_v62  ;;  %v3714_v19 = vadd.f32 %v3604_v5, %v3092_v48  ;;  %v4172_v8 = vmax.f32 %v4124_v50, 0.0  ;;  %v4912_v11 = vpack.c.bf16 %v4864_v42, %v4864_v42 }
 0x2ba   : > { %5443 = vst.msk [vmem:[%s7256_s27 + $0x1c] sm:$0xf] %vm4310_vm5, %v4999_v29  ;;  %6034 = vmatmul.msk.bf16.gmra.mxu1 %vm663_vm3, %v2436_v27  ;;  %v4402_v50 = vperm.slane %v4397_v57, %v7526_v34 }
 0x2bb   : > { %v4021_v46 = vadd.f32 %v3911_v37, %v3714_v19  ;;  %v4220_v44 = vpack.c.bf16 %v4172_v8, %v4172_v8  ;;  %v3914_v49 = vpop.f32.mrf.mxu0  ;;  %6155 = vmatmul.msk.bf16.gmra.mxu2 %vm663_vm3, %v6393_v10  ;;  %v5002_v32 = vshrl.u32 %v4912_v11, 16  ;;  %6272 = vmatmul.msk.bf16.gmra.mxu3 %vm663_vm3, %v3414_v63  ;;  %v5005_v41 = vshll.u32 %v4912_v11, 16 }
 0x2bc   : > { %v5000_v10 = vrot.slane %v4995_v18, 4 }
 0x2bd   : > { %v4073_v37 = vmul.f32 %v7522_v30, %v4021_v46  ;;  %v4769_v43 = vunpack.c.l.bf16 %v4220_v44  ;;  %v5004_v52 = vrot.slane %v5002_v32, 7  ;;  %v4818_v44 = vunpack.c.l.bf16 %v4402_v50  ;;  %v7732_v32 = vld [vmem:[%s6620_s10 + $0x7c] sm:$0xff] }
 0x2be   : > { %6297 = vmatmul.msk.bf16.gmra.mxu0 %vm663_vm3, %v3787_v1  ;;  %v2985_v62 = vpop.f32.mrf.mxu2  ;;  %v3607_v38 = vpop.f32.mrf.mxu3  ;;  %v2437_v57 = vrot.slane %v7732_v32, 1  ;;  %v4295_v32 = vld [vmem:[%s8482_s4 + $0x84] sm:$0xf] }
 0x2bf   : > { %v4865_v48 = vmul.f32 %v4817_v53, %v4769_v43  ;;  %v3093_v15 = vadd.f32 %v2985_v62, %v2671_v0  ;;  %v4125_v5 = vadd.f32 %v7531_v51, %v4073_v37  ;;  %v5007_v42 = vor.u32 %v5005_v41, %v5004_v52  ;;  %v2565_v27 = vpop.f32.mrf.mxu1 }
 0x2c0   : > { %v2672_v1 = vadd.f32 %v2565_v27, %v7066_v2  ;;  %v3417_v37 = vor.u32 %v3415_v17, %v7683_v20  ;;  %v7736_v0 = vrot.slane %v3419_v23, 1  ;;  %v6394_v27 = vld [vmem:[%s6620_s10 + $0x80] sm:$0xff]  ;;  %v2438_v23 = vsel %vm1058_vm4, %v2435_v14, %v2437_v57 }
 0x2c1   : > { %v4913_v29 = vpack.c.bf16 %v4865_v48, %v4865_v48  ;;  %v3715_v19 = vadd.f32 %v3607_v38, %v3093_v15  ;;  %v4173_v8 = vmax.f32 %v4125_v5, 0.0  ;;  %v5008_v63 = vsel %vm7610_vm12, %v5000_v10, %v5007_v42 }
 0x2c2   : > { %5444 = vst.msk [vmem:[%s7256_s27 + $0x20] sm:$0xf] %vm4310_vm5, %v5008_v63  ;;  %v3788_v38 = vrot.slane %v7714_v4, 1  ;;  %v5009_v5 = vrot.slane %v5004_v52, 4  ;;  %v4285_v52 = vld [vmem:[%s8482_s4 + $0x5c] sm:$0xf]  ;;  %v3422_v47 = vsel %vm466_vm2, %v3417_v37, %v7736_v0  ;;  %v4415_v37 = vpop.permute.xlu0 %4414 }
 0x2c3   : > { %v5011_v18 = vshrl.u32 %v4913_v29, 16  ;;  %v4022_v11 = vadd.f32 %v3914_v49, %v3715_v19  ;;  %v4221_v46 = vpack.c.bf16 %v4173_v8, %v4173_v8  ;;  %v3916_v53 = vpop.f32.mrf.mxu0  ;;  %v5014_v41 = vshll.u32 %v4913_v29, 16  ;;  %v4406_v49 = vpop.permute.xlu2 %4405  ;;  %v4290_v29 = vld [vmem:[%s8482_s4 + $0x70] sm:$0xf]  ;;  %v4289_v19 = vld [vmem:[%s8482_s4 + $0x6c] sm:$0xf]  ;;  %4540 = vperm.xlu2 %6476, %v4285_v52  }
 0x2c4   : > { %v4411_v17 = vperm.slane %v4406_v49, %v7526_v34  ;;  %4585 = vperm.xlu1 %6475, %v4290_v29   ;;  %4576 = vperm.xlu0 %6474, %v4289_v19   ;;  %v4292_v52 = vld [vmem:[%s8482_s4 + $0x78] sm:$0xf] }
 0x2c5   : > { %v5013_v43 = vrot.slane %v5011_v18, 7  ;;  %v4074_v62 = vmul.f32 %v7522_v30, %v4022_v11  ;;  %v4770_v48 = vunpack.c.l.bf16 %v4221_v46 }
 0x2c6   : > { %v2987_v15 = vpop.f32.mrf.mxu2  ;;  %v3609_v42 = vpop.f32.mrf.mxu3 }
 0x2c7   : > { %v5016_v2 = vor.u32 %v5014_v41, %v5013_v43  ;;  %v4866_v50 = vmul.f32 %v4818_v44, %v4770_v48  ;;  %v3094_v10 = vadd.f32 %v2987_v15, %v2672_v1  ;;  %v2568_v55 = vpop.f32.mrf.mxu1  ;;  %v4126_v20 = vadd.f32 %v7531_v51, %v4074_v62 }
 0x2c8   : > { %v3789_v1 = vsel %vm1058_vm4, %v3786_v26, %v3788_v38  ;;  %v4819_v62 = vunpack.c.l.bf16 %v4411_v17  ;;  %v2673_v15 = vadd.f32 %v2568_v55, %v7072_v6  ;;  %v4420_v26 = vperm.slane %v4415_v37, %v7526_v34  ;;  %v4293_v55 = vld [vmem:[%s8482_s4 + $0x7c] sm:$0xf]  ;;  %v7795_v37 = vld [vmem:[%s6620_s10 + $0x84] sm:$0xff] }
 0x2c9   : > { %v5017_v8 = vsel %vm7610_vm12, %v5009_v5, %v5016_v2  ;;  %v4914_v63 = vpack.c.bf16 %v4866_v50, %v4866_v50  ;;  %v3716_v18 = vadd.f32 %v3609_v42, %v3094_v10  ;;  %v4174_v14 = vmax.f32 %v4126_v20, 0.0  ;;  %v7776_v5 = vld [vmem:[%s6620_s10 + $0x90] sm:$0xff] }
 0x2ca   : > { %5445 = vst.msk [vmem:[%s7256_s27 + $0x24] sm:$0xf] %vm4310_vm5, %v5017_v8  ;;  %6035 = vmatmul.msk.bf16.gmra.mxu1 %vm663_vm3, %v2438_v23  ;;  %v5018_v50 = vrot.slane %v5013_v43, 4  ;;  %v3423_v6 = vshrl.u32 %v7714_v4, 16  ;;  %v3427_v8 = vshll.u32 %v7776_v5, 16 }
 0x2cb   : > { %v5020_v11 = vshrl.u32 %v4914_v63, 16  ;;  %v4023_v46 = vadd.f32 %v3916_v53, %v3716_v18  ;;  %v3919_v44 = vpop.f32.mrf.mxu0  ;;  %6156 = vmatmul.msk.bf16.gmra.mxu2 %vm663_vm3, %v6394_v27  ;;  %v4222_v41 = vpack.c.bf16 %v4174_v14, %v4174_v14  ;;  %6273 = vmatmul.msk.bf16.gmra.mxu3 %vm663_vm3, %v3422_v47  ;;  %v5023_v49 = vshll.u32 %v4914_v63, 16 }
 0x2cc   : > { %4612 = vperm.xlu1 %6475, %v4293_v55   ;;  %4603 = vperm.xlu0 %6474, %v4292_v52   ;;  %v4820_v14 = vunpack.c.l.bf16 %v4420_v26  ;;  %v4288_v52 = vld [vmem:[%s8482_s4 + $0x68] sm:$0xf] }
 0x2cd   : > { %v7771_v48 = vrot.slane %v5020_v11, 7  ;;  %v4075_v53 = vmul.f32 %v7522_v30, %v4023_v46  ;;  %v4771_v2 = vunpack.c.l.bf16 %v4222_v41  ;;  %v2439_v41 = vrot.slane %v7795_v37, 1  ;;  %4567 = vperm.xlu2 %6476, %v4288_v52  }
 0x2ce   : > { %6298 = vmatmul.msk.bf16.gmra.mxu0 %vm663_vm3, %v3789_v1  ;;  %v2990_v7 = vpop.f32.mrf.mxu2  ;;  %v3612_v27 = vpop.f32.mrf.mxu3 }
 0x2cf   : > { %v5025_v10 = vor.u32 %v5023_v49, %v7771_v48  ;;  %v3095_v42 = vadd.f32 %v2990_v7, %v2673_v15  ;;  %v4127_v20 = vadd.f32 %v7531_v51, %v4075_v53  ;;  %v4867_v17 = vmul.f32 %v4819_v62, %v4771_v2  ;;  %v2570_v23 = vpop.f32.mrf.mxu1  ;;  %v4424_v1 = vpop.permute.xlu1 %4423 }
 0x2d0   : > { %v3425_v62 = vor.u32 %v3423_v6, %v7736_v0  ;;  %v2674_v53 = vadd.f32 %v2570_v23, %v7082_v12  ;;  %v7801_v2 = vrot.slane %v3427_v8, 1  ;;  %v6395_v0 = vld [vmem:[%s6620_s10 + $0x88] sm:$0xff]  ;;  %v5027_v6 = vrot.slane %v7771_v48, 4 }
 0x2d1   : > { %v5026_v43 = vsel %vm7610_vm12, %v5018_v50, %v5025_v10  ;;  %v3717_v29 = vadd.f32 %v3612_v27, %v3095_v42  ;;  %v4175_v19 = vmax.f32 %v4127_v20, 0.0  ;;  %v4915_v63 = vpack.c.bf16 %v4867_v17, %v4867_v17 }
 0x2d2   : > { %5446 = vst.msk [vmem:[%s7256_s27 + $0x28] sm:$0xf] %vm4310_vm5, %v5026_v43  ;;  %v3790_v50 = vrot.slane %v7776_v5, 1  ;;  %v4429_v17 = vperm.slane %v4424_v1, %v7526_v34  ;;  %v2440_v55 = vsel %vm1058_vm4, %v2437_v57, %v2439_v41  ;;  %v4296_v43 = vld [vmem:[%s8482_s4 + $0x88] sm:$0xf]  ;;  %v3430_v8 = vsel %vm466_vm2, %v3425_v62, %v7801_v2 }
 0x2d3   : > { %v4024_v18 = vadd.f32 %v3919_v44, %v3717_v29  ;;  %v4223_v47 = vpack.c.bf16 %v4175_v19, %v4175_v19  ;;  %v3921_v11 = vpop.f32.mrf.mxu0  ;;  %v5029_v46 = vshrl.u32 %v4915_v63, 16  ;;  %v5032_v7 = vshll.u32 %v4915_v63, 16 }
 0x2d4   : > { %v3791_v63 = vsel %vm1058_vm4, %v3788_v38, %v3790_v50  ;;  %4639 = vperm.xlu1 %6475, %v4296_v43   ;;  %4630 = vperm.xlu0 %6474, %v4295_v32   ;;  %v4821_v1 = vunpack.c.l.bf16 %v4429_v17 }
 0x2d5   : > { %v4076_v49 = vmul.f32 %v7522_v30, %v4024_v18  ;;  %v4772_v15 = vunpack.c.l.bf16 %v4223_v47  ;;  %v5031_v44 = vrot.slane %v5029_v46, 7  ;;  %v7832_v18 = vld [vmem:[%s6620_s10 + $0x98] sm:$0xff] }
 0x2d6   : > { %v2992_v26 = vpop.f32.mrf.mxu2  ;;  %v3614_v27 = vpop.f32.mrf.mxu3 }
 0x2d7   : > { %v4868_v10 = vmul.f32 %v4820_v14, %v4772_v15  ;;  %v3096_v42 = vadd.f32 %v2992_v26, %v2674_v53  ;;  %v4128_v20 = vadd.f32 %v7531_v51, %v4076_v49  ;;  %v5034_v12 = vor.u32 %v5032_v7, %v5031_v44  ;;  %v2573_v23 = vpop.f32.mrf.mxu1  ;;  %v4433_v49 = vpop.permute.xlu2 %4432 }
 0x2d8   : > { %v2675_v4 = vadd.f32 %v2573_v23, %v7088_v35  ;;  %v4438_v26 = vperm.slane %v4433_v49, %v7526_v34  ;;  %v4291_v23 = vld [vmem:[%s8482_s4 + $0x74] sm:$0xf] }
 0x2d9   : > { %v4916_v29 = vpack.c.bf16 %v4868_v10, %v4868_v10  ;;  %v3718_v19 = vadd.f32 %v3614_v27, %v3096_v42  ;;  %v4176_v48 = vmax.f32 %v4128_v20, 0.0  ;;  %v5035_v57 = vsel %vm7610_vm12, %v5027_v6, %v5034_v12  ;;  %4594 = vperm.xlu2 %6476, %v4291_v23   ;;  %v4301_v23 = vld [vmem:[%s8482_s4 + $0x9c] sm:$0xf] }
 0x2da   : > { %5447 = vst.msk [vmem:[%s7256_s27 + $0x2c] sm:$0xf] %vm4310_vm5, %v5035_v57  ;;  %6036 = vmatmul.msk.bf16.gmra.mxu1 %vm663_vm3, %v2440_v55  ;;  %v3431_v10 = vshrl.u32 %v7776_v5, 16  ;;  %v3435_v42 = vshll.u32 %v7832_v18, 16  ;;  %v5036_v27 = vrot.slane %v5031_v44, 4  ;;  %v4822_v32 = vunpack.c.l.bf16 %v4438_v26 }
 0x2db   : > { %v5038_v47 = vshrl.u32 %v4916_v29, 16  ;;  %v4025_v14 = vadd.f32 %v3921_v11, %v3718_v19  ;;  %v4224_v46 = vpack.c.bf16 %v4176_v48, %v4176_v48  ;;  %v3924_v62 = vpop.f32.mrf.mxu0  ;;  %6157 = vmatmul.msk.bf16.gmra.mxu2 %vm663_vm3, %v6395_v0  ;;  %6274 = vmatmul.msk.bf16.gmra.mxu3 %vm663_vm3, %v3430_v8  ;;  %v5041_v53 = vshll.u32 %v4916_v29, 16  ;;  %v4299_v55 = vld [vmem:[%s8482_s4 + $0x94] sm:$0xf]  ;;  %v4298_v44 = vld [vmem:[%s8482_s4 + $0x90] sm:$0xf] }
 0x2dc   : > { %4666 = vperm.xlu1 %6475, %v4299_v55   ;;  %4657 = vperm.xlu0 %6474, %v4298_v44   ;;  %v7864_v49 = vrot.slane %v3435_v42, 1 }
 0x2dd   : > { %v5040_v38 = vrot.slane %v5038_v47, 7  ;;  %v4077_v15 = vmul.f32 %v7522_v30, %v4025_v14  ;;  %v4773_v7 = vunpack.c.l.bf16 %v4224_v46  ;;  %v7860_v14 = vld [vmem:[%s6620_s10 + $0x8c] sm:$0xff] }
 0x2de   : > { %6299 = vmatmul.msk.bf16.gmra.mxu0 %vm663_vm3, %v3791_v63  ;;  %v2995_v11 = vpop.f32.mrf.mxu2  ;;  %v3617_v0 = vpop.f32.mrf.mxu3  ;;  %v2441_v46 = vrot.slane %v7860_v14, 1 }
 0x2df   : > { %v5043_v20 = vor.u32 %v5041_v53, %v5040_v38  ;;  %v4869_v35 = vmul.f32 %v4821_v1, %v4773_v7  ;;  %v3097_v17 = vadd.f32 %v2995_v11, %v2675_v4  ;;  %v2575_v6 = vpop.f32.mrf.mxu1  ;;  %v4129_v12 = vadd.f32 %v7531_v51, %v4077_v15  ;;  %v4442_v63 = vpop.permute.xlu0 %4441 }
 0x2e0   : > { %v3433_v1 = vor.u32 %v3431_v10, %v7801_v2  ;;  %v4447_v26 = vperm.slane %v4442_v63, %v7526_v34 }
 0x2e1   : > { %v5044_v52 = vsel %vm7610_vm12, %v5036_v27, %v5043_v20  ;;  %v4917_v43 = vpack.c.bf16 %v4869_v35, %v4869_v35  ;;  %v3719_v29 = vadd.f32 %v3617_v0, %v3097_v17  ;;  %v4177_v19 = vmax.f32 %v4129_v12, 0.0  ;;  %v6396_v17 = vld [vmem:[%s6620_s10 + $0x90] sm:$0xff] }
 0x2e2   : > { %5448 = vst.msk [vmem:[%s7256_s27 + $0x30] sm:$0xf] %vm4310_vm5, %v5044_v52  ;;  %v3792_v27 = vrot.slane %v7832_v18, 1  ;;  %v5045_v20 = vrot.slane %v5040_v38, 4  ;;  %v4294_v38 = vld [vmem:[%s8482_s4 + $0x80] sm:$0xf]  ;;  %v3438_v37 = vsel %vm466_vm2, %v3433_v1, %v7864_v49 }
 0x2e3   : > { %v5047_v48 = vshrl.u32 %v4917_v43, 16  ;;  %v4026_v8 = vadd.f32 %v3924_v62, %v3719_v29  ;;  %v3926_v57 = vpop.f32.mrf.mxu0  ;;  %v4225_v47 = vpack.c.bf16 %v4177_v19, %v4177_v19  ;;  %v5050_v53 = vshll.u32 %v4917_v43, 16  ;;  %4621 = vperm.xlu2 %6476, %v4294_v38  }
 0x2e4   : > { %v2676_v62 = vadd.f32 %v2575_v6, %v7098_v3  ;;  %v2442_v3 = vsel %vm1058_vm4, %v2439_v41, %v2441_v46  ;;  %v4302_v6 = vld [vmem:[%s8482_s4 + $0xa0] sm:$0xf]  ;;  %4684 = vperm.xlu0 %6474, %v4301_v23   ;;  %v4823_v19 = vunpack.c.l.bf16 %v4447_v26 }
 0x2e5   : > { %v7866_v4 = vrot.slane %v5047_v48, 7  ;;  %v4078_v15 = vmul.f32 %v7522_v30, %v4026_v8  ;;  %v4774_v7 = vunpack.c.l.bf16 %v4225_v47  ;;  %4693 = vperm.xlu1 %6475, %v4302_v6   ;;  %v3793_v8 = vsel %vm1058_vm4, %v3790_v50, %v3792_v27  ;;  %v7904_v47 = vld [vmem:[%s6620_s10 + $0xa0] sm:$0xff] }
 0x2e6   : > { %v2997_v11 = vpop.f32.mrf.mxu2  ;;  %v3619_v10 = vpop.f32.mrf.mxu3 }
 0x2e7   : > { %v5052_v35 = vor.u32 %v5050_v53, %v7866_v4  ;;  %v3098_v2 = vadd.f32 %v2997_v11, %v2676_v62  ;;  %v4130_v42 = vadd.f32 %v7531_v51, %v4078_v15  ;;  %v4870_v0 = vmul.f32 %v4822_v32, %v4774_v7  ;;  %v2578_v12 = vpop.f32.mrf.mxu1  ;;  %v4451_v32 = vpop.permute.xlu1 %4450 }
 0x2e8   : > { %v2677_v1 = vadd.f32 %v2578_v12, %v7104_v21  ;;  %v4456_v5 = vperm.slane %v4451_v32, %v7526_v34 }
 0x2e9   : > { %v5053_v55 = vsel %vm7610_vm12, %v5045_v20, %v5052_v35  ;;  %v3720_v44 = vadd.f32 %v3619_v10, %v3098_v2  ;;  %v4178_v52 = vmax.f32 %v4130_v42, 0.0  ;;  %v4918_v41 = vpack.c.bf16 %v4870_v0, %v4870_v0  ;;  %v4305_v0 = vld [vmem:[%s8482_s4 + $0xac] sm:$0xf] }
 0x2ea   : > { %5449 = vst.msk [vmem:[%s7256_s27 + $0x34] sm:$0xf] %vm4310_vm5, %v5053_v55  ;;  %6037 = vmatmul.msk.bf16.gmra.mxu1 %vm663_vm3, %v2442_v3  ;;  %v3439_v35 = vshrl.u32 %v7832_v18, 16  ;;  %v5054_v2 = vrot.slane %v7866_v4, 4  ;;  %v3443_v42 = vshll.u32 %v7904_v47, 16 }
 0x2eb   : > { %v4027_v43 = vadd.f32 %v3926_v57, %v3720_v44  ;;  %v4226_v29 = vpack.c.bf16 %v4178_v52, %v4178_v52  ;;  %v3929_v48 = vpop.f32.mrf.mxu0  ;;  %6158 = vmatmul.msk.bf16.gmra.mxu2 %vm663_vm3, %v6396_v17  ;;  %v5056_v63 = vshrl.u32 %v4918_v41, 16  ;;  %6275 = vmatmul.msk.bf16.gmra.mxu3 %vm663_vm3, %v3438_v37  ;;  %v5059_v62 = vshll.u32 %v4918_v41, 16  ;;  %v4297_v17 = vld [vmem:[%s8482_s4 + $0x8c] sm:$0xf]  ;;  %v4304_v4 = vld [vmem:[%s8482_s4 + $0xa8] sm:$0xf] }
 0x2ec   : > { %4648 = vperm.xlu2 %6476, %v4297_v17   ;;  %4711 = vperm.xlu0 %6474, %v4304_v4   ;;  %v4824_v52 = vunpack.c.l.bf16 %v4456_v5 }
 0x2ed   : > { %v4079_v57 = vmul.f32 %v7522_v30, %v4027_v43  ;;  %v4775_v53 = vunpack.c.l.bf16 %v4226_v29  ;;  %v5058_v15 = vrot.slane %v5056_v63, 7  ;;  %4720 = vperm.xlu1 %6475, %v4305_v0   ;;  %v7929_v43 = vld [vmem:[%s6620_s10 + $0x94] sm:$0xff] }
 0x2ee   : > { %6300 = vmatmul.msk.bf16.gmra.mxu0 %vm663_vm3, %v3793_v8  ;;  %v3000_v7 = vpop.f32.mrf.mxu2  ;;  %v3622_v26 = vpop.f32.mrf.mxu3  ;;  %v2443_v29 = vrot.slane %v7929_v43, 1  ;;  %v7933_v8 = vrot.slane %v3443_v42, 1 }
 0x2ef   : > { %v4871_v11 = vmul.f32 %v4823_v19, %v4775_v53  ;;  %v3099_v50 = vadd.f32 %v3000_v7, %v2677_v1  ;;  %v4131_v20 = vadd.f32 %v7531_v51, %v4079_v57  ;;  %v5061_v10 = vor.u32 %v5059_v62, %v5058_v15  ;;  %v2580_v21 = vpop.f32.mrf.mxu1 }
 0x2f0   : > { %v2678_v41 = vadd.f32 %v2580_v21, %v7114_v28  ;;  %v3441_v19 = vor.u32 %v3439_v35, %v7864_v49  ;;  %v3794_v62 = vrot.slane %v7904_v47, 1  ;;  %v5063_v7 = vrot.slane %v5058_v15, 4  ;;  %v4300_v15 = vld [vmem:[%s8482_s4 + $0x98] sm:$0xf] }
 0x2f1   : > { %v4919_v12 = vpack.c.bf16 %v4871_v11, %v4871_v11  ;;  %v3721_v3 = vadd.f32 %v3622_v26, %v3099_v50  ;;  %v4179_v38 = vmax.f32 %v4131_v20, 0.0  ;;  %v5062_v6 = vsel %vm7610_vm12, %v5054_v2, %v5061_v10  ;;  %v6397_v26 = vld [vmem:[%s6620_s10 + $0x98] sm:$0xff] }
 0x2f2   : > { %5450 = vst.msk [vmem:[%s7256_s27 + $0x38] sm:$0xf] %vm4310_vm5, %v5062_v6  ;;  %v4308_v2 = vld [vmem:[%s8482_s4 + $0xb8] sm:$0xf]  ;;  %v3446_v14 = vsel %vm466_vm2, %v3441_v19, %v7933_v8 }
 0x2f3   : > { %v5065_v23 = vshrl.u32 %v4919_v12, 16  ;;  %v4028_v55 = vadd.f32 %v3929_v48, %v3721_v3  ;;  %v4227_v44 = vpack.c.bf16 %v4179_v38, %v4179_v38  ;;  %v3931_v37 = vpop.f32.mrf.mxu0  ;;  %v5068_v63 = vshll.u32 %v4919_v12, 16  ;;  %v4460_v48 = vpop.permute.xlu2 %4459 }
 0x2f4   : > { %v4465_v35 = vperm.slane %v4460_v48, %v7526_v34  ;;  %4675 = vperm.xlu2 %6476, %v4300_v15   ;;  %v3795_v3 = vsel %vm1058_vm4, %v3792_v27, %v3794_v62  ;;  %v4469_v38 = vpop.permute.xlu0 %4468 }
 0x2f5   : > { %v5067_v32 = vrot.slane %v5065_v23, 7  ;;  %v4080_v57 = vmul.f32 %v7522_v30, %v4028_v55  ;;  %v4776_v1 = vunpack.c.l.bf16 %v4227_v44  ;;  %v2444_v30 = vsel %vm1058_vm4, %v2441_v46, %v2443_v29  ;;  %4747 = vperm.xlu1 %6475, %v4308_v2   ;;  %v7971_v44 = vld [vmem:[%s8480_s2] ss:$0 sm:$0xff] }
 0x2f6   : > { %v3002_v53 = vpop.f32.mrf.mxu2  ;;  %v3624_v50 = vpop.f32.mrf.mxu3  ;;  %v4825_v6 = vunpack.c.l.bf16 %v4465_v35  ;;  %v4474_v19 = vperm.slane %v4469_v38, %v7526_v34 }
 0x2f7   : > { %v5070_v28 = vor.u32 %v5068_v63, %v5067_v32  ;;  %v4872_v5 = vmul.f32 %v4824_v52, %v4776_v1  ;;  %v3100_v11 = vadd.f32 %v3002_v53, %v2678_v41  ;;  %v2583_v20 = vpop.f32.mrf.mxu1  ;;  %v4132_v49 = vadd.f32 %v7531_v51, %v4080_v57  ;;  %v4307_v51 = vld [vmem:[%s8482_s4 + $0xb4] sm:$0xf]  ;;  %v7976_v41 = vld [vmem:[%s6620_s10 + $0xa8] sm:$0xff]  ;;  %v7983_v53 = vld [vmem:[%s8481_s3] ss:$0 sm:$0xff] }
 0x2f8   : > { %4738 = vperm.xlu0 %6474, %v4307_v51   ;;  %v5072_v63 = vrot.slane %v5067_v32, 4  ;;  %v4826_v15 = vunpack.c.l.bf16 %v4474_v19 }
 0x2f9   : > { %v5071_v10 = vsel %vm7610_vm12, %v5063_v7, %v5070_v28  ;;  %v4920_v21 = vpack.c.bf16 %v4872_v5, %v4872_v5  ;;  %v3722_v42 = vadd.f32 %v3624_v50, %v3100_v11  ;;  %v4180_v46 = vmax.f32 %v4132_v49, 0.0  ;;  %v4303_v11 = vld [vmem:[%s8482_s4 + $0xa4] sm:$0xf] }
 0x2fa   : > { %5451 = vst.msk [vmem:[%s7256_s27 + $0x3c] sm:$0xf] %vm4310_vm5, %v5071_v10  ;;  %6038 = vmatmul.msk.bf16.gmra.mxu1 %vm663_vm3, %v2444_v30  ;;  %v3447_v5 = vshrl.u32 %v7904_v47, 16  ;;  %v4478_v10 = vpop.permute.xlu1 %4477 }
 0x2fb   : > { %v5074_v17 = vshrl.u32 %v4920_v21, 16  ;;  %v4029_v0 = vadd.f32 %v3931_v37, %v3722_v42  ;;  %v3934_v12 = vpop.f32.mrf.mxu0  ;;  %6159 = vmatmul.msk.bf16.gmra.mxu2 %vm663_vm3, %v6397_v26  ;;  %v4228_v4 = vpack.c.bf16 %v4180_v46, %v4180_v46  ;;  %6276 = vmatmul.msk.bf16.gmra.mxu3 %vm663_vm3, %v3446_v14  ;;  %v5077_v55 = vshll.u32 %v4920_v21, 16  ;;  %v7996_v21 = vld [vmem:[%s6620_s10 + $0x9c] sm:$0xff] }
 0x2fc   : > { %v2679_v37 = vadd.f32 %v2583_v20, %v7120_v25  ;;  %v3451_v20 = vshll.u32 %v7976_v41, 16  ;;  %4702 = vperm.xlu2 %6476, %v4303_v11   ;;  %v2445_v42 = vrot.slane %v7996_v21, 1  ;;  %v3449_v14 = vor.u32 %v3447_v5, %v7933_v8 }
 0x2fd   : > { %v5076_v23 = vrot.slane %v5074_v17, 7  ;;  %v4081_v52 = vmul.f32 %v7971_v44, %v4029_v0  ;;  %v4777_v18 = vunpack.c.l.bf16 %v4228_v4  ;;  %v4483_v8 = vperm.slane %v4478_v10, %v7526_v34 }
 0x2fe   : > { %6301 = vmatmul.msk.bf16.gmra.mxu0 %vm663_vm3, %v3795_v3  ;;  %v3005_v27 = vpop.f32.mrf.mxu2  ;;  %v3627_v48 = vpop.f32.mrf.mxu3  ;;  %v8002_v3 = vrot.slane %v3451_v20, 1 }
 0x2ff   : > { %v5079_v57 = vor.u32 %v5077_v55, %v5076_v23  ;;  %v3101_v1 = vadd.f32 %v3005_v27, %v2679_v37  ;;  %v4133_v25 = vadd.f32 %v7983_v53, %v4081_v52  ;;  %v4873_v7 = vmul.f32 %v4825_v6, %v4777_v18  ;;  %v2585_v28 = vpop.f32.mrf.mxu1  ;;  %v6398_v27 = vld [vmem:[%s6620_s10 + $0xa0] sm:$0xff] }
 0x300   : > { %v2680_v17 = vadd.f32 %v2585_v28, %v7130_v59  ;;  %v3796_v6 = vrot.slane %v7976_v41, 1  ;;  %v5081_v19 = vrot.slane %v5076_v23, 4  ;;  %v3454_v28 = vsel %vm466_vm2, %v3449_v14, %v8002_v3 }
 0x301   : > { %v5080_v32 = vsel %vm7610_vm12, %v5072_v63, %v5079_v57  ;;  %v3723_v50 = vadd.f32 %v3627_v48, %v3101_v1  ;;  %v4181_v26 = vmax.f32 %v4133_v25, 0.0  ;;  %v4921_v49 = vpack.c.bf16 %v4873_v7, %v4873_v7  ;;  %v4306_v1 = vld [vmem:[%s8482_s4 + $0xb0] sm:$0xf] }
 0x302   : > { %5452 = vst.msk [vmem:[%s7256_s27 + $0x40] sm:$0xf] %vm4310_vm5, %v5080_v32  ;;  %v2446_v57 = vsel %vm1058_vm4, %v2443_v29, %v2445_v42  ;;  %v3797_v43 = vsel %vm1058_vm4, %v3794_v62, %v3796_v6  ;;  %v4827_v32 = vunpack.c.l.bf16 %v4483_v8 }
 0x303   : > { %v4030_v35 = vadd.f32 %v3934_v12, %v3723_v50  ;;  %v4229_v30 = vpack.c.bf16 %v4181_v26, %v4181_v26  ;;  %v3936_v2 = vpop.f32.mrf.mxu0  ;;  %v5083_v51 = vshrl.u32 %v4921_v49, 16  ;;  %v5086_v38 = vshll.u32 %v4921_v49, 16  ;;  %v4487_v26 = vpop.permute.xlu2 %4486  ;;  %v8032_v49 = vld [vmem:[%s6620_s10 + $0xb0] sm:$0xff] }
 0x304   : > { %4729 = vperm.xlu2 %6476, %v4306_v1   ;;  %v8048_v1 = vld [vmem:[%s6620_s10 + $0xa4] sm:$0xff] }
 0x305   : > { %v4082_v46 = vmul.f32 %v7971_v44, %v4030_v35  ;;  %v4778_v0 = vunpack.c.l.bf16 %v4229_v30  ;;  %v5085_v12 = vrot.slane %v5083_v51, 7 }
 0x306   : > { %v3007_v4 = vpop.f32.mrf.mxu2  ;;  %v3629_v37 = vpop.f32.mrf.mxu3 }
 0x307   : > { %v4874_v55 = vmul.f32 %v4826_v15, %v4778_v0  ;;  %v3102_v52 = vadd.f32 %v3007_v4, %v2680_v17  ;;  %v4134_v18 = vadd.f32 %v7983_v53, %v4082_v46  ;;  %v5088_v63 = vor.u32 %v5086_v38, %v5085_v12  ;;  %v2588_v59 = vpop.f32.mrf.mxu1 }
 0x308   : > { %v2681_v20 = vadd.f32 %v2588_v59, %v7136_v39  ;;  %v5090_v51 = vrot.slane %v5085_v12, 4  ;;  %v3455_v38 = vshrl.u32 %v7976_v41, 16  ;;  %v3459_v4 = vshll.u32 %v8032_v49, 16  ;;  %v4496_v59 = vpop.permute.xlu0 %4495 }
 0x309   : > { %v4922_v48 = vpack.c.bf16 %v4874_v55, %v4874_v55  ;;  %v3724_v25 = vadd.f32 %v3629_v37, %v3102_v52  ;;  %v4182_v7 = vmax.f32 %v4134_v18, 0.0  ;;  %v5089_v23 = vsel %vm7610_vm12, %v5081_v19, %v5088_v63  ;;  %v4309_v55 = vld [vmem:[%s8482_s4 + $0xbc] sm:$0xf] }
 0x30a   : > { %5453 = vst.msk [vmem:[%s7256_s27 + $0x44] sm:$0xf] %vm4310_vm5, %v5089_v23  ;;  %6039 = vmatmul.msk.bf16.gmra.mxu1 %vm663_vm3, %v2446_v57 }
 0x30b   : > { %v5092_v29 = vshrl.u32 %v4922_v48, 16  ;;  %v4031_v5 = vadd.f32 %v3936_v2, %v3724_v25  ;;  %v4230_v11 = vpack.c.bf16 %v4182_v7, %v4182_v7  ;;  %v3939_v50 = vpop.f32.mrf.mxu0  ;;  %6160 = vmatmul.msk.bf16.gmra.mxu2 %vm663_vm3, %v6398_v27  ;;  %6277 = vmatmul.msk.bf16.gmra.mxu3 %vm663_vm3, %v3454_v28  ;;  %v5095_v62 = vshll.u32 %v4922_v48, 16 }
 0x30c   : > { %v4492_v2 = vperm.slane %v4487_v26, %v7526_v34  ;;  %4756 = vperm.xlu2 %6476, %v4309_v55   ;;  %v2447_v48 = vrot.slane %v8048_v1, 1  ;;  %v3457_v25 = vor.u32 %v3455_v38, %v8002_v3  ;;  %v8052_v7 = vrot.slane %v3459_v4, 1  ;;  %v4505_v4 = vpop.permute.xlu1 %4504  ;;  %v8080_v55 = vld [vmem:[%s6620_s10 + $0xb8] sm:$0xff] }
 0x30d   : > { %v5094_v47 = vrot.slane %v5092_v29, 7  ;;  %v4083_v35 = vmul.f32 %v7971_v44, %v4031_v5  ;;  %v4779_v30 = vunpack.c.l.bf16 %v4230_v11 }
 0x30e   : > { %6302 = vmatmul.msk.bf16.gmra.mxu0 %vm663_vm3, %v3797_v43  ;;  %v3010_v15 = vpop.f32.mrf.mxu2  ;;  %v3632_v39 = vpop.f32.mrf.mxu3  ;;  %v4828_v19 = vunpack.c.l.bf16 %v4492_v2 }
 0x30f   : > { %v5097_v10 = vor.u32 %v5095_v62, %v5094_v47  ;;  %v4875_v14 = vmul.f32 %v4827_v32, %v4779_v30  ;;  %v3103_v46 = vadd.f32 %v3010_v15, %v2681_v20  ;;  %v2590_v17 = vpop.f32.mrf.mxu1  ;;  %v4135_v0 = vadd.f32 %v7983_v53, %v4083_v35  ;;  %v6399_v30 = vld [vmem:[%s6620_s10 + $0xa8] sm:$0xff] }
 0x310   : > { %v2682_v29 = vadd.f32 %v2590_v17, %v7145_v31  ;;  %v4501_v32 = vperm.slane %v4496_v59, %v7526_v34  ;;  %v5099_v26 = vrot.slane %v5094_v47, 4  ;;  %v2448_v31 = vsel %vm1058_vm4, %v2445_v42, %v2447_v48 }
 0x311   : > { %v5098_v52 = vsel %vm7610_vm12, %v5090_v51, %v5097_v10  ;;  %v4923_v12 = vpack.c.bf16 %v4875_v14, %v4875_v14  ;;  %v3725_v37 = vadd.f32 %v3632_v39, %v3103_v46  ;;  %v4183_v18 = vmax.f32 %v4135_v0, 0.0 }
 0x312   : > { %5454 = vst.msk [vmem:[%s7256_s27 + $0x48] sm:$0xf] %vm4310_vm5, %v5098_v52  ;;  %v3462_v14 = vsel %vm466_vm2, %v3457_v25, %v8052_v7  ;;  %v4829_v0 = vunpack.c.l.bf16 %v4501_v32  ;;  %v4510_v59 = vperm.slane %v4505_v4, %v7526_v34  ;;  %v6400_v4 = vld [vmem:[%s6620_s10 + $0xb0] sm:$0xff] }
 0x313   : > { %v5101_v8 = vshrl.u32 %v4923_v12, 16  ;;  %v4032_v27 = vadd.f32 %v3939_v50, %v3725_v37  ;;  %v3941_v63 = vpop.f32.mrf.mxu0  ;;  %v4231_v57 = vpack.c.bf16 %v4183_v18, %v4183_v18  ;;  %v5104_v23 = vshll.u32 %v4923_v12, 16 }
 0x314   : > { %v3798_v50 = vrot.slane %v8032_v49, 1 }
 0x315   : > { %v5103_v28 = vrot.slane %v5101_v8, 7  ;;  %v4084_v43 = vmul.f32 %v7971_v44, %v4032_v27  ;;  %v4780_v5 = vunpack.c.l.bf16 %v4231_v57 }
 0x316   : > { %v3012_v11 = vpop.f32.mrf.mxu2  ;;  %v3634_v35 = vpop.f32.mrf.mxu3  ;;  %v3799_v21 = vsel %vm1058_vm4, %v3796_v6, %v3798_v50 }
 0x317   : > { %v5106_v20 = vor.u32 %v5104_v23, %v5103_v28  ;;  %v3104_v62 = vadd.f32 %v3012_v11, %v2682_v29  ;;  %v4136_v3 = vadd.f32 %v7983_v53, %v4084_v43  ;;  %v4876_v15 = vmul.f32 %v4828_v19, %v4780_v5  ;;  %v2593_v2 = vpop.f32.mrf.mxu1 }
 0x318   : > { %v2683_v12 = vadd.f32 %v2593_v2, %v7151_v45  ;;  %v5108_v57 = vrot.slane %v5103_v28, 4  ;;  %v3463_v45 = vshrl.u32 %v8032_v49, 16  ;;  %v3467_v43 = vshll.u32 %v8080_v55, 16 }
 0x319   : > { %v5107_v51 = vsel %vm7610_vm12, %v5099_v26, %v5106_v20  ;;  %v3726_v10 = vadd.f32 %v3634_v35, %v3104_v62  ;;  %v4184_v47 = vmax.f32 %v4136_v3, 0.0  ;;  %v4924_v46 = vpack.c.bf16 %v4876_v15, %v4876_v15 }
 0x31a   : > { %5455 = vst.msk [vmem:[%s7256_s27 + $0x4c] sm:$0xf] %vm4310_vm5, %v5107_v51  ;;  %6040 = vmatmul.msk.bf16.gmra.mxu1 %vm663_vm3, %v2448_v31  ;;  %v4830_v35 = vunpack.c.l.bf16 %v4510_v59  ;;  %v3465_v2 = vor.u32 %v3463_v45, %v8052_v7  ;;  %v8099_v31 = vrot.slane %v3467_v43, 1 }
 0x31b   : > { %v4033_v39 = vadd.f32 %v3941_v63, %v3726_v10  ;;  %v4232_v17 = vpack.c.bf16 %v4184_v47, %v4184_v47  ;;  %v3944_v38 = vpop.f32.mrf.mxu0  ;;  %6161 = vmatmul.msk.bf16.gmra.mxu2 %vm663_vm3, %v6399_v30  ;;  %v5110_v42 = vshrl.u32 %v4924_v46, 16  ;;  %6278 = vmatmul.msk.bf16.gmra.mxu3 %vm663_vm3, %v3462_v14  ;;  %v5113_v8 = vshll.u32 %v4924_v46, 16  ;;  %v8095_v30 = vld [vmem:[%s6620_s10 + $0xac] sm:$0xff]  ;;  %v4514_v46 = vpop.permute.xlu2 %4513 }
 0x31c   : > { %v2449_v15 = vrot.slane %v8095_v30, 1 }
 0x31d   : > { %v4085_v52 = vmul.f32 %v7971_v44, %v4033_v39  ;;  %v4781_v37 = vunpack.c.l.bf16 %v4232_v17  ;;  %v5112_v18 = vrot.slane %v5110_v42, 7  ;;  %v3800_v17 = vrot.slane %v8080_v55, 1 }
 0x31e   : > { %6303 = vmatmul.msk.bf16.gmra.mxu0 %vm663_vm3, %v3799_v21  ;;  %v3015_v27 = vpop.f32.mrf.mxu2  ;;  %v3637_v6 = vpop.f32.mrf.mxu3 }
 0x31f   : > { %v4877_v41 = vmul.f32 %v4829_v0, %v4781_v37  ;;  %v3105_v19 = vadd.f32 %v3015_v27, %v2683_v12  ;;  %v4137_v63 = vadd.f32 %v7983_v53, %v4085_v52  ;;  %v5115_v25 = vor.u32 %v5113_v8, %v5112_v18  ;;  %v2595_v23 = vpop.f32.mrf.mxu1 }
 0x320   : > { %v2684_v3 = vadd.f32 %v2595_v23, %v7160_v61  ;;  %v5117_v61 = vrot.slane %v5112_v18, 4  ;;  %v4519_v12 = vperm.slane %v4514_v46, %v7526_v34  ;;  %v2450_v37 = vsel %vm1058_vm4, %v2447_v48, %v2449_v15  ;;  %v4523_v48 = vpop.permute.xlu0 %4522 }
 0x321   : > { %v4925_v29 = vpack.c.bf16 %v4877_v41, %v4877_v41  ;;  %v3727_v5 = vadd.f32 %v3637_v6, %v3105_v19  ;;  %v4185_v11 = vmax.f32 %v4137_v63, 0.0  ;;  %v5116_v32 = vsel %vm7610_vm12, %v5108_v57, %v5115_v25 }
 0x322   : > { %5456 = vst.msk [vmem:[%s7256_s27 + $0x50] sm:$0xf] %vm4310_vm5, %v5116_v32  ;;  %v3470_v41 = vsel %vm466_vm2, %v3465_v2, %v8099_v31  ;;  %v3801_v1 = vsel %vm1058_vm4, %v3798_v50, %v3800_v17  ;;  %v4831_v25 = vunpack.c.l.bf16 %v4519_v12  ;;  %v4528_v50 = vperm.slane %v4523_v48, %v7526_v34 }
 0x323   : > { %v5119_v26 = vshrl.u32 %v4925_v29, 16  ;;  %v4034_v20 = vadd.f32 %v3944_v38, %v3727_v5  ;;  %v4233_v62 = vpack.c.bf16 %v4185_v11, %v4185_v11  ;;  %v3946_v28 = vpop.f32.mrf.mxu0  ;;  %v5122_v10 = vshll.u32 %v4925_v29, 16  ;;  %v8128_v5 = vld [vmem:[%s6620_s10 + $0xc0] sm:$0xff] }
 0x325   : > { %v5121_v51 = vrot.slane %v5119_v26, 7  ;;  %v4086_v47 = vmul.f32 %v7971_v44, %v4034_v20  ;;  %v4782_v14 = vunpack.c.l.bf16 %v4233_v62 }
 0x326   : > { %v3017_v39 = vpop.f32.mrf.mxu2  ;;  %v3639_v42 = vpop.f32.mrf.mxu3 }
 0x327   : > { %v5124_v0 = vor.u32 %v5122_v10, %v5121_v51  ;;  %v4878_v38 = vmul.f32 %v4830_v35, %v4782_v14  ;;  %v3106_v21 = vadd.f32 %v3017_v39, %v2684_v3  ;;  %v2598_v52 = vpop.f32.mrf.mxu1  ;;  %v4138_v7 = vadd.f32 %v7983_v53, %v4086_v47 }
 0x328   : > { %v2685_v29 = vadd.f32 %v2598_v52, %v7166_v60  ;;  %v5126_v32 = vrot.slane %v5121_v51, 4  ;;  %v3471_v60 = vshrl.u32 %v8080_v55, 16  ;;  %v3475_v14 = vshll.u32 %v8128_v5, 16 }
 0x329   : > { %v5125_v8 = vsel %vm7610_vm12, %v5117_v61, %v5124_v0  ;;  %v4926_v18 = vpack.c.bf16 %v4878_v38, %v4878_v38  ;;  %v3728_v27 = vadd.f32 %v3639_v42, %v3106_v21  ;;  %v4186_v19 = vmax.f32 %v4138_v7, 0.0  ;;  %v4532_v21 = vpop.permute.xlu1 %4531  ;;  %v8140_v42 = vld [vmem:[%s6620_s10 + $0xb4] sm:$0xff] }
 0x32a   : > { %5457 = vst.msk [vmem:[%s7256_s27 + $0x54] sm:$0xf] %vm4310_vm5, %v5125_v8  ;;  %6041 = vmatmul.msk.bf16.gmra.mxu1 %vm663_vm3, %v2450_v37  ;;  %v4832_v61 = vunpack.c.l.bf16 %v4528_v50  ;;  %v3473_v52 = vor.u32 %v3471_v60, %v8099_v31  ;;  %v3477_v8 = vrot.slane %v3475_v14, 1  ;;  %v4537_v48 = vperm.slane %v4532_v21, %v7526_v34  ;;  %v6401_v31 = vld [vmem:[%s6620_s10 + $0xb8] sm:$0xff] }
 0x32b   : > { %v5128_v6 = vshrl.u32 %v4926_v18, 16  ;;  %v4035_v63 = vadd.f32 %v3946_v28, %v3728_v27  ;;  %v3949_v59 = vpop.f32.mrf.mxu0  ;;  %6162 = vmatmul.msk.bf16.gmra.mxu2 %vm663_vm3, %v6400_v4  ;;  %v4234_v57 = vpack.c.bf16 %v4186_v19, %v4186_v19  ;;  %6279 = vmatmul.msk.bf16.gmra.mxu3 %vm663_vm3, %v3470_v41  ;;  %v5131_v45 = vshll.u32 %v4926_v18, 16 }
 0x32c   : > { %v2451_v4 = vrot.slane %v8140_v42, 1  ;;  %v3802_v19 = vrot.slane %v8128_v5, 1 }
 0x32d   : > { %v5130_v23 = vrot.slane %v5128_v6, 7  ;;  %v4087_v43 = vmul.f32 %v7971_v44, %v4035_v63  ;;  %v4783_v11 = vunpack.c.l.bf16 %v4234_v57 }
 0x32e   : > { %6304 = vmatmul.msk.bf16.gmra.mxu0 %vm663_vm3, %v3801_v1  ;;  %v3020_v49 = vpop.f32.mrf.mxu2  ;;  %v3642_v62 = vpop.f32.mrf.mxu3 }
 0x32f   : > { %v5133_v26 = vor.u32 %v5131_v45, %v5130_v23  ;;  %v3107_v20 = vadd.f32 %v3020_v49, %v2685_v29  ;;  %v4139_v35 = vadd.f32 %v7983_v53, %v4087_v43  ;;  %v4879_v28 = vmul.f32 %v4831_v25, %v4783_v11  ;;  %v2600_v3 = vpop.f32.mrf.mxu1 }
 0x330   : > { %v2686_v12 = vadd.f32 %v2600_v3, %v7175_v13  ;;  %v5135_v57 = vrot.slane %v5130_v23, 4  ;;  %v2452_v13 = vsel %vm1058_vm4, %v2449_v15, %v2451_v4  ;;  %v3478_v49 = vsel %vm466_vm2, %v3473_v52, %v3477_v8 }
 0x331   : > { %v5134_v2 = vsel %vm7610_vm12, %v5126_v32, %v5133_v26  ;;  %v3729_v10 = vadd.f32 %v3642_v62, %v3107_v20  ;;  %v4187_v47 = vmax.f32 %v4139_v35, 0.0  ;;  %v4927_v51 = vpack.c.bf16 %v4879_v28, %v4879_v28  ;;  %v4541_v62 = vpop.permute.xlu2 %4540  ;;  %v8170_v28 = vld [vmem:[%s6620_s10 + $0xc8] sm:$0xff] }
 0x332   : > { %5458 = vst.msk [vmem:[%s7256_s27 + $0x58] sm:$0xf] %vm4310_vm5, %v5134_v2  ;;  %v3803_v23 = vsel %vm1058_vm4, %v3800_v17, %v3802_v19  ;;  %v4833_v26 = vunpack.c.l.bf16 %v4537_v48 }
 0x333   : > { %v4036_v46 = vadd.f32 %v3949_v59, %v3729_v10  ;;  %v4235_v39 = vpack.c.bf16 %v4187_v47, %v4187_v47  ;;  %v3951_v0 = vpop.f32.mrf.mxu0  ;;  %v5137_v38 = vshrl.u32 %v4927_v51, 16  ;;  %v5140_v27 = vshll.u32 %v4927_v51, 16 }
 0x334   : > { %v4546_v10 = vperm.slane %v4541_v62, %v7526_v34 }
 0x335   : > { %v4088_v7 = vmul.f32 %v7971_v44, %v4036_v46  ;;  %v4784_v37 = vunpack.c.l.bf16 %v4235_v39  ;;  %v5139_v18 = vrot.slane %v5137_v38, 7  ;;  %v3483_v38 = vshll.u32 %v8170_v28, 16 }
 0x336   : > { %v3022_v41 = vpop.f32.mrf.mxu2  ;;  %v3644_v59 = vpop.f32.mrf.mxu3 }
 0x337   : > { %v4880_v6 = vmul.f32 %v4832_v61, %v4784_v37  ;;  %v3108_v63 = vadd.f32 %v3022_v41, %v2686_v12  ;;  %v4140_v1 = vadd.f32 %v7983_v53, %v4088_v7  ;;  %v5142_v25 = vor.u32 %v5140_v27, %v5139_v18  ;;  %v2603_v45 = vpop.f32.mrf.mxu1 }
 0x338   : > { %v2687_v35 = vadd.f32 %v2603_v45, %v7181_v22  ;;  %v5144_v47 = vrot.slane %v5139_v18, 4  ;;  %v4834_v27 = vunpack.c.l.bf16 %v4546_v10 }
 0x339   : > { %v4928_v43 = vpack.c.bf16 %v4880_v6, %v4880_v6  ;;  %v3730_v29 = vadd.f32 %v3644_v59, %v3108_v63  ;;  %v4188_v11 = vmax.f32 %v4140_v1, 0.0  ;;  %v5143_v50 = vsel %vm7610_vm12, %v5135_v57, %v5142_v25  ;;  %v4550_v6 = vpop.permute.xlu0 %4549  ;;  %v8183_v59 = vld [vmem:[%s6620_s10 + $0xbc] sm:$0xff] }
 0x33a   : > { %5459 = vst.msk [vmem:[%s7256_s27 + $0x5c] sm:$0xf] %vm4310_vm5, %v5143_v50  ;;  %6042 = vmatmul.msk.bf16.gmra.mxu1 %vm663_vm3, %v2452_v13  ;;  %v2453_v1 = vrot.slane %v8183_v59, 1 }
 0x33b   : > { %v5146_v30 = vshrl.u32 %v4928_v43, 16  ;;  %v4037_v32 = vadd.f32 %v3951_v0, %v3730_v29  ;;  %v4236_v15 = vpack.c.bf16 %v4188_v11, %v4188_v11  ;;  %v3954_v20 = vpop.f32.mrf.mxu0  ;;  %6163 = vmatmul.msk.bf16.gmra.mxu2 %vm663_vm3, %v6401_v31  ;;  %6280 = vmatmul.msk.bf16.gmra.mxu3 %vm663_vm3, %v3478_v49  ;;  %v5149_v17 = vshll.u32 %v4928_v43, 16 }
 0x33c   : > { %v3479_v0 = vshrl.u32 %v8128_v5, 16  ;;  %v8186_v31 = vrot.slane %v3483_v38, 1  ;;  %v4555_v11 = vperm.slane %v4550_v6, %v7526_v34  ;;  %v3804_v49 = vrot.slane %v8170_v28, 1 }
 0x33d   : > { %v5148_v55 = vrot.slane %v5146_v30, 7  ;;  %v4089_v3 = vmul.f32 %v7971_v44, %v4037_v32  ;;  %v4785_v60 = vunpack.c.l.bf16 %v4236_v15  ;;  %v6402_v15 = vld [vmem:[%s6620_s10 + $0xc0] sm:$0xff] }
 0x33e   : > { %6305 = vmatmul.msk.bf16.gmra.mxu0 %vm663_vm3, %v3803_v23  ;;  %v3025_v2 = vpop.f32.mrf.mxu2  ;;  %v3647_v22 = vpop.f32.mrf.mxu3  ;;  %v3481_v48 = vor.u32 %v3479_v0, %v3477_v8  ;;  %v4835_v10 = vunpack.c.l.bf16 %v4555_v11  ;;  %v3805_v42 = vsel %vm1058_vm4, %v3802_v19, %v3804_v49 }
 0x33f   : > { %v5151_v14 = vor.u32 %v5149_v17, %v5148_v55  ;;  %v4881_v51 = vmul.f32 %v4833_v26, %v4785_v60  ;;  %v3109_v46 = vadd.f32 %v3025_v2, %v2687_v35  ;;  %v2605_v39 = vpop.f32.mrf.mxu1  ;;  %v4141_v61 = vadd.f32 %v7983_v53, %v4089_v3 }
 0x340   : > { %v2688_v13 = vadd.f32 %v2605_v39, %v7190_v9  ;;  %v5153_v50 = vrot.slane %v5148_v55, 4  ;;  %v2454_v9 = vsel %vm1058_vm4, %v2451_v4, %v2453_v1  ;;  %v3486_v17 = vsel %vm466_vm2, %v3481_v48, %v8186_v31 }
 0x341   : > { %v5152_v21 = vsel %vm7610_vm12, %v5144_v47, %v5151_v14  ;;  %v4929_v52 = vpack.c.bf16 %v4881_v51, %v4881_v51  ;;  %v3731_v7 = vadd.f32 %v3647_v22, %v3109_v46  ;;  %v4189_v12 = vmax.f32 %v4141_v61, 0.0  ;;  %v4559_v14 = vpop.permute.xlu1 %4558  ;;  %v8214_v51 = vld [vmem:[%s6620_s10 + $0xd0] sm:$0xff] }
 0x342   : > { %5460 = vst.msk [vmem:[%s7256_s27 + $0x60] sm:$0xf] %vm4310_vm5, %v5152_v21 }
 0x343   : > { %v5155_v37 = vshrl.u32 %v4929_v52, 16  ;;  %v4038_v18 = vadd.f32 %v3954_v20, %v3731_v7  ;;  %v3956_v41 = vpop.f32.mrf.mxu0  ;;  %v4237_v63 = vpack.c.bf16 %v4189_v12, %v4189_v12  ;;  %v5158_v25 = vshll.u32 %v4929_v52, 16 }
 0x344   : > { %v4564_v7 = vperm.slane %v4559_v14, %v7526_v34 }
 0x345   : > { %v5157_v57 = vrot.slane %v5155_v37, 7  ;;  %v4090_v45 = vmul.f32 %v7971_v44, %v4038_v18  ;;  %v4786_v43 = vunpack.c.l.bf16 %v4237_v63 }
 0x346   : > { %v3027_v29 = vpop.f32.mrf.mxu2  ;;  %v3649_v32 = vpop.f32.mrf.mxu3 }
 0x347   : > { %v5160_v23 = vor.u32 %v5158_v25, %v5157_v57  ;;  %v3110_v30 = vadd.f32 %v3027_v29, %v2688_v13  ;;  %v4142_v8 = vadd.f32 %v7983_v53, %v4090_v45  ;;  %v4882_v26 = vmul.f32 %v4834_v27, %v4786_v43  ;;  %v2608_v20 = vpop.f32.mrf.mxu1  ;;  %v8228_v29 = vld [vmem:[%s6620_s10 + $0xc4] sm:$0xff] }
 0x348   : > { %v2689_v22 = vadd.f32 %v2608_v20, %v7196_v40  ;;  %v5162_v12 = vrot.slane %v5157_v57, 4  ;;  %v3487_v40 = vshrl.u32 %v8170_v28, 16  ;;  %v3491_v27 = vshll.u32 %v8214_v51, 16  ;;  %v3181_v20 = vld [vmem:[%s6620_s10 + $0xd8] sm:$0x1] }
 0x349   : > { %v5161_v62 = vsel %vm7610_vm12, %v5153_v50, %v5160_v23  ;;  %v3732_v35 = vadd.f32 %v3649_v32, %v3110_v30  ;;  %v4190_v55 = vmax.f32 %v4142_v8, 0.0  ;;  %v4930_v3 = vpack.c.bf16 %v4882_v26, %v4882_v26 }
 0x34a   : > { %5461 = vst.msk [vmem:[%s7256_s27 + $0x64] sm:$0xf] %vm4310_vm5, %v5161_v62  ;;  %6043 = vmatmul.msk.bf16.gmra.mxu1 %vm663_vm3, %v2454_v9  ;;  %v4836_v43 = vunpack.c.l.bf16 %v4564_v7  ;;  %v2455_v11 = vrot.slane %v8228_v29, 1  ;;  %v3489_v50 = vor.u32 %v3487_v40, %v8186_v31  ;;  %v8232_v23 = vrot.slane %v3491_v27, 1 }
 0x34b   : > { %v4039_v60 = vadd.f32 %v3956_v41, %v3732_v35  ;;  %v4238_v2 = vpack.c.bf16 %v4190_v55, %v4190_v55  ;;  %v3959_v47 = vpop.f32.mrf.mxu0  ;;  %6164 = vmatmul.msk.bf16.gmra.mxu2 %vm663_vm3, %v6402_v15  ;;  %v5164_v4 = vshrl.u32 %v4930_v3, 16  ;;  %6281 = vmatmul.msk.bf16.gmra.mxu3 %vm663_vm3, %v3486_v17  ;;  %v5167_v0 = vshll.u32 %v4930_v3, 16  ;;  %v4568_v15 = vpop.permute.xlu2 %4567 }
 0x34c   : > { %v4573_v62 = vperm.slane %v4568_v15, %v7526_v34  ;;  %v3806_v55 = vrot.slane %v8214_v51, 1 }
 0x34d   : > { %v4091_v46 = vmul.f32 %v7971_v44, %v4039_v60  ;;  %v4787_v39 = vunpack.c.l.bf16 %v4238_v2  ;;  %v5166_v61 = vrot.slane %v5164_v4, 7  ;;  %v3281_v4 = vunpack.c.l.b16 %v3181_v20 }
 0x34e   : > { %6306 = vmatmul.msk.bf16.gmra.mxu0 %vm663_vm3, %v3805_v42  ;;  %v3030_v38 = vpop.f32.mrf.mxu2  ;;  %v3652_v19 = vpop.f32.mrf.mxu3  ;;  %v3807_v59 = vsel %vm1058_vm4, %v3804_v49, %v3806_v55 }
 0x34f   : > { %v4883_v5 = vmul.f32 %v4835_v10, %v4787_v39  ;;  %v3111_v21 = vadd.f32 %v3030_v38, %v2689_v22  ;;  %v4143_v52 = vadd.f32 %v7983_v53, %v4091_v46  ;;  %v5169_v37 = vor.u32 %v5167_v0, %v5166_v61  ;;  %v2610_v18 = vpop.f32.mrf.mxu1  ;;  %v6403_v10 = vld [vmem:[%s6620_s10 + $0xc8] sm:$0xff] }
 0x350   : > { %v2690_v9 = vadd.f32 %v2610_v18, %v7206_v36  ;;  %v5171_v17 = vrot.slane %v5166_v61, 4  ;;  %v2456_v36 = vsel %vm1058_vm4, %v2453_v1, %v2455_v11  ;;  %v3494_v39 = vsel %vm466_vm2, %v3489_v50, %v8232_v23  ;;  %v4577_v18 = vpop.permute.xlu0 %4576 }
 0x351   : > { %v4931_v41 = vpack.c.bf16 %v4883_v5, %v4883_v5  ;;  %v3733_v6 = vadd.f32 %v3652_v19, %v3111_v21  ;;  %v4191_v63 = vmax.f32 %v4143_v52, 0.0  ;;  %v5170_v48 = vsel %vm7610_vm12, %v5162_v12, %v5169_v37 }
 0x352   : > { %5462 = vst.msk [vmem:[%s7256_s27 + $0x68] sm:$0xf] %vm4310_vm5, %v5170_v48  ;;  %v4837_v38 = vunpack.c.l.bf16 %v4573_v62  ;;  %v8260_v19 = vpack.c.b16 %v3281_v4, %v3281_v4  ;;  %v4582_v27 = vperm.slane %v4577_v18, %v7526_v34 }
 0x353   : > { %v5173_v25 = vshrl.u32 %v4931_v41, 16  ;;  %v4040_v45 = vadd.f32 %v3959_v47, %v3733_v6  ;;  %v4239_v13 = vpack.c.bf16 %v4191_v63, %v4191_v63  ;;  %v3961_v57 = vpop.f32.mrf.mxu0  ;;  %v5176_v32 = vshll.u32 %v4931_v41, 16 }
 0x355   : > { %v5175_v30 = vrot.slane %v5173_v25, 7  ;;  %v4092_v8 = vmul.f32 %v7971_v44, %v4040_v45  ;;  %v4788_v26 = vunpack.c.l.bf16 %v4239_v13  ;;  %v3495_v13 = vshrl.u32 %v8214_v51, 16 }
 0x356   : > { %v3032_v35 = vpop.f32.mrf.mxu2  ;;  %v3654_v2 = vpop.f32.mrf.mxu3 }
 0x357   : > { %v5178_v31 = vor.u32 %v5176_v32, %v5175_v30  ;;  %v4144_v3 = vadd.f32 %v7983_v53, %v4092_v8  ;;  %v4884_v60 = vmul.f32 %v4836_v43, %v4788_v26  ;;  %v3112_v47 = vadd.f32 %v3032_v35, %v2690_v9  ;;  %v2613_v42 = vpop.f32.mrf.mxu1 }
 0x358   : > { %v2691_v37 = vadd.f32 %v2613_v42, %v7214_v54  ;;  %v5180_v49 = vrot.slane %v5175_v30, 4  ;;  %v3499_v54 = vshll.u32 %v8260_v19, 16  ;;  %v4838_v8 = vunpack.c.l.bf16 %v4582_v27 }
 0x359   : > { %v5179_v14 = vsel %vm7610_vm12, %v5171_v17, %v5178_v31  ;;  %v4192_v46 = vmax.f32 %v4144_v3, 0.0  ;;  %v4932_v22 = vpack.c.bf16 %v4884_v60, %v4884_v60  ;;  %v3734_v61 = vadd.f32 %v3654_v2, %v3112_v47  ;;  %v4586_v3 = vpop.permute.xlu1 %4585 }
 0x35a   : > { %5463 = vst.msk [vmem:[%s7256_s27 + $0x6c] sm:$0xf] %vm4310_vm5, %v5179_v14  ;;  %6044 = vmatmul.msk.bf16.gmra.mxu1 %vm663_vm3, %v2456_v36  ;;  %v2457_v9 = vrot.slane %v7211_v16, 1  ;;  %v3497_v62 = vor.u32 %v3495_v13, %v8232_v23  ;;  %v3501_v35 = vrot.slane %v3499_v54, 1  ;;  %v3808_v36 = vrot.slane %v8260_v19, 1 }
 0x35b   : > { %v4240_v0 = vpack.c.bf16 %v4192_v46, %v4192_v46  ;;  %v5182_v5 = vshrl.u32 %v4932_v22, 16  ;;  %v3964_v21 = vpop.f32.mrf.mxu0  ;;  %6165 = vmatmul.msk.bf16.gmra.mxu2 %vm663_vm3, %v6403_v10  ;;  %v4041_v1 = vadd.f32 %v3961_v57, %v3734_v61  ;;  %6282 = vmatmul.msk.bf16.gmra.mxu3 %vm663_vm3, %v3494_v39  ;;  %v5185_v12 = vshll.u32 %v4932_v22, 16  ;;  %v6404_v22 = vld [vmem:[%s6620_s10 + $0xd0] sm:$0xff] }
 0x35c   : > { %v4591_v10 = vperm.slane %v4586_v3, %v7526_v34  ;;  %v3809_v29 = vsel %vm1058_vm4, %v3806_v55, %v3808_v36 }
 0x35d   : > { %v4789_v52 = vunpack.c.l.bf16 %v4240_v0  ;;  %v5184_v7 = vrot.slane %v5182_v5, 7  ;;  %v4093_v40 = vmul.f32 %v7971_v44, %v4041_v1 }
 0x35e   : > { %6307 = vmatmul.msk.bf16.gmra.mxu0 %vm663_vm3, %v3807_v59  ;;  %v3035_v28 = vpop.f32.mrf.mxu2  ;;  %v3657_v48 = vpop.f32.mrf.mxu3  ;;  %v4839_v1 = vunpack.c.l.bf16 %v4591_v10 }
 0x35f   : > { %v4885_v41 = vmul.f32 %v4837_v38, %v4789_v52  ;;  %v5187_v6 = vor.u32 %v5185_v12, %v5184_v7  ;;  %v3113_v63 = vadd.f32 %v3035_v28, %v2691_v37  ;;  %v4145_v25 = vadd.f32 %v7983_v53, %v4093_v40  ;;  %v2615_v45 = vpop.f32.mrf.mxu1  ;;  %v4595_v40 = vpop.permute.xlu2 %4594 }
 0x360   : > { %v2692_v2 = vadd.f32 %v2615_v45, %v7225_v58  ;;  %v5189_v16 = vrot.slane %v5184_v7, 4  ;;  %v2458_v58 = vsel %vm1058_vm4, %v2455_v11, %v2457_v9 }
 0x361   : > { %v4933_v43 = vpack.c.bf16 %v4885_v41, %v4885_v41  ;;  %v5188_v57 = vsel %vm7610_vm12, %v5180_v49, %v5187_v6  ;;  %v3735_v50 = vadd.f32 %v3657_v48, %v3113_v63  ;;  %v4193_v32 = vmax.f32 %v4145_v25, 0.0 }
 0x362   : > { %5464 = vst.msk [vmem:[%s7256_s27 + $0x70] sm:$0xf] %vm4310_vm5, %v5188_v57  ;;  %v4600_v41 = vperm.slane %v4595_v40, %v7526_v34 }
 0x363   : > { %v5191_v30 = vshrl.u32 %v4933_v43, 16  ;;  %v4042_v15 = vadd.f32 %v3964_v21, %v3735_v50  ;;  %v3966_v26 = vpop.f32.mrf.mxu0  ;;  %v4241_v20 = vpack.c.bf16 %v4193_v32, %v4193_v32  ;;  %v5194_v31 = vshll.u32 %v4933_v43, 16 }
 0x364   : > { %v3502_v21 = vsel %vm466_vm2, %v3497_v62, %v3501_v35  ;;  %v4840_v57 = vunpack.c.l.bf16 %v4600_v41 }
 0x365   : > { %v5193_v17 = vrot.slane %v5191_v30, 7  ;;  %v4094_v60 = vmul.f32 %v7971_v44, %v4042_v15  ;;  %v4790_v47 = vunpack.c.l.bf16 %v4241_v20  ;;  %v4604_v20 = vpop.permute.xlu0 %4603 }
 0x366   : > { %v3037_v42 = vpop.f32.mrf.mxu2  ;;  %v3659_v46 = vpop.f32.mrf.mxu3  ;;  %v4609_v35 = vperm.slane %v4604_v20, %v7526_v34 }
 0x367   : > { %v5196_v4 = vor.u32 %v5194_v31, %v5193_v17  ;;  %v4146_v23 = vadd.f32 %v7983_v53, %v4094_v60  ;;  %v3114_v14 = vadd.f32 %v3037_v42, %v2692_v2  ;;  %v4886_v39 = vmul.f32 %v4838_v8, %v4790_v47  ;;  %v2618_v61 = vpop.f32.mrf.mxu1 }
 0x368   : > { %v2693_v18 = vadd.f32 %v2618_v61, %v7237_v24  ;;  %v5198_v48 = vrot.slane %v5193_v17, 4 }
 0x369   : > { %v5197_v0 = vsel %vm7610_vm12, %v5189_v16, %v5196_v4  ;;  %v4194_v38 = vmax.f32 %v4146_v23, 0.0  ;;  %v3736_v5 = vadd.f32 %v3659_v46, %v3114_v14  ;;  %v4934_v59 = vpack.c.bf16 %v4886_v39, %v4886_v39 }
 0x36a   : > { %5465 = vst.msk [vmem:[%s7256_s27 + $0x74] sm:$0xf] %vm4310_vm5, %v5197_v0  ;;  %6045 = vmatmul.msk.bf16.gmra.mxu1 %vm663_vm3, %v2458_v58  ;;  %v4841_v14 = vunpack.c.l.bf16 %v4609_v35 }
 0x36b   : > { %v4242_v19 = vpack.c.bf16 %v4194_v38, %v4194_v38  ;;  %v4043_v52 = vadd.f32 %v3966_v26, %v3736_v5  ;;  %v3969_v7 = vpop.f32.mrf.mxu0  ;;  %6166 = vmatmul.msk.bf16.gmra.mxu2 %vm663_vm3, %v6404_v22  ;;  %v5200_v11 = vshrl.u32 %v4934_v59, 16  ;;  %6283 = vmatmul.msk.bf16.gmra.mxu3 %vm663_vm3, %v3502_v21  ;;  %v5203_v28 = vshll.u32 %v4934_v59, 16  ;;  %v8316_v5 = vld [vmem:[%s8480_s2] ss:$0 sm:$0xff] }
 0x36d   : > { %v4791_v12 = vunpack.c.l.bf16 %v4242_v19  ;;  %v4095_v37 = vmul.f32 %v7971_v44, %v4043_v52  ;;  %v5202_v27 = vrot.slane %v5200_v11, 7  ;;  %v4613_v19 = vpop.permute.xlu1 %4612 }
 0x36e   : > { %6308 = vmatmul.msk.bf16.gmra.mxu0 %vm663_vm3, %v3809_v29  ;;  %v3040_v49 = vpop.f32.mrf.mxu2  ;;  %v3662_v63 = vpop.f32.mrf.mxu3 }
 0x36f   : > { %v4887_v51 = vmul.f32 %v4839_v1, %v4791_v12  ;;  %v4147_v55 = vadd.f32 %v7983_v53, %v4095_v37  ;;  %v3115_v6 = vadd.f32 %v3040_v49, %v2693_v18  ;;  %v5205_v25 = vor.u32 %v5203_v28, %v5202_v27  ;;  %v2620_v45 = vpop.f32.mrf.mxu1  ;;  %v8323_v37 = vld [vmem:[%s8481_s3] ss:$0 sm:$0xff] }
 0x370   : > { %v2694_v17 = vadd.f32 %v2620_v45, %v7265_v56  ;;  %v5207_v3 = vrot.slane %v5202_v27, 4  ;;  %v4618_v12 = vperm.slane %v4613_v19, %v7526_v34 }
 0x371   : > { %v4935_v13 = vpack.c.bf16 %v4887_v51, %v4887_v51  ;;  %v4195_v54 = vmax.f32 %v4147_v55, 0.0  ;;  %v3737_v24 = vadd.f32 %v3662_v63, %v3115_v6  ;;  %v5206_v43 = vsel %vm7610_vm12, %v5198_v48, %v5205_v25  ;;  %v4622_v25 = vpop.permute.xlu2 %4621 }
 0x372   : > { %5466 = vst.msk [vmem:[%s7256_s27 + $0x78] sm:$0xf] %vm4310_vm5, %v5206_v43  ;;  %v4842_v63 = vunpack.c.l.bf16 %v4618_v12 }
 0x373   : > { %v5209_v50 = vshrl.u32 %v4935_v13, 16  ;;  %v4243_v32 = vpack.c.bf16 %v4195_v54, %v4195_v54  ;;  %v4044_v30 = vadd.f32 %v3969_v7, %v3737_v24  ;;  %v3971_v8 = vpop.f32.mrf.mxu0  ;;  %v5212_v26 = vshll.u32 %v4935_v13, 16  ;;  %v8549_v24 = vld [vmem:[#allocation11_spill] sm:$0xff] }
 0x375   : > { %v5211_v15 = vrot.slane %v5209_v50, 7  ;;  %v4792_v9 = vunpack.c.l.bf16 %v4243_v32  ;;  %v4096_v62 = vmul.f32 %v7971_v44, %v4044_v30 }
 0x376   : > { %v3042_v31 = vpop.f32.mrf.mxu2  ;;  %v3664_v47 = vpop.f32.mrf.mxu3 }
 0x377   : > { %v5214_v60 = vor.u32 %v5212_v26, %v5211_v15  ;;  %v4888_v2 = vmul.f32 %v4840_v57, %v4792_v9  ;;  %v4148_v10 = vadd.f32 %v7983_v53, %v4096_v62  ;;  %v3116_v42 = vadd.f32 %v3042_v31, %v2694_v17  ;;  %v2623_v36 = vpop.f32.mrf.mxu1  ;;  %v8548_v53 = vld [vmem:[#allocation9_spill] sm:$0xff] }
 0x378   : > { %v2695_v38 = vadd.f32 %v2623_v36, %v8548_v53  ;;  %v5216_v1 = vrot.slane %v5211_v15, 4  ;;  %v4627_v57 = vperm.slane %v4622_v25, %v7526_v34 }
 0x379   : > { %v5215_v4 = vsel %vm7610_vm12, %v5207_v3, %v5214_v60  ;;  %v4936_v16 = vpack.c.bf16 %v4888_v2, %v4888_v2  ;;  %v4196_v23 = vmax.f32 %v4148_v10, 0.0  ;;  %v3738_v44 = vadd.f32 %v3664_v47, %v3116_v42 }
 0x37a   : > { %5467 = vst.msk [vmem:[%s7256_s27 + $0x7c] sm:$0xf] %vm4310_vm5, %v5215_v4  ;;  %v4843_v60 = vunpack.c.l.bf16 %v4627_v57 }
 0x37b   : > { %v5218_v46 = vshrl.u32 %v4936_v16, 16  ;;  %v4244_v56 = vpack.c.bf16 %v4196_v23, %v4196_v23  ;;  %v3974_v22 = vpop.f32.mrf.mxu0  ;;  %v4045_v39 = vadd.f32 %v3971_v8, %v3738_v44  ;;  %v5221_v58 = vshll.u32 %v4936_v16, 16  ;;  %v8550_v16 = vld [vmem:[#allocation13_spill] sm:$0xff] }
 0x37d   : > { %v5220_v61 = vrot.slane %v5218_v46, 7  ;;  %v4793_v0 = vunpack.c.l.bf16 %v4244_v56  ;;  %v4097_v21 = vmul.f32 %v8316_v5, %v4045_v39  ;;  %v4631_v56 = vpop.permute.xlu0 %4630 }
 0x37e   : > { %v3045_v59 = vpop.f32.mrf.mxu2  ;;  %v3667_v11 = vpop.f32.mrf.mxu3 }
 0x37f   : > { %v5223_v52 = vor.u32 %v5221_v58, %v5220_v61  ;;  %v4889_v7 = vmul.f32 %v4841_v14, %v4793_v0  ;;  %v3117_v29 = vadd.f32 %v3045_v59, %v2695_v38  ;;  %v4149_v18 = vadd.f32 %v8323_v37, %v4097_v21  ;;  %v2625_v40 = vpop.f32.mrf.mxu1 }
 0x380   : > { %v2696_v43 = vadd.f32 %v2625_v40, %v8549_v24  ;;  %v5225_v30 = vrot.slane %v5220_v61, 4  ;;  %v4636_v0 = vperm.slane %v4631_v56, %v7526_v34 }
 0x381   : > { %v5224_v27 = vsel %vm7610_vm12, %v5216_v1, %v5223_v52  ;;  %v4937_v28 = vpack.c.bf16 %v4889_v7, %v4889_v7  ;;  %v3739_v49 = vadd.f32 %v3667_v11, %v3117_v29  ;;  %v4197_v41 = vmax.f32 %v4149_v18, 0.0 }
 0x382   : > { %5468 = vst.msk [vmem:[%s7256_s27 + $0x80] sm:$0xf] %vm4310_vm5, %v5224_v27  ;;  %v4844_v18 = vunpack.c.l.bf16 %v4636_v0 }
 0x383   : > { %v5227_v51 = vshrl.u32 %v4937_v28, 16  ;;  %v4046_v55 = vadd.f32 %v3974_v22, %v3739_v49  ;;  %v3976_v6 = vpop.f32.mrf.mxu0  ;;  %v4245_v48 = vpack.c.bf16 %v4197_v41, %v4197_v41  ;;  %v5230_v13 = vshll.u32 %v4937_v28, 16  ;;  %v8551_v41 = vld [vmem:[#allocation15_spill] sm:$0xff] }
 0x385   : > { %v5229_v45 = vrot.slane %v5227_v51, 7  ;;  %v4098_v54 = vmul.f32 %v8316_v5, %v4046_v55  ;;  %v4794_v50 = vunpack.c.l.bf16 %v4245_v48 }
 0x386   : > { %v3047_v32 = vpop.f32.mrf.mxu2  ;;  %v3669_v20 = vpop.f32.mrf.mxu3 }
 0x387   : > { %v5232_v8 = vor.u32 %v5230_v13, %v5229_v45  ;;  %v4150_v15 = vadd.f32 %v8323_v37, %v4098_v54  ;;  %v3118_v26 = vadd.f32 %v3047_v32, %v2696_v43  ;;  %v4890_v9 = vmul.f32 %v4842_v63, %v4794_v50  ;;  %v2628_v62 = vpop.f32.mrf.mxu1 }
 0x388   : > { %v2697_v23 = vadd.f32 %v2628_v62, %v8550_v16  ;;  %v5234_v53 = vrot.slane %v5229_v45, 4 }
 0x389   : > { %v5233_v35 = vsel %vm7610_vm12, %v5225_v30, %v5232_v8  ;;  %v4198_v17 = vmax.f32 %v4150_v15, 0.0  ;;  %v3740_v31 = vadd.f32 %v3669_v20, %v3118_v26  ;;  %v4938_v3 = vpack.c.bf16 %v4890_v9, %v4890_v9 }
 0x38a   : > { %5469 = vst.msk [vmem:[%s7256_s27 + $0x84] sm:$0xf] %vm4310_vm5, %v5233_v35 }
 0x38b   : > { %v4246_v2 = vpack.c.bf16 %v4198_v17, %v4198_v17  ;;  %v4047_v10 = vadd.f32 %v3976_v6, %v3740_v31  ;;  %v3979_v47 = vpop.f32.mrf.mxu0  ;;  %v5236_v42 = vshrl.u32 %v4938_v3, 16  ;;  %v5239_v14 = vshll.u32 %v4938_v3, 16  ;;  %v4640_v6 = vpop.permute.xlu1 %4639  ;;  %v8552_v31 = vld [vmem:[#allocation17_spill] sm:$0xff] }
 0x38c   : > { %v4645_v54 = vperm.slane %v4640_v6, %v7526_v34 }
 0x38d   : > { %v4795_v36 = vunpack.c.l.bf16 %v4246_v2  ;;  %v4099_v4 = vmul.f32 %v8316_v5, %v4047_v10  ;;  %v5238_v44 = vrot.slane %v5236_v42, 7 }
 0x38e   : > { %v3050_v46 = vpop.f32.mrf.mxu2  ;;  %v3672_v58 = vpop.f32.mrf.mxu3  ;;  %v4845_v20 = vunpack.c.l.bf16 %v4645_v54 }
 0x38f   : > { %v4891_v22 = vmul.f32 %v4843_v60, %v4795_v36  ;;  %v4151_v39 = vadd.f32 %v8323_v37, %v4099_v4  ;;  %v3119_v61 = vadd.f32 %v3050_v46, %v2697_v23  ;;  %v5241_v38 = vor.u32 %v5239_v14, %v5238_v44  ;;  %v2630_v21 = vpop.f32.mrf.mxu1 }
 0x390   : > { %v2698_v51 = vadd.f32 %v2630_v21, %v8551_v41  ;;  %v5243_v63 = vrot.slane %v5238_v44, 4  ;;  %v4649_v44 = vpop.permute.xlu2 %4648 }
 0x391   : > { %v4939_v59 = vpack.c.bf16 %v4891_v22, %v4891_v22  ;;  %v4199_v1 = vmax.f32 %v4151_v39, 0.0  ;;  %v3741_v19 = vadd.f32 %v3672_v58, %v3119_v61  ;;  %v5242_v52 = vsel %vm7610_vm12, %v5234_v53, %v5241_v38 }
 0x392   : > { %5470 = vst.msk [vmem:[%s7256_s27 + $0x88] sm:$0xf] %vm4310_vm5, %v5242_v52  ;;  %v4654_v22 = vperm.slane %v4649_v44, %v7526_v34 }
 0x393   : > { %v5245_v7 = vshrl.u32 %v4939_v59, 16  ;;  %v4247_v29 = vpack.c.bf16 %v4199_v1, %v4199_v1  ;;  %v4048_v11 = vadd.f32 %v3979_v47, %v3741_v19  ;;  %v3981_v12 = vpop.f32.mrf.mxu0  ;;  %v5248_v27 = vshll.u32 %v4939_v59, 16  ;;  %v8553_v1 = vld [vmem:[#allocation2_spill] sm:$0xff] }
 0x394   : > { %v4846_v52 = vunpack.c.l.bf16 %v4654_v22 }
 0x395   : > { %v5247_v40 = vrot.slane %v5245_v7, 7  ;;  %v4796_v28 = vunpack.c.l.bf16 %v4247_v29  ;;  %v4100_v49 = vmul.f32 %v8316_v5, %v4048_v11 }
 0x396   : > { %v3052_v55 = vpop.f32.mrf.mxu2  ;;  %v3674_v13 = vpop.f32.mrf.mxu3 }
 0x397   : > { %v5250_v48 = vor.u32 %v5248_v27, %v5247_v40  ;;  %v4892_v25 = vmul.f32 %v4844_v18, %v4796_v28  ;;  %v4152_v45 = vadd.f32 %v8323_v37, %v4100_v49  ;;  %v3120_v24 = vadd.f32 %v3052_v55, %v2698_v51  ;;  %v2633_v43 = vpop.f32.mrf.mxu1  ;;  %v4658_v28 = vpop.permute.xlu0 %4657 }
 0x398   : > { %v2699_v3 = vadd.f32 %v2633_v43, %v8552_v31  ;;  %v5252_v10 = vrot.slane %v5247_v40, 4  ;;  %v4663_v51 = vperm.slane %v4658_v28, %v7526_v34 }
 0x399   : > { %v5251_v57 = vsel %vm7610_vm12, %v5243_v63, %v5250_v48  ;;  %v4940_v50 = vpack.c.bf16 %v4892_v25, %v4892_v25  ;;  %v4200_v32 = vmax.f32 %v4152_v45, 0.0  ;;  %v3742_v30 = vadd.f32 %v3674_v13, %v3120_v24 }
 0x39a   : > { %5471 = vst.msk [vmem:[%s7256_s27 + $0x8c] sm:$0xf] %vm4310_vm5, %v5251_v57  ;;  %v4847_v24 = vunpack.c.l.bf16 %v4663_v51 }
 0x39b   : > { %v5254_v8 = vshrl.u32 %v4940_v50, 16  ;;  %v4248_v15 = vpack.c.bf16 %v4200_v32, %v4200_v32  ;;  %v3984_v26 = vpop.f32.mrf.mxu0  ;;  %v4049_v9 = vadd.f32 %v3981_v12, %v3742_v30  ;;  %v5257_v35 = vshll.u32 %v4940_v50, 16  ;;  %v8554_v50 = vld [vmem:[#allocation3_spill] sm:$0xff] }
 0x39d   : > { %v5256_v62 = vrot.slane %v5254_v8, 7  ;;  %v4797_v17 = vunpack.c.l.bf16 %v4248_v15  ;;  %v4101_v60 = vmul.f32 %v8316_v5, %v4049_v9 }
 0x39e   : > { %v3055_v2 = vpop.f32.mrf.mxu2  ;;  %v3677_v4 = vpop.f32.mrf.mxu3 }
 0x39f   : > { %v5259_v47 = vor.u32 %v5257_v35, %v5256_v62  ;;  %v4893_v42 = vmul.f32 %v4845_v20, %v4797_v17  ;;  %v3121_v36 = vadd.f32 %v3055_v2, %v2699_v3  ;;  %v4153_v16 = vadd.f32 %v8323_v37, %v4101_v60  ;;  %v2635_v23 = vpop.f32.mrf.mxu1 }
 0x3a0   : > { %v2700_v19 = vadd.f32 %v2635_v23, %v8553_v1  ;;  %v5261_v11 = vrot.slane %v5256_v62, 4 }
 0x3a1   : > { %v5260_v14 = vsel %vm7610_vm12, %v5252_v10, %v5259_v47  ;;  %v4941_v46 = vpack.c.bf16 %v4893_v42, %v4893_v42  ;;  %v3743_v56 = vadd.f32 %v3677_v4, %v3121_v36  ;;  %v4201_v39 = vmax.f32 %v4153_v16, 0.0 }
 0x3a2   : > { %5472 = vst.msk [vmem:[%s7256_s27 + $0x90] sm:$0xf] %vm4310_vm5, %v5260_v14 }
 0x3a3   : > { %v5263_v61 = vshrl.u32 %v4941_v46, 16  ;;  %v4050_v58 = vadd.f32 %v3984_v26, %v3743_v56  ;;  %v3986_v0 = vpop.f32.mrf.mxu0  ;;  %v4249_v53 = vpack.c.bf16 %v4201_v39, %v4201_v39  ;;  %v5266_v21 = vshll.u32 %v4941_v46, 16  ;;  %v4667_v26 = vpop.permute.xlu1 %4666  ;;  %v8555_v39 = vld [vmem:[#allocation4_spill] sm:$0xff] }
 0x3a4   : > { %v4672_v17 = vperm.slane %v4667_v26, %v7526_v34 }
 0x3a5   : > { %v5265_v38 = vrot.slane %v5263_v61, 7  ;;  %v4102_v59 = vmul.f32 %v8316_v5, %v4050_v58  ;;  %v4798_v7 = vunpack.c.l.bf16 %v4249_v53 }
 0x3a6   : > { %v3057_v29 = vpop.f32.mrf.mxu2  ;;  %v3679_v27 = vpop.f32.mrf.mxu3  ;;  %v4848_v44 = vunpack.c.l.bf16 %v4672_v17 }
 0x3a7   : > { %v5268_v12 = vor.u32 %v5266_v21, %v5265_v38  ;;  %v4154_v18 = vadd.f32 %v8323_v37, %v4102_v59  ;;  %v3122_v40 = vadd.f32 %v3057_v29, %v2700_v19  ;;  %v4894_v49 = vmul.f32 %v4846_v52, %v4798_v7  ;;  %v2638_v41 = vpop.f32.mrf.mxu1 }
 0x3a8   : > { %v2701_v32 = vadd.f32 %v2638_v41, %v8554_v50  ;;  %v5270_v31 = vrot.slane %v5265_v38, 4 }
 0x3a9   : > { %v5269_v55 = vsel %vm7610_vm12, %v5261_v11, %v5268_v12  ;;  %v4202_v6 = vmax.f32 %v4154_v18, 0.0  ;;  %v3744_v63 = vadd.f32 %v3679_v27, %v3122_v40  ;;  %v4942_v48 = vpack.c.bf16 %v4894_v49, %v4894_v49 }
 0x3aa   : > { %5473 = vst.msk [vmem:[%s7256_s27 + $0x94] sm:$0xf] %vm4310_vm5, %v5269_v55 }
 0x3ab   : > { %v4250_v25 = vpack.c.bf16 %v4202_v6, %v4202_v6  ;;  %v4051_v45 = vadd.f32 %v3986_v0, %v3744_v63  ;;  %v3989_v13 = vpop.f32.mrf.mxu0  ;;  %v5272_v54 = vshrl.u32 %v4942_v48, 16  ;;  %v5275_v8 = vshll.u32 %v4942_v48, 16  ;;  %v4676_v0 = vpop.permute.xlu2 %4675  ;;  %v8556_v63 = vld [vmem:[#allocation5_spill] sm:$0xff] }
 0x3ac   : > { %v4681_v19 = vperm.slane %v4676_v0, %v7526_v34 }
 0x3ad   : > { %v4799_v43 = vunpack.c.l.bf16 %v4250_v25  ;;  %v4103_v57 = vmul.f32 %v8316_v5, %v4051_v45  ;;  %v5274_v30 = vrot.slane %v5272_v54, 7 }
 0x3ae   : > { %v3060_v15 = vpop.f32.mrf.mxu2  ;;  %v3682_v35 = vpop.f32.mrf.mxu3  ;;  %v4849_v49 = vunpack.c.l.bf16 %v4681_v19 }
 0x3af   : > { %v4895_v20 = vmul.f32 %v4847_v24, %v4799_v43  ;;  %v4155_v9 = vadd.f32 %v8323_v37, %v4103_v57  ;;  %v3123_v62 = vadd.f32 %v3060_v15, %v2701_v32  ;;  %v5277_v3 = vor.u32 %v5275_v8, %v5274_v30  ;;  %v2640_v60 = vpop.f32.mrf.mxu1 }
 0x3b0   : > { %v2702_v61 = vadd.f32 %v2640_v60, %v8555_v39  ;;  %v5279_v53 = vrot.slane %v5274_v30, 4  ;;  %v4685_v30 = vpop.permute.xlu0 %4684 }
 0x3b1   : > { %v4943_v2 = vpack.c.bf16 %v4895_v20, %v4895_v20  ;;  %v4203_v10 = vmax.f32 %v4155_v9, 0.0  ;;  %v3745_v47 = vadd.f32 %v3682_v35, %v3123_v62  ;;  %v5278_v42 = vsel %vm7610_vm12, %v5270_v31, %v5277_v3 }
 0x3b2   : > { %5474 = vst.msk [vmem:[%s7256_s27 + $0x98] sm:$0xf] %vm4310_vm5, %v5278_v42  ;;  %v4690_v20 = vperm.slane %v4685_v30, %v7526_v34 }
 0x3b3   : > { %v5281_v36 = vshrl.u32 %v4943_v2, 16  ;;  %v4251_v4 = vpack.c.bf16 %v4203_v10, %v4203_v10  ;;  %v4052_v16 = vadd.f32 %v3989_v13, %v3745_v47  ;;  %v3991_v23 = vpop.f32.mrf.mxu0  ;;  %v5284_v46 = vshll.u32 %v4943_v2, 16  ;;  %v8557_v10 = vld [vmem:[#allocation6_spill] sm:$0xff] }
 0x3b4   : > { %v4850_v42 = vunpack.c.l.bf16 %v4690_v20 }
 0x3b5   : > { %v5283_v14 = vrot.slane %v5281_v36, 7  ;;  %v4800_v56 = vunpack.c.l.bf16 %v4251_v4  ;;  %v4104_v22 = vmul.f32 %v8316_v5, %v4052_v16 }
 0x3b6   : > { %v3062_v58 = vpop.f32.mrf.mxu2  ;;  %v3684_v1 = vpop.f32.mrf.mxu3 }
 0x3b7   : > { %v5286_v38 = vor.u32 %v5284_v46, %v5283_v14  ;;  %v4896_v21 = vmul.f32 %v4848_v44, %v4800_v56  ;;  %v4156_v59 = vadd.f32 %v8323_v37, %v4104_v22  ;;  %v3124_v52 = vadd.f32 %v3062_v58, %v2702_v61  ;;  %v2643_v7 = vpop.f32.mrf.mxu1  ;;  %v4694_v56 = vpop.permute.xlu1 %4693 }
 0x3b8   : > { %v2703_v48 = vadd.f32 %v2643_v7, %v8556_v63  ;;  %v5288_v13 = vrot.slane %v5283_v14, 4  ;;  %v4699_v61 = vperm.slane %v4694_v56, %v7526_v34 }
 0x3b9   : > { %v5287_v29 = vsel %vm7610_vm12, %v5279_v53, %v5286_v38  ;;  %v4944_v11 = vpack.c.bf16 %v4896_v21, %v4896_v21  ;;  %v4204_v12 = vmax.f32 %v4156_v59, 0.0  ;;  %v3746_v18 = vadd.f32 %v3684_v1, %v3124_v52 }
 0x3ba   : > { %5475 = vst.msk [vmem:[%s7256_s27 + $0x9c] sm:$0xf] %vm4310_vm5, %v5287_v29  ;;  %v4851_v52 = vunpack.c.l.bf16 %v4699_v61 }
 0x3bb   : > { %v5290_v40 = vshrl.u32 %v4944_v11, 16  ;;  %v4252_v27 = vpack.c.bf16 %v4204_v12, %v4204_v12  ;;  %v3994_v28 = vpop.f32.mrf.mxu0  ;;  %v4053_v41 = vadd.f32 %v3991_v23, %v3746_v18  ;;  %v5293_v55 = vshll.u32 %v4944_v11, 16  ;;  %v8558_v11 = vld [vmem:[#allocation7_spill] sm:$0xff] }
 0x3bd   : > { %v5292_v51 = vrot.slane %v5290_v40, 7  ;;  %v4801_v6 = vunpack.c.l.bf16 %v4252_v27  ;;  %v4105_v25 = vmul.f32 %v8316_v5, %v4053_v41 }
 0x3be   : > { %v3065_v45 = vpop.f32.mrf.mxu2  ;;  %v3687_v57 = vpop.f32.mrf.mxu3 }
 0x3bf   : > { %v5295_v54 = vor.u32 %v5293_v55, %v5292_v51  ;;  %v4897_v24 = vmul.f32 %v4849_v49, %v4801_v6  ;;  %v3125_v43 = vadd.f32 %v3065_v45, %v2703_v48  ;;  %v4157_v50 = vadd.f32 %v8323_v37, %v4105_v25  ;;  %v2645_v32 = vpop.f32.mrf.mxu1 }
 0x3c0   : > { %v2704_v47 = vadd.f32 %v2645_v32, %v8557_v10  ;;  %v5297_v16 = vrot.slane %v5292_v51, 4 }
 0x3c1   : > { %v5296_v8 = vsel %vm7610_vm12, %v5288_v13, %v5295_v54  ;;  %v4945_v15 = vpack.c.bf16 %v4897_v24, %v4897_v24  ;;  %v3747_v26 = vadd.f32 %v3687_v57, %v3125_v43  ;;  %v4205_v9 = vmax.f32 %v4157_v50, 0.0 }
 0x3c2   : > { %5476 = vst.msk [vmem:[%s7256_s27 + $0xa0] sm:$0xf] %vm4310_vm5, %v5296_v8 }
 0x3c3   : > { %v5299_v62 = vshrl.u32 %v4945_v15, 16  ;;  %v4054_v35 = vadd.f32 %v3994_v28, %v3747_v26  ;;  %v3996_v17 = vpop.f32.mrf.mxu0  ;;  %v4253_v31 = vpack.c.bf16 %v4205_v9, %v4205_v9  ;;  %v5302_v60 = vshll.u32 %v4945_v15, 16  ;;  %v4703_v28 = vpop.permute.xlu2 %4702  ;;  %v8559_v9 = vld [vmem:[#allocation8_spill] sm:$0xff] }
 0x3c4   : > { %v4708_v6 = vperm.slane %v4703_v28, %v7526_v34 }
 0x3c5   : > { %v5301_v3 = vrot.slane %v5299_v62, 7  ;;  %v4106_v2 = vmul.f32 %v8316_v5, %v4054_v35  ;;  %v4802_v36 = vunpack.c.l.bf16 %v4253_v31 }
 0x3c6   : > { %v3067_v4 = vpop.f32.mrf.mxu2  ;;  %v3689_v46 = vpop.f32.mrf.mxu3  ;;  %v4852_v30 = vunpack.c.l.bf16 %v4708_v6 }
 0x3c7   : > { %v5304_v23 = vor.u32 %v5302_v60, %v5301_v3  ;;  %v4158_v44 = vadd.f32 %v8323_v37, %v4106_v2  ;;  %v3126_v14 = vadd.f32 %v3067_v4, %v2704_v47  ;;  %v4898_v22 = vmul.f32 %v4850_v42, %v4802_v36  ;;  %v2648_v39 = vpop.f32.mrf.mxu1 }
 0x3c8   : > { %v2705_v12 = vadd.f32 %v2648_v39, %v8558_v11  ;;  %v5306_v63 = vrot.slane %v5301_v3, 4 }
 0x3c9   : > { %v5305_v58 = vsel %vm7610_vm12, %v5297_v16, %v5304_v23  ;;  %v4206_v0 = vmax.f32 %v4158_v44, 0.0  ;;  %v3748_v53 = vadd.f32 %v3689_v46, %v3126_v14  ;;  %v4946_v38 = vpack.c.bf16 %v4898_v22, %v4898_v22 }
 0x3ca   : > { %5477 = vst.msk [vmem:[%s7256_s27 + $0xa4] sm:$0xf] %vm4310_vm5, %v5305_v58 }
 0x3cb   : > { %v4254_v21 = vpack.c.bf16 %v4206_v0, %v4206_v0  ;;  %v4055_v59 = vadd.f32 %v3996_v17, %v3748_v53  ;;  %v3999_v1 = vpop.f32.mrf.mxu0  ;;  %v5308_v19 = vshrl.u32 %v4946_v38, 16  ;;  %v5311_v40 = vshll.u32 %v4946_v38, 16  ;;  %v4712_v17 = vpop.permute.xlu0 %4711  ;;  %v8560_v0 = vld [vmem:[#allocation10_spill] sm:$0xff] }
 0x3cc   : > { %v4717_v47 = vperm.slane %v4712_v17, %v7526_v34 }
 0x3cd   : > { %v4803_v7 = vunpack.c.l.bf16 %v4254_v21  ;;  %v4107_v29 = vmul.f32 %v8316_v5, %v4055_v59  ;;  %v5310_v18 = vrot.slane %v5308_v19, 7 }
 0x3ce   : > { %v3070_v27 = vpop.f32.mrf.mxu2  ;;  %v3692_v55 = vpop.f32.mrf.mxu3  ;;  %v4853_v56 = vunpack.c.l.bf16 %v4717_v47 }
 0x3cf   : > { %v4899_v49 = vmul.f32 %v4851_v52, %v4803_v7  ;;  %v4159_v41 = vadd.f32 %v8323_v37, %v4107_v29  ;;  %v3127_v51 = vadd.f32 %v3070_v27, %v2705_v12  ;;  %v5313_v48 = vor.u32 %v5311_v40, %v5310_v18  ;;  %v2650_v25 = vpop.f32.mrf.mxu1 }
 0x3d0   : > { %v2706_v62 = vadd.f32 %v2650_v25, %v8559_v9  ;;  %v5315_v31 = vrot.slane %v5310_v18, 4  ;;  %v4721_v18 = vpop.permute.xlu1 %4720 }
 0x3d1   : > { %v4947_v45 = vpack.c.bf16 %v4899_v49, %v4899_v49  ;;  %v4207_v13 = vmax.f32 %v4159_v41, 0.0  ;;  %v3749_v54 = vadd.f32 %v3692_v55, %v3127_v51  ;;  %v5314_v24 = vsel %vm7610_vm12, %v5306_v63, %v5313_v48 }
 0x3d2   : > { %5478 = vst.msk [vmem:[%s7256_s27 + $0xa8] sm:$0xf] %vm4310_vm5, %v5314_v24  ;;  %v4726_v49 = vperm.slane %v4721_v18, %v7526_v34 }
 0x3d3   : > { %v5317_v43 = vshrl.u32 %v4947_v45, 16  ;;  %v4255_v57 = vpack.c.bf16 %v4207_v13, %v4207_v13  ;;  %v4056_v50 = vadd.f32 %v3999_v1, %v3749_v54  ;;  %v4001_v32 = vpop.f32.mrf.mxu0  ;;  %v5320_v15 = vshll.u32 %v4947_v45, 16  ;;  %v8561_v45 = vld [vmem:[#allocation12_spill] sm:$0xff] }
 0x3d4   : > { %v4854_v54 = vunpack.c.l.bf16 %v4726_v49 }
 0x3d5   : > { %v5319_v8 = vrot.slane %v5317_v43, 7  ;;  %v4804_v26 = vunpack.c.l.bf16 %v4255_v57  ;;  %v4108_v20 = vmul.f32 %v8316_v5, %v4056_v50 }
 0x3d6   : > { %v3072_v35 = vpop.f32.mrf.mxu2  ;;  %v3694_v10 = vpop.f32.mrf.mxu3 }
 0x3d7   : > { %v5322_v3 = vor.u32 %v5320_v15, %v5319_v8  ;;  %v4900_v60 = vmul.f32 %v4852_v30, %v4804_v26  ;;  %v4160_v2 = vadd.f32 %v8323_v37, %v4108_v20  ;;  %v3128_v42 = vadd.f32 %v3072_v35, %v2706_v62  ;;  %v2653_v36 = vpop.f32.mrf.mxu1  ;;  %v4730_v26 = vpop.permute.xlu2 %4729 }
 0x3d8   : > { %v2707_v53 = vadd.f32 %v2653_v36, %v8560_v0  ;;  %v5324_v1 = vrot.slane %v5319_v8, 4  ;;  %v4735_v9 = vperm.slane %v4730_v26, %v7526_v34  ;;  %v4748_v49 = vpop.permute.xlu1 %4747 }
 0x3d9   : > { %v5323_v4 = vsel %vm7610_vm12, %v5315_v31, %v5322_v3  ;;  %v4948_v16 = vpack.c.bf16 %v4900_v60, %v4900_v60  ;;  %v4208_v23 = vmax.f32 %v4160_v2, 0.0  ;;  %v3750_v44 = vadd.f32 %v3694_v10, %v3128_v42  ;;  %v4739_v42 = vpop.permute.xlu0 %4738 }
 0x3da   : > { %5479 = vst.msk [vmem:[%s7256_s27 + $0xac] sm:$0xf] %vm4310_vm5, %v5323_v4  ;;  %v4855_v47 = vunpack.c.l.bf16 %v4735_v9 }
 0x3db   : > { %v5326_v14 = vshrl.u32 %v4948_v16, 16  ;;  %v4256_v46 = vpack.c.bf16 %v4208_v23, %v4208_v23  ;;  %v4057_v22 = vadd.f32 %v4001_v32, %v3750_v44  ;;  %v5329_v61 = vshll.u32 %v4948_v16, 16  ;;  %v4004_v38 = vpop.f32.mrf.mxu0  ;;  %v8562_v16 = vld [vmem:[#allocation16_spill] sm:$0xff] }
 0x3dd   : > { %v5328_v39 = vrot.slane %v5326_v14, 7  ;;  %v4805_v58 = vunpack.c.l.bf16 %v4256_v46  ;;  %v4109_v21 = vmul.f32 %v8316_v5, %v4057_v22 }
 0x3de   : > { %v3075_v59 = vpop.f32.mrf.mxu2  ;;  %v3697_v29 = vpop.f32.mrf.mxu3 }
 0x3df   : > { %v5331_v19 = vor.u32 %v5329_v61, %v5328_v39  ;;  %v4901_v52 = vmul.f32 %v4853_v56, %v4805_v58  ;;  %v3129_v7 = vadd.f32 %v3075_v59, %v2707_v53  ;;  %v4161_v11 = vadd.f32 %v8323_v37, %v4109_v21  ;;  %v2655_v12 = vpop.f32.mrf.mxu1 }
 0x3e0   : > { %v2708_v13 = vadd.f32 %v2655_v12, %v8561_v45  ;;  %v5333_v57 = vrot.slane %v5328_v39, 4  ;;  %v4744_v58 = vperm.slane %v4739_v42, %v7526_v34 }
 0x3e1   : > { %v5332_v40 = vsel %vm7610_vm12, %v5324_v1, %v5331_v19  ;;  %v4949_v27 = vpack.c.bf16 %v4901_v52, %v4901_v52  ;;  %v3751_v28 = vadd.f32 %v3697_v29, %v3129_v7  ;;  %v4209_v41 = vmax.f32 %v4161_v11, 0.0 }
 0x3e2   : > { %5480 = vst.msk [vmem:[%s7256_s27 + $0xb0] sm:$0xf] %vm4310_vm5, %v5332_v40  ;;  %v4856_v12 = vunpack.c.l.bf16 %v4744_v58 }
 0x3e3   : > { %v5335_v51 = vshrl.u32 %v4949_v27, 16  ;;  %v4058_v55 = vadd.f32 %v4004_v38, %v3751_v28  ;;  %v4257_v6 = vpack.c.bf16 %v4209_v41, %v4209_v41  ;;  %v5338_v48 = vshll.u32 %v4949_v27, 16  ;;  %v4006_v30 = vpop.f32.mrf.mxu0  ;;  %v8563_v41 = vld [vmem:[#allocation18_spill] sm:$0xff] }
 0x3e5   : > { %v5337_v63 = vrot.slane %v5335_v51, 7  ;;  %v4110_v25 = vmul.f32 %v8316_v5, %v4058_v55  ;;  %v4806_v24 = vunpack.c.l.bf16 %v4257_v6 }
 0x3e6   : > { %v3077_v43 = vpop.f32.mrf.mxu2  ;;  %v3699_v15 = vpop.f32.mrf.mxu3 }
 0x3e7   : > { %v5340_v50 = vor.u32 %v5338_v48, %v5337_v63  ;;  %v4162_v32 = vadd.f32 %v8323_v37, %v4110_v25  ;;  %v3130_v8 = vadd.f32 %v3077_v43, %v2708_v13  ;;  %v4902_v20 = vmul.f32 %v4854_v54, %v4806_v24  ;;  %v2658_v31 = vpop.f32.mrf.mxu1 }
 0x3e8   : > { %v2709_v23 = vadd.f32 %v2658_v31, %v8562_v16  ;;  %v5342_v0 = vrot.slane %v5337_v63, 4  ;;  %v4753_v13 = vperm.slane %v4748_v49, %v7526_v34 }
 0x3e9   : > { %v5341_v62 = vsel %vm7610_vm12, %v5333_v57, %v5340_v50  ;;  %v4210_v35 = vmax.f32 %v4162_v32, 0.0  ;;  %v3752_v17 = vadd.f32 %v3699_v15, %v3130_v8  ;;  %v4950_v3 = vpack.c.bf16 %v4902_v20, %v4902_v20 }
 0x3ea   : > { %5481 = vst.msk [vmem:[%s7256_s27 + $0xb4] sm:$0xf] %vm4310_vm5, %v5341_v62  ;;  %v4857_v26 = vunpack.c.l.bf16 %v4753_v13 }
 0x3eb   : > { %v4258_v60 = vpack.c.bf16 %v4210_v35, %v4210_v35  ;;  %v4059_v2 = vadd.f32 %v4006_v30, %v3752_v17  ;;  %v5344_v10 = vshrl.u32 %v4950_v3, 16  ;;  %v5347_v14 = vshll.u32 %v4950_v3, 16  ;;  %v4009_v59 = vpop.f32.mrf.mxu0  ;;  %v4757_v17 = vpop.permute.xlu2 %4756 }
 0x3ec   : > { %v4762_v42 = vperm.slane %v4757_v17, %v7526_v34 }
 0x3ed   : > { %v4807_v36 = vunpack.c.l.bf16 %v4258_v60  ;;  %v4111_v4 = vmul.f32 %v8316_v5, %v4059_v2  ;;  %v5346_v44 = vrot.slane %v5344_v10, 7 }
 0x3ee   : > { %v3080_v46 = vpop.f32.mrf.mxu2  ;;  %v3702_v61 = vpop.f32.mrf.mxu3 }
 0x3ef   : > { %v4903_v56 = vmul.f32 %v4855_v47, %v4807_v36  ;;  %v4163_v22 = vadd.f32 %v8323_v37, %v4111_v4  ;;  %v3131_v39 = vadd.f32 %v3080_v46, %v2709_v23  ;;  %v5349_v53 = vor.u32 %v5347_v14, %v5346_v44  ;;  %v2660_v11 = vpop.f32.mrf.mxu1 }
 0x3f0   : > { %v2710_v51 = vadd.f32 %v2660_v11, %v8563_v41  ;;  %v5351_v6 = vrot.slane %v5346_v44, 4  ;;  %v4858_v44 = vunpack.c.l.bf16 %v4762_v42 }
 0x3f1   : > { %v4951_v38 = vpack.c.bf16 %v4903_v56, %v4903_v56  ;;  %v4211_v21 = vmax.f32 %v4163_v22, 0.0  ;;  %v3753_v1 = vadd.f32 %v3702_v61, %v3131_v39  ;;  %v5350_v19 = vsel %vm7610_vm12, %v5342_v0, %v5349_v53  ;;  %v5487_v0 = vld [vmem:[%s7256_s27 + $0xcc] sm:$0x1] }
 0x3f2   : > { %5482 = vst.msk [vmem:[%s7256_s27 + $0xb8] sm:$0xf] %vm4310_vm5, %v5350_v19 }
 0x3f3   : > { %v5353_v52 = vshrl.u32 %v4951_v38, 16  ;;  %v4259_v7 = vpack.c.bf16 %v4211_v21, %v4211_v21  ;;  %v4060_v29 = vadd.f32 %v4009_v59, %v3753_v1  ;;  %v5356_v40 = vshll.u32 %v4951_v38, 16  ;;  %v4011_v8 = vpop.f32.mrf.mxu0 }
 0x3f5   : > { %v5355_v18 = vrot.slane %v5353_v52, 7  ;;  %v4808_v27 = vunpack.c.l.bf16 %v4259_v7  ;;  %v4112_v28 = vmul.f32 %v8316_v5, %v4060_v29 }
 0x3f6   : > { %v3082_v55 = vpop.f32.mrf.mxu2  ;;  %v3704_v57 = vpop.f32.mrf.mxu3 }
 0x3f7   : > { %v5358_v63 = vor.u32 %v5356_v40, %v5355_v18  ;;  %v4904_v48 = vmul.f32 %v4856_v12, %v4808_v27  ;;  %v4164_v25 = vadd.f32 %v8323_v37, %v4112_v28  ;;  %v3132_v45 = vadd.f32 %v3082_v55, %v2710_v51 }
 0x3f8   : > { %v5360_v31 = vrot.slane %v5355_v18, 4 }
 0x3f9   : > { %v5359_v54 = vsel %vm7610_vm12, %v5351_v6, %v5358_v63  ;;  %v4952_v24 = vpack.c.bf16 %v4904_v48, %v4904_v48  ;;  %v4212_v43 = vmax.f32 %v4164_v25, 0.0  ;;  %v3754_v50 = vadd.f32 %v3704_v57, %v3132_v45 }
 0x3fa   : > { %5483 = vst.msk [vmem:[%s7256_s27 + $0xbc] sm:$0xf] %vm4310_vm5, %v5359_v54 }
 0x3fb   : > { %v5362_v32 = vshrl.u32 %v4952_v24, 16  ;;  %v4260_v30 = vpack.c.bf16 %v4212_v43, %v4212_v43  ;;  %v4061_v15 = vadd.f32 %v4011_v8, %v3754_v50  ;;  %v5365_v9 = vshll.u32 %v4952_v24, 16 }
 0x3fd   : > { %v5364_v20 = vrot.slane %v5362_v32, 7  ;;  %v4809_v62 = vunpack.c.l.bf16 %v4260_v30  ;;  %v4113_v35 = vmul.f32 %v8316_v5, %v4061_v15 }
 0x3ff   : > { %v5367_v3 = vor.u32 %v5365_v9, %v5364_v20  ;;  %v4905_v60 = vmul.f32 %v4857_v26, %v4809_v62  ;;  %v4165_v2 = vadd.f32 %v8323_v37, %v4113_v35  ;;  %v5369_v46 = vrot.slane %v5364_v20, 4 }
 0x401   : > { %v5368_v10 = vsel %vm7610_vm12, %v5360_v31, %v5367_v3  ;;  %v4953_v47 = vpack.c.bf16 %v4905_v60, %v4905_v60  ;;  %v4213_v36 = vmax.f32 %v4165_v2, 0.0 }
 0x402   : > { %5484 = vst.msk [vmem:[%s7256_s27 + $0xc0] sm:$0xf] %vm4310_vm5, %v5368_v10 }
 0x403   : > { %v5371_v4 = vshrl.u32 %v4953_v47, 16  ;;  %v4261_v16 = vpack.c.bf16 %v4213_v36, %v4213_v36  ;;  %v5374_v23 = vshll.u32 %v4953_v47, 16 }
 0x405   : > { %v5373_v5 = vrot.slane %v5371_v4, 7  ;;  %v4810_v14 = vunpack.c.l.bf16 %v4261_v16 }
 0x407   : > { %v5376_v37 = vor.u32 %v5374_v23, %v5373_v5  ;;  %v4906_v56 = vmul.f32 %v4858_v44, %v4810_v14  ;;  %v5378_v53 = vrot.slane %v5373_v5, 4 }
 0x409   : > { %v5377_v22 = vsel %vm7610_vm12, %v5369_v46, %v5376_v37  ;;  %v4954_v34 = vpack.c.bf16 %v4906_v56, %v4906_v56 }
 0x40a   : > { %5485 = vst.msk [vmem:[%s7256_s27 + $0xc4] sm:$0xf] %vm4310_vm5, %v5377_v22 }
 0x40b   : > { %v5380_v39 = vshrl.u32 %v4954_v34, 16  ;;  %v5383_v58 = vshll.u32 %v4954_v34, 16 }
 0x40d   : > { %v5382_v61 = vrot.slane %v5380_v39, 7 }
 0x40f   : > { %v5385_v38 = vor.u32 %v5383_v58, %v5382_v61  ;;  %v5387_v21 = vrot.slane %v5382_v61, 4 }
 0x411   : > { %v5386_v59 = vsel %vm7610_vm12, %v5378_v53, %v5385_v38  ;;  %v5488_v19 = vsel %vm7472_vm9, %v5387_v21, %v5487_v0 }
 0x412   : > { %5486 = vst.msk [vmem:[%s7256_s27 + $0xc8] sm:$0xf] %vm4310_vm5, %v5386_v59 }
 0x413   : > { %5489 = vst [vmem:[%s7256_s27 + $0xcc] sm:$0x1] %v5488_v19 }
 0x414 PF: > { %s15_s20 = sadd.s32 1, %s6537_s20   ;;  %s8565_s18 = smov %s6533_s19 }
 0x415   : > { %p12_p5 = scmp.ge.s32.totalorder %s15_s20, 4   ;;  %s8566_s19 = smov %s8568_s21 }
 0x417   :  { %14 = sbr.rel (!%p12_p5) target bundleno = 2 (0x2), region = 87 }

</bundles_post_ra>
